<compile_context>
chip_gen: v6e
topology: v6e:2x2x1
jax: 0.10.0
libtpu: 0.0.40
codegen_flags: <defaults>
</compile_context>

<pallas_src>
import functools

import jax
import jax.numpy as jnp
from jax import lax
from jax.experimental import pallas as pl
from jax.experimental.pallas import tpu as pltpu

BN_EPS = 1e-5


def _round_up(x: int, m: int) -> int:
    return ((x + m - 1) // m) * m


# --------------------------------------------------------------------------- #
# K1: embedding row gather (HBM->VMEM DMA) + sequence sum + Linear(D, H)      #
#     + full-batch BatchNorm statistics accumulation (resident accumulators). #
#     Outputs: h (B_pad, H_pad), mu (1, H_pad), inv_std (1, H_pad)            #
# --------------------------------------------------------------------------- #
def _embed_linear_stats_kernel(idx_ref, table_hbm, w1_ref, b1_ref,
                               h_ref, mu_ref, scale_ref,
                               gather_buf, gather_sems,
                               *, tile_b, seq_len, n_valid):
    tile = pl.program_id(0)

    @pl.when(tile == 0)
    def _():
        mu_ref[...] = jnp.zeros_like(mu_ref)       # running sum
        scale_ref[...] = jnp.zeros_like(scale_ref)  # running sum of squares

    # Issue all row-gather DMAs for this batch tile, then wait on all of them.
    # NOTE: token ids are not bounds-checked here (PyTorch nn.Embedding would
    # raise on out-of-range indices).
    copies = []
    for b in range(tile_b):
        row = tile * tile_b + b
        for s in range(seq_len):
            tok = idx_ref[row, s]                       # scalar read from SMEM
            cp = pltpu.make_async_copy(
                table_hbm.at[pl.ds(tok, 1), :],         # (1, D_pad) row in HBM
                gather_buf.at[b, pl.ds(s, 1), :],       # (1, D_pad) slot in VMEM
                gather_sems.at[b, s])
            cp.start()
            copies.append(cp)
    for cp in copies:
        cp.wait()

    emb = gather_buf[...]                               # (tile_b, S, D_pad) f32
    pooled = jnp.sum(emb, axis=1)                       # (tile_b, D_pad); 1/S folded into w1
    h = (jnp.dot(pooled.astype(jnp.bfloat16), w1_ref[...],
                 preferred_element_type=jnp.float32)
         + b1_ref[...])                                 # (tile_b, H_pad) f32
    h_ref[...] = h

    # Accumulate full-batch statistics; mask batch-padding rows out.
    rows = tile * tile_b + lax.broadcasted_iota(jnp.int32, (tile_b, 1), 0)
    mask = (rows < n_valid).astype(jnp.float32)
    hm = h * mask
    mu_ref[...] += jnp.sum(hm, axis=0, keepdims=True)
    scale_ref[...] += jnp.sum(hm * h, axis=0, keepdims=True)

    @pl.when(tile == pl.num_programs(0) - 1)
    def _():
        inv_n = 1.0 / float(n_valid)
        mean = mu_ref[...] * inv_n
        var = scale_ref[...] * inv_n - mean * mean       # biased variance (train-mode BN)
        mu_ref[...] = mean
        scale_ref[...] = lax.rsqrt(var + BN_EPS)


# --------------------------------------------------------------------------- #
# K2: normalize + Linear(H, C) with BN affine folded into (w2, b2)            #
# --------------------------------------------------------------------------- #
def _bn_fc_kernel(h_ref, mu_ref, scale_ref, w2_ref, b2_ref, out_ref):
    hn = (h_ref[...] - mu_ref[...]) * scale_ref[...]
    out_ref[...] = (
        jnp.dot(hn.astype(jnp.bfloat16), w2_ref[...],
                preferred_element_type=jnp.float32)
        + b2_ref[...])


# --------------------------------------------------------------------------- #
# Wrapper: pad / transpose / fold weights (trace-time), launch the 2 kernels  #
# --------------------------------------------------------------------------- #
def fasttext_forward(idx, table, w1, b1, gamma, beta, w2, b2, *, tile_b=8):
    """Forward pass matching the PyTorch FastText module.

    idx    : (B, S) int32 token indices
    table  : (V, D) f32 embedding table (opt.lookup_table)
    w1, b1 : nn.Linear(D, H) params in PyTorch layout: (H, D), (H,)
    gamma, beta : nn.BatchNorm1d(H) affine params: (H,), (H,)
    w2, b2 : nn.Linear(H, C) params: (C, H), (C,)
    """
    B, S = idx.shape
    V, D = table.shape
    H = w1.shape[0]
    C = w2.shape[0]

    D_pad = _round_up(D, 128)
    H_pad = _round_up(H, 128)
    C_pad = _round_up(C, 128)          # lane-dense output slab; sliced at the end
    B_pad = _round_up(B, tile_b)
    n_tiles = B_pad // tile_b

    f32 = jnp.float32

    # ---- weight preparation (would be done once in a real deployment) ----
    table_p = jnp.pad(table.astype(f32), ((0, 0), (0, D_pad - D)))
    # Linear1: x @ w1.T + b1 ; fold the 1/S of the sequence mean into w1.
    w1_p = (jnp.pad(w1.astype(f32).T, ((0, D_pad - D), (0, H_pad - H)))
            * (1.0 / S)).astype(jnp.bfloat16)
    b1_p = jnp.pad(b1.astype(f32), (0, H_pad - H)).reshape(1, H_pad)
    # Fold BN affine into the final Linear:
    #   (hn*gamma + beta) @ w2.T + b2 == hn @ (gamma[:,None]*w2.T) + (beta@w2.T + b2)
    gamma_p = jnp.pad(gamma.astype(f32), (0, H_pad - H))
    beta_p = jnp.pad(beta.astype(f32), (0, H_pad - H))
    w2_t = jnp.pad(w2.astype(f32).T, ((0, H_pad - H), (0, C_pad - C)))
    b2_p = jnp.pad(b2.astype(f32), (0, C_pad - C))
    w2_f = (gamma_p[:, None] * w2_t).astype(jnp.bfloat16)
    b2_f = (beta_p @ w2_t + b2_p).reshape(1, C_pad)

    idx_p = jnp.pad(idx.astype(jnp.int32), ((0, B_pad - B), (0, 0)))

    # ---- K1: gather + pool + Linear1 + full-batch BN stats (sequential tiles) ----
    k1 = functools.partial(_embed_linear_stats_kernel,
                           tile_b=tile_b, seq_len=S, n_valid=B)
    h, mu, inv_std = pl.pallas_call(
        k1,
        out_shape=(jax.ShapeDtypeStruct((B_pad, H_pad), f32),
                   jax.ShapeDtypeStruct((1, H_pad), f32),
                   jax.ShapeDtypeStruct((1, H_pad), f32)),
        grid_spec=pltpu.PrefetchScalarGridSpec(
            num_scalar_prefetch=1,                     # idx -> SMEM
            grid=(n_tiles,),
            in_specs=[
                pl.BlockSpec(memory_space=pl.ANY),                    # table stays in HBM
                pl.BlockSpec((D_pad, H_pad), lambda i, _: (0, 0)),    # w1 (bf16)
                pl.BlockSpec((1, H_pad), lambda i, _: (0, 0)),        # b1 (f32)
            ],
            out_specs=(
                pl.BlockSpec((tile_b, H_pad), lambda i, _: (i, 0)),   # h tile
                pl.BlockSpec((1, H_pad), lambda i, _: (0, 0)),        # mu (accumulator)
                pl.BlockSpec((1, H_pad), lambda i, _: (0, 0)),        # inv_std (accumulator)
            ),
            scratch_shapes=[
                pltpu.VMEM((tile_b, S, D_pad), f32),                  # gathered rows
                pltpu.SemaphoreType.DMA((tile_b, S)),                 # one sem per row DMA
            ],
        ),
        compiler_params=pltpu.CompilerParams(
            dimension_semantics=("arbitrary",)),       # stats are a cross-tile reduction
        cost_estimate=pl.CostEstimate(
            flops=2 * B_pad * D_pad * H_pad + B_pad * S * D_pad + 4 * B_pad * H_pad,
            transcendentals=0,
            bytes_accessed=(B_pad * S * D_pad * 4 + D_pad * H_pad * 2
                            + B_pad * H_pad * 4 + 2 * H_pad * 4)),
    )(idx_p, table_p, w1_p, b1_p)

    # ---- K2: normalize + Linear2 (parallel over batch tiles) ----
    out_pad = pl.pallas_call(
        _bn_fc_kernel,
        out_shape=jax.ShapeDtypeStruct((B_pad, C_pad), f32),
        grid=(n_tiles,),
        in_specs=[
            pl.BlockSpec((tile_b, H_pad), lambda i: (i, 0)),          # h
            pl.BlockSpec((1, H_pad), lambda i: (0, 0)),               # mu
            pl.BlockSpec((1, H_pad), lambda i: (0, 0)),               # inv_std
            pl.BlockSpec((H_pad, C_pad), lambda i: (0, 0)),           # w2 folded (bf16)
            pl.BlockSpec((1, C_pad), lambda i: (0, 0)),               # b2 folded (f32)
        ],
        out_specs=pl.BlockSpec((tile_b, C_pad), lambda i: (i, 0)),
        compiler_params=pltpu.CompilerParams(
            dimension_semantics=("parallel",)),
        cost_estimate=pl.CostEstimate(
            flops=2 * B_pad * H_pad * C_pad,
            transcendentals=0,
            bytes_accessed=(B_pad * H_pad * 4 + H_pad * C_pad * 2
                            + B_pad * C_pad * 4)),
    )(h, mu, inv_std, w2_f, b2_f)

    # TODO(synk): running_mean / running_var buffer updates of train-mode
    # BatchNorm1d (a module side effect) are not replicated here.
    return out_pad[:B, :C]


if __name__ == "__main__":
    # Shapes implied by the module: embed_dim D=50 (Linear expects 50), hidden H=200,
    # classes C=2; small vocab / batch / seq for the demo.
    V, D, S, B, H, C = 100, 50, 8, 2, 200, 2

    key = jax.random.PRNGKey(0)
    ks = jax.random.split(key, 6)
    table = jax.random.normal(ks[0], (V, D), jnp.float32) * 0.1   # opt.lookup_table
    w1 = jax.random.normal(ks[1], (H, D), jnp.float32) * 0.1      # nn.Linear(50,200).weight
    b1 = jax.random.normal(ks[2], (H,), jnp.float32) * 0.1
    gamma = jnp.ones((H,), jnp.float32)                            # BN weight init
    beta = jnp.zeros((H,), jnp.float32)                            # BN bias init
    w2 = jax.random.normal(ks[3], (C, H), jnp.float32) * 0.1      # nn.Linear(200,2).weight
    b2 = jax.random.normal(ks[4], (C,), jnp.float32) * 0.1
    idx = jax.random.randint(ks[5], (B, S), 0, V, jnp.int32)      # text_indices

    out = jax.jit(fasttext_forward)(idx, table, w1, b1, gamma, beta, w2, b2)
    jax.block_until_ready(out)
    assert out.shape == (B, C)
    assert bool(jnp.all(jnp.isfinite(out)))

    # Pure-JAX reference of the PyTorch forward (f32) — loose tolerance for the
    # bf16 matmul path inside the kernels.
    emb = table[idx]                                   # (B, S, D)
    pooled = jnp.mean(emb, axis=1)                     # (B, D)
    h_ref = pooled @ w1.T + b1                         # (B, H)
    mu_r = jnp.mean(h_ref, axis=0, keepdims=True)
    var_r = jnp.mean((h_ref - mu_r) ** 2, axis=0, keepdims=True)
    hn_r = (h_ref - mu_r) / jnp.sqrt(var_r + BN_EPS) * gamma + beta
    ref = hn_r @ w2.T + b2                             # (B, C)
    assert jnp.allclose(out, ref, atol=0.15, rtol=0.1), (out, ref)

    print("KERNEL_OK")
</pallas_src>

<mosaic_0001>
module attributes {stable_mosaic.version = 11 : i64} {
  func.func @_bn_fc_kernel(%arg0: i32, %arg1: memref<8x256xf32, #tpu.memory_space<vmem>>, %arg2: memref<1x256xf32, #tpu.memory_space<vmem>>, %arg3: memref<1x256xf32, #tpu.memory_space<vmem>>, %arg4: memref<256x128xbf16, #tpu.memory_space<vmem>>, %arg5: memref<1x128xf32, #tpu.memory_space<vmem>>, %arg6: memref<8x128xf32, #tpu.memory_space<vmem>>) attributes {dimension_semantics = [#tpu.dimension_semantics<parallel>], iteration_bounds = array<i64: 1>, scalar_prefetch = 0 : i64, scratch_operands = 0 : i64, tpu.core_type = #tpu.core_type<tc>, window_params = [{transform_indices = @transform_0, window_bounds = array<i64: 8, 256>}, {pipeline_mode = #tpu.pipeline_mode<synchronous>, transform_indices = @transform_1, window_bounds = array<i64: 1, 256>}, {pipeline_mode = #tpu.pipeline_mode<synchronous>, transform_indices = @transform_2, window_bounds = array<i64: 1, 256>}, {pipeline_mode = #tpu.pipeline_mode<synchronous>, transform_indices = @transform_3, window_bounds = array<i64: 256, 128>}, {pipeline_mode = #tpu.pipeline_mode<synchronous>, transform_indices = @transform_4, window_bounds = array<i64: 1, 128>}, {transform_indices = @transform_5, window_bounds = array<i64: 8, 128>}]} {
    %c0 = arith.constant 0 : index
    %c0_0 = arith.constant 0 : index
    %0 = vector.load %arg1[%c0, %c0_0] : memref<8x256xf32, #tpu.memory_space<vmem>>, vector<8x256xf32>
    %c0_1 = arith.constant 0 : index
    %c0_2 = arith.constant 0 : index
    %1 = vector.load %arg2[%c0_1, %c0_2] : memref<1x256xf32, #tpu.memory_space<vmem>>, vector<1x256xf32>
    %2 = vector.broadcast %1 : vector<1x256xf32> to vector<8x256xf32>
    %3 = arith.subf %0, %2 : vector<8x256xf32>
    %c0_3 = arith.constant 0 : index
    %c0_4 = arith.constant 0 : index
    %4 = vector.load %arg3[%c0_3, %c0_4] : memref<1x256xf32, #tpu.memory_space<vmem>>, vector<1x256xf32>
    %5 = vector.broadcast %4 : vector<1x256xf32> to vector<8x256xf32>
    %6 = arith.mulf %3, %5 : vector<8x256xf32>
    %7 = arith.truncf %6 : vector<8x256xf32> to vector<8x256xbf16>
    %c0_5 = arith.constant 0 : index
    %c0_6 = arith.constant 0 : index
    %8 = vector.load %arg4[%c0_5, %c0_6] : memref<256x128xbf16, #tpu.memory_space<vmem>>, vector<256x128xbf16>
    %cst = arith.constant dense<0.000000e+00> : vector<8x128xf32>
    %9 = tpu.matmul %7, %8, %cst {dimension_numbers = #tpu.dot_dimension_numbers<[1], [0], [0], [1], [0, 0, 1, 1], [], []>} : vector<8x256xbf16>, vector<256x128xbf16>, vector<8x128xf32> -> vector<8x128xf32>
    %c0_7 = arith.constant 0 : index
    %c0_8 = arith.constant 0 : index
    %10 = vector.load %arg5[%c0_7, %c0_8] : memref<1x128xf32, #tpu.memory_space<vmem>>, vector<1x128xf32>
    %11 = vector.broadcast %10 : vector<1x128xf32> to vector<8x128xf32>
    %12 = arith.addf %9, %11 : vector<8x128xf32>
    %c0_9 = arith.constant 0 : index
    %c0_10 = arith.constant 0 : index
    %13 = vector.load %arg6[%c0_9, %c0_10] : memref<8x128xf32, #tpu.memory_space<vmem>>, vector<8x128xf32>
    tpu.vector_store %arg6[%c0_9, %c0_10], %12 {strides = array<i32>} : memref<8x128xf32, #tpu.memory_space<vmem>>, vector<8x128xf32>,
    return
  }
  func.func @transform_0(%arg0: i32) -> (i32, i32) {
    %c0_i32 = arith.constant 0 : i32
    %c0_i32_0 = arith.constant 0 : i32
    return %arg0, %c0_i32 : i32, i32
  }
  func.func @transform_1(%arg0: i32) -> (i32, i32) {
    %c0_i32 = arith.constant 0 : i32
    %c0_i32_0 = arith.constant 0 : i32
    %c0_i32_1 = arith.constant 0 : i32
    return %c0_i32, %c0_i32_0 : i32, i32
  }
  func.func @transform_2(%arg0: i32) -> (i32, i32) {
    %c0_i32 = arith.constant 0 : i32
    %c0_i32_0 = arith.constant 0 : i32
    %c0_i32_1 = arith.constant 0 : i32
    return %c0_i32, %c0_i32_0 : i32, i32
  }
  func.func @transform_3(%arg0: i32) -> (i32, i32) {
    %c0_i32 = arith.constant 0 : i32
    %c0_i32_0 = arith.constant 0 : i32
    %c0_i32_1 = arith.constant 0 : i32
    return %c0_i32, %c0_i32_0 : i32, i32
  }
  func.func @transform_4(%arg0: i32) -> (i32, i32) {
    %c0_i32 = arith.constant 0 : i32
    %c0_i32_0 = arith.constant 0 : i32
    %c0_i32_1 = arith.constant 0 : i32
    return %c0_i32, %c0_i32_0 : i32, i32
  }
  func.func @transform_5(%arg0: i32) -> (i32, i32) {
    %c0_i32 = arith.constant 0 : i32
    %c0_i32_0 = arith.constant 0 : i32
    return %arg0, %c0_i32 : i32, i32
  }
}

module attributes {stable_mosaic.version = 11 : i64} {
  func.func @_embed_linear_stats_kernel(%arg0: i32, %arg1: memref<8x8xi32, #tpu.memory_space<smem>>, %arg2: memref<100x128xf32, #tpu.memory_space<any>>, %arg3: memref<128x256xbf16, #tpu.memory_space<vmem>>, %arg4: memref<1x256xf32, #tpu.memory_space<vmem>>, %arg5: memref<8x256xf32, #tpu.memory_space<vmem>>, %arg6: memref<1x256xf32, #tpu.memory_space<vmem>>, %arg7: memref<1x256xf32, #tpu.memory_space<vmem>>, %arg8: memref<8x8x128xf32, #tpu.memory_space<vmem>>, %arg9: memref<8x8x!tpu.dma_semaphore, #tpu.memory_space<semaphore_mem>>) attributes {dimension_semantics = [#tpu.dimension_semantics<arbitrary>], iteration_bounds = array<i64: 1>, scalar_prefetch = 1 : i64, scratch_operands = 2 : i64, tpu.core_type = #tpu.core_type<tc>, window_params = [{}, {pipeline_mode = #tpu.pipeline_mode<synchronous>, transform_indices = @transform_1, window_bounds = array<i64: 128, 256>}, {pipeline_mode = #tpu.pipeline_mode<synchronous>, transform_indices = @transform_2, window_bounds = array<i64: 1, 256>}, {transform_indices = @transform_3, window_bounds = array<i64: 8, 256>}, {pipeline_mode = #tpu.pipeline_mode<synchronous>, transform_indices = @transform_4, window_bounds = array<i64: 1, 256>}, {pipeline_mode = #tpu.pipeline_mode<synchronous>, transform_indices = @transform_5, window_bounds = array<i64: 1, 256>}]} {
    %c0_i32 = arith.constant 0 : i32
    %0 = arith.cmpi eq, %arg0, %c0_i32 : i32
    %1 = arith.extui %0 : i1 to i32
    %c0_i32_0 = arith.constant 0 : i32
    %2 = arith.cmpi ne, %1, %c0_i32_0 : i32
    scf.if %2 {
      %cst_857 = arith.constant 0.000000e+00 : f32
      %820 = vector.broadcast %cst_857 : f32 to vector<1x256xf32>
      %c0_858 = arith.constant 0 : index
      %c0_859 = arith.constant 0 : index
      %821 = vector.load %arg6[%c0_858, %c0_859] : memref<1x256xf32, #tpu.memory_space<vmem>>, vector<1x256xf32>
      tpu.vector_store %arg6[%c0_858, %c0_859], %820 {strides = array<i32>} : memref<1x256xf32, #tpu.memory_space<vmem>>, vector<1x256xf32>,
      %cst_860 = arith.constant 0.000000e+00 : f32
      %822 = vector.broadcast %cst_860 : f32 to vector<1x256xf32>
      %c0_861 = arith.constant 0 : index
      %c0_862 = arith.constant 0 : index
      %823 = vector.load %arg7[%c0_861, %c0_862] : memref<1x256xf32, #tpu.memory_space<vmem>>, vector<1x256xf32>
      tpu.vector_store %arg7[%c0_861, %c0_862], %822 {strides = array<i32>} : memref<1x256xf32, #tpu.memory_space<vmem>>, vector<1x256xf32>,
    } else {
    }
    %c8_i32 = arith.constant 8 : i32
    %3 = arith.muli %arg0, %c8_i32 : i32
    %c0_i32_1 = arith.constant 0 : i32
    %4 = arith.addi %3, %c0_i32_1 : i32
    %5 = arith.index_cast %4 : i32 to index
    %c0 = arith.constant 0 : index
    %6 = memref.load %arg1[%5, %c0] : memref<8x8xi32, #tpu.memory_space<smem>>
    %c0_i32_2 = arith.constant 0 : i32
    %c0_i32_3 = arith.constant 0 : i32
    %c0_i32_4 = arith.constant 0 : i32
    %c0_i32_5 = arith.constant 0 : i32
    %7 = tpu.memref_slice %arg2[%6, %c0_i32_5] : memref<100x128xf32, #tpu.memory_space<any>> -> memref<1x128xf32, #tpu.memory_space<any>>
    %c0_i32_6 = arith.constant 0 : i32
    %c0_i32_7 = arith.constant 0 : i32
    %8 = tpu.memref_slice %arg8[%c0_i32_2, %c0_i32_6, %c0_i32_7] : memref<8x8x128xf32, #tpu.memory_space<vmem>> -> memref<1x1x128xf32, #tpu.memory_space<vmem>>
    %9 = tpu.memref_squeeze %8 : memref<1x1x128xf32, #tpu.memory_space<vmem>> -> memref<1x128xf32, #tpu.memory_space<vmem>>
    %10 = tpu.memref_slice %arg9[%c0_i32_3, %c0_i32_4] : memref<8x8x!tpu.dma_semaphore, #tpu.memory_space<semaphore_mem>> -> memref<1x1x!tpu.dma_semaphore, #tpu.memory_space<semaphore_mem>>
    %11 = tpu.memref_squeeze %10 : memref<1x1x!tpu.dma_semaphore, #tpu.memory_space<semaphore_mem>> -> memref<!tpu.dma_semaphore, #tpu.memory_space<semaphore_mem>>
    tpu.enqueue_dma source(%7 : memref<1x128xf32, #tpu.memory_space<any>>) target(%9 : memref<1x128xf32, #tpu.memory_space<vmem>>) target_semaphore(%11 : memref<!tpu.dma_semaphore, #tpu.memory_space<semaphore_mem>>)
    %12 = arith.index_cast %4 : i32 to index
    %c1 = arith.constant 1 : index
    %13 = memref.load %arg1[%12, %c1] : memref<8x8xi32, #tpu.memory_space<smem>>
    %c0_i32_8 = arith.constant 0 : i32
    %c0_i32_9 = arith.constant 0 : i32
    %c1_i32 = arith.constant 1 : i32
    %c0_i32_10 = arith.constant 0 : i32
    %14 = tpu.memref_slice %arg2[%13, %c0_i32_10] : memref<100x128xf32, #tpu.memory_space<any>> -> memref<1x128xf32, #tpu.memory_space<any>>
    %c1_i32_11 = arith.constant 1 : i32
    %c0_i32_12 = arith.constant 0 : i32
    %15 = tpu.memref_slice %arg8[%c0_i32_8, %c1_i32_11, %c0_i32_12] : memref<8x8x128xf32, #tpu.memory_space<vmem>> -> memref<1x1x128xf32, #tpu.memory_space<vmem>>
    %16 = tpu.memref_squeeze %15 : memref<1x1x128xf32, #tpu.memory_space<vmem>> -> memref<1x128xf32, #tpu.memory_space<vmem>>
    %17 = tpu.memref_slice %arg9[%c0_i32_9, %c1_i32] : memref<8x8x!tpu.dma_semaphore, #tpu.memory_space<semaphore_mem>> -> memref<1x1x!tpu.dma_semaphore, #tpu.memory_space<semaphore_mem>>
    %18 = tpu.memref_squeeze %17 : memref<1x1x!tpu.dma_semaphore, #tpu.memory_space<semaphore_mem>> -> memref<!tpu.dma_semaphore, #tpu.memory_space<semaphore_mem>>
    tpu.enqueue_dma source(%14 : memref<1x128xf32, #tpu.memory_space<any>>) target(%16 : memref<1x128xf32, #tpu.memory_space<vmem>>) target_semaphore(%18 : memref<!tpu.dma_semaphore, #tpu.memory_space<semaphore_mem>>)
    %19 = arith.index_cast %4 : i32 to index
    %c2 = arith.constant 2 : index
    %20 = memref.load %arg1[%19, %c2] : memref<8x8xi32, #tpu.memory_space<smem>>
    %c0_i32_13 = arith.constant 0 : i32
    %c0_i32_14 = arith.constant 0 : i32
    %c2_i32 = arith.constant 2 : i32
    %c0_i32_15 = arith.constant 0 : i32
    %21 = tpu.memref_slice %arg2[%20, %c0_i32_15] : memref<100x128xf32, #tpu.memory_space<any>> -> memref<1x128xf32, #tpu.memory_space<any>>
    %c2_i32_16 = arith.constant 2 : i32
    %c0_i32_17 = arith.constant 0 : i32
    %22 = tpu.memref_slice %arg8[%c0_i32_13, %c2_i32_16, %c0_i32_17] : memref<8x8x128xf32, #tpu.memory_space<vmem>> -> memref<1x1x128xf32, #tpu.memory_space<vmem>>
    %23 = tpu.memref_squeeze %22 : memref<1x1x128xf32, #tpu.memory_space<vmem>> -> memref<1x128xf32, #tpu.memory_space<vmem>>
    %24 = tpu.memref_slice %arg9[%c0_i32_14, %c2_i32] : memref<8x8x!tpu.dma_semaphore, #tpu.memory_space<semaphore_mem>> -> memref<1x1x!tpu.dma_semaphore, #tpu.memory_space<semaphore_mem>>
    %25 = tpu.memref_squeeze %24 : memref<1x1x!tpu.dma_semaphore, #tpu.memory_space<semaphore_mem>> -> memref<!tpu.dma_semaphore, #tpu.memory_space<semaphore_mem>>
    tpu.enqueue_dma source(%21 : memref<1x128xf32, #tpu.memory_space<any>>) target(%23 : memref<1x128xf32, #tpu.memory_space<vmem>>) target_semaphore(%25 : memref<!tpu.dma_semaphore, #tpu.memory_space<semaphore_mem>>)
    %26 = arith.index_cast %4 : i32 to index
    %c3 = arith.constant 3 : index
    %27 = memref.load %arg1[%26, %c3] : memref<8x8xi32, #tpu.memory_space<smem>>
    %c0_i32_18 = arith.constant 0 : i32
    %c0_i32_19 = arith.constant 0 : i32
    %c3_i32 = arith.constant 3 : i32
    %c0_i32_20 = arith.constant 0 : i32
    %28 = tpu.memref_slice %arg2[%27, %c0_i32_20] : memref<100x128xf32, #tpu.memory_space<any>> -> memref<1x128xf32, #tpu.memory_space<any>>
    %c3_i32_21 = arith.constant 3 : i32
    %c0_i32_22 = arith.constant 0 : i32
    %29 = tpu.memref_slice %arg8[%c0_i32_18, %c3_i32_21, %c0_i32_22] : memref<8x8x128xf32, #tpu.memory_space<vmem>> -> memref<1x1x128xf32, #tpu.memory_space<vmem>>
    %30 = tpu.memref_squeeze %29 : memref<1x1x128xf32, #tpu.memory_space<vmem>> -> memref<1x128xf32, #tpu.memory_space<vmem>>
    %31 = tpu.memref_slice %arg9[%c0_i32_19, %c3_i32] : memref<8x8x!tpu.dma_semaphore, #tpu.memory_space<semaphore_mem>> -> memref<1x1x!tpu.dma_semaphore, #tpu.memory_space<semaphore_mem>>
    %32 = tpu.memref_squeeze %31 : memref<1x1x!tpu.dma_semaphore, #tpu.memory_space<semaphore_mem>> -> memref<!tpu.dma_semaphore, #tpu.memory_space<semaphore_mem>>
    tpu.enqueue_dma source(%28 : memref<1x128xf32, #tpu.memory_space<any>>) target(%30 : memref<1x128xf32, #tpu.memory_space<vmem>>) target_semaphore(%32 : memref<!tpu.dma_semaphore, #tpu.memory_space<semaphore_mem>>)
    %33 = arith.index_cast %4 : i32 to index
    %c4 = arith.constant 4 : index
    %34 = memref.load %arg1[%33, %c4] : memref<8x8xi32, #tpu.memory_space<smem>>
    %c0_i32_23 = arith.constant 0 : i32
    %c0_i32_24 = arith.constant 0 : i32
    %c4_i32 = arith.constant 4 : i32
    %c0_i32_25 = arith.constant 0 : i32
    %35 = tpu.memref_slice %arg2[%34, %c0_i32_25] : memref<100x128xf32, #tpu.memory_space<any>> -> memref<1x128xf32, #tpu.memory_space<any>>
    %c4_i32_26 = arith.constant 4 : i32
    %c0_i32_27 = arith.constant 0 : i32
    %36 = tpu.memref_slice %arg8[%c0_i32_23, %c4_i32_26, %c0_i32_27] : memref<8x8x128xf32, #tpu.memory_space<vmem>> -> memref<1x1x128xf32, #tpu.memory_space<vmem>>
    %37 = tpu.memref_squeeze %36 : memref<1x1x128xf32, #tpu.memory_space<vmem>> -> memref<1x128xf32, #tpu.memory_space<vmem>>
    %38 = tpu.memref_slice %arg9[%c0_i32_24, %c4_i32] : memref<8x8x!tpu.dma_semaphore, #tpu.memory_space<semaphore_mem>> -> memref<1x1x!tpu.dma_semaphore, #tpu.memory_space<semaphore_mem>>
    %39 = tpu.memref_squeeze %38 : memref<1x1x!tpu.dma_semaphore, #tpu.memory_space<semaphore_mem>> -> memref<!tpu.dma_semaphore, #tpu.memory_space<semaphore_mem>>
    tpu.enqueue_dma source(%35 : memref<1x128xf32, #tpu.memory_space<any>>) target(%37 : memref<1x128xf32, #tpu.memory_space<vmem>>) target_semaphore(%39 : memref<!tpu.dma_semaphore, #tpu.memory_space<semaphore_mem>>)
    %40 = arith.index_cast %4 : i32 to index
    %c5 = arith.constant 5 : index
    %41 = memref.load %arg1[%40, %c5] : memref<8x8xi32, #tpu.memory_space<smem>>
    %c0_i32_28 = arith.constant 0 : i32
    %c0_i32_29 = arith.constant 0 : i32
    %c5_i32 = arith.constant 5 : i32
    %c0_i32_30 = arith.constant 0 : i32
    %42 = tpu.memref_slice %arg2[%41, %c0_i32_30] : memref<100x128xf32, #tpu.memory_space<any>> -> memref<1x128xf32, #tpu.memory_space<any>>
    %c5_i32_31 = arith.constant 5 : i32
    %c0_i32_32 = arith.constant 0 : i32
    %43 = tpu.memref_slice %arg8[%c0_i32_28, %c5_i32_31, %c0_i32_32] : memref<8x8x128xf32, #tpu.memory_space<vmem>> -> memref<1x1x128xf32, #tpu.memory_space<vmem>>
    %44 = tpu.memref_squeeze %43 : memref<1x1x128xf32, #tpu.memory_space<vmem>> -> memref<1x128xf32, #tpu.memory_space<vmem>>
    %45 = tpu.memref_slice %arg9[%c0_i32_29, %c5_i32] : memref<8x8x!tpu.dma_semaphore, #tpu.memory_space<semaphore_mem>> -> memref<1x1x!tpu.dma_semaphore, #tpu.memory_space<semaphore_mem>>
    %46 = tpu.memref_squeeze %45 : memref<1x1x!tpu.dma_semaphore, #tpu.memory_space<semaphore_mem>> -> memref<!tpu.dma_semaphore, #tpu.memory_space<semaphore_mem>>
    tpu.enqueue_dma source(%42 : memref<1x128xf32, #tpu.memory_space<any>>) target(%44 : memref<1x128xf32, #tpu.memory_space<vmem>>) target_semaphore(%46 : memref<!tpu.dma_semaphore, #tpu.memory_space<semaphore_mem>>)
    %47 = arith.index_cast %4 : i32 to index
    %c6 = arith.constant 6 : index
    %48 = memref.load %arg1[%47, %c6] : memref<8x8xi32, #tpu.memory_space<smem>>
    %c0_i32_33 = arith.constant 0 : i32
    %c0_i32_34 = arith.constant 0 : i32
    %c6_i32 = arith.constant 6 : i32
    %c0_i32_35 = arith.constant 0 : i32
    %49 = tpu.memref_slice %arg2[%48, %c0_i32_35] : memref<100x128xf32, #tpu.memory_space<any>> -> memref<1x128xf32, #tpu.memory_space<any>>
    %c6_i32_36 = arith.constant 6 : i32
    %c0_i32_37 = arith.constant 0 : i32
    %50 = tpu.memref_slice %arg8[%c0_i32_33, %c6_i32_36, %c0_i32_37] : memref<8x8x128xf32, #tpu.memory_space<vmem>> -> memref<1x1x128xf32, #tpu.memory_space<vmem>>
    %51 = tpu.memref_squeeze %50 : memref<1x1x128xf32, #tpu.memory_space<vmem>> -> memref<1x128xf32, #tpu.memory_space<vmem>>
    %52 = tpu.memref_slice %arg9[%c0_i32_34, %c6_i32] : memref<8x8x!tpu.dma_semaphore, #tpu.memory_space<semaphore_mem>> -> memref<1x1x!tpu.dma_semaphore, #tpu.memory_space<semaphore_mem>>
    %53 = tpu.memref_squeeze %52 : memref<1x1x!tpu.dma_semaphore, #tpu.memory_space<semaphore_mem>> -> memref<!tpu.dma_semaphore, #tpu.memory_space<semaphore_mem>>
    tpu.enqueue_dma source(%49 : memref<1x128xf32, #tpu.memory_space<any>>) target(%51 : memref<1x128xf32, #tpu.memory_space<vmem>>) target_semaphore(%53 : memref<!tpu.dma_semaphore, #tpu.memory_space<semaphore_mem>>)
    %54 = arith.index_cast %4 : i32 to index
    %c7 = arith.constant 7 : index
    %55 = memref.load %arg1[%54, %c7] : memref<8x8xi32, #tpu.memory_space<smem>>
    %c0_i32_38 = arith.constant 0 : i32
    %c0_i32_39 = arith.constant 0 : i32
    %c7_i32 = arith.constant 7 : i32
    %c0_i32_40 = arith.constant 0 : i32
    %56 = tpu.memref_slice %arg2[%55, %c0_i32_40] : memref<100x128xf32, #tpu.memory_space<any>> -> memref<1x128xf32, #tpu.memory_space<any>>
    %c7_i32_41 = arith.constant 7 : i32
    %c0_i32_42 = arith.constant 0 : i32
    %57 = tpu.memref_slice %arg8[%c0_i32_38, %c7_i32_41, %c0_i32_42] : memref<8x8x128xf32, #tpu.memory_space<vmem>> -> memref<1x1x128xf32, #tpu.memory_space<vmem>>
    %58 = tpu.memref_squeeze %57 : memref<1x1x128xf32, #tpu.memory_space<vmem>> -> memref<1x128xf32, #tpu.memory_space<vmem>>
    %59 = tpu.memref_slice %arg9[%c0_i32_39, %c7_i32] : memref<8x8x!tpu.dma_semaphore, #tpu.memory_space<semaphore_mem>> -> memref<1x1x!tpu.dma_semaphore, #tpu.memory_space<semaphore_mem>>
    %60 = tpu.memref_squeeze %59 : memref<1x1x!tpu.dma_semaphore, #tpu.memory_space<semaphore_mem>> -> memref<!tpu.dma_semaphore, #tpu.memory_space<semaphore_mem>>
    tpu.enqueue_dma source(%56 : memref<1x128xf32, #tpu.memory_space<any>>) target(%58 : memref<1x128xf32, #tpu.memory_space<vmem>>) target_semaphore(%60 : memref<!tpu.dma_semaphore, #tpu.memory_space<semaphore_mem>>)
    %c8_i32_43 = arith.constant 8 : i32
    %61 = arith.muli %arg0, %c8_i32_43 : i32
    %c1_i32_44 = arith.constant 1 : i32
    %62 = arith.addi %61, %c1_i32_44 : i32
    %63 = arith.index_cast %62 : i32 to index
    %c0_45 = arith.constant 0 : index
    %64 = memref.load %arg1[%63, %c0_45] : memref<8x8xi32, #tpu.memory_space<smem>>
    %c1_i32_46 = arith.constant 1 : i32
    %c1_i32_47 = arith.constant 1 : i32
    %c0_i32_48 = arith.constant 0 : i32
    %c0_i32_49 = arith.constant 0 : i32
    %65 = tpu.memref_slice %arg2[%64, %c0_i32_49] : memref<100x128xf32, #tpu.memory_space<any>> -> memref<1x128xf32, #tpu.memory_space<any>>
    %c0_i32_50 = arith.constant 0 : i32
    %c0_i32_51 = arith.constant 0 : i32
    %66 = tpu.memref_slice %arg8[%c1_i32_46, %c0_i32_50, %c0_i32_51] : memref<8x8x128xf32, #tpu.memory_space<vmem>> -> memref<1x1x128xf32, #tpu.memory_space<vmem>>
    %67 = tpu.memref_squeeze %66 : memref<1x1x128xf32, #tpu.memory_space<vmem>> -> memref<1x128xf32, #tpu.memory_space<vmem>>
    %68 = tpu.memref_slice %arg9[%c1_i32_47, %c0_i32_48] : memref<8x8x!tpu.dma_semaphore, #tpu.memory_space<semaphore_mem>> -> memref<1x1x!tpu.dma_semaphore, #tpu.memory_space<semaphore_mem>>
    %69 = tpu.memref_squeeze %68 : memref<1x1x!tpu.dma_semaphore, #tpu.memory_space<semaphore_mem>> -> memref<!tpu.dma_semaphore, #tpu.memory_space<semaphore_mem>>
    tpu.enqueue_dma source(%65 : memref<1x128xf32, #tpu.memory_space<any>>) target(%67 : memref<1x128xf32, #tpu.memory_space<vmem>>) target_semaphore(%69 : memref<!tpu.dma_semaphore, #tpu.memory_space<semaphore_mem>>)
    %70 = arith.index_cast %62 : i32 to index
    %c1_52 = arith.constant 1 : index
    %71 = memref.load %arg1[%70, %c1_52] : memref<8x8xi32, #tpu.memory_space<smem>>
    %c1_i32_53 = arith.constant 1 : i32
    %c1_i32_54 = arith.constant 1 : i32
    %c1_i32_55 = arith.constant 1 : i32
    %c0_i32_56 = arith.constant 0 : i32
    %72 = tpu.memref_slice %arg2[%71, %c0_i32_56] : memref<100x128xf32, #tpu.memory_space<any>> -> memref<1x128xf32, #tpu.memory_space<any>>
    %c1_i32_57 = arith.constant 1 : i32
    %c0_i32_58 = arith.constant 0 : i32
    %73 = tpu.memref_slice %arg8[%c1_i32_53, %c1_i32_57, %c0_i32_58] : memref<8x8x128xf32, #tpu.memory_space<vmem>> -> memref<1x1x128xf32, #tpu.memory_space<vmem>>
    %74 = tpu.memref_squeeze %73 : memref<1x1x128xf32, #tpu.memory_space<vmem>> -> memref<1x128xf32, #tpu.memory_space<vmem>>
    %75 = tpu.memref_slice %arg9[%c1_i32_54, %c1_i32_55] : memref<8x8x!tpu.dma_semaphore, #tpu.memory_space<semaphore_mem>> -> memref<1x1x!tpu.dma_semaphore, #tpu.memory_space<semaphore_mem>>
    %76 = tpu.memref_squeeze %75 : memref<1x1x!tpu.dma_semaphore, #tpu.memory_space<semaphore_mem>> -> memref<!tpu.dma_semaphore, #tpu.memory_space<semaphore_mem>>
    tpu.enqueue_dma source(%72 : memref<1x128xf32, #tpu.memory_space<any>>) target(%74 : memref<1x128xf32, #tpu.memory_space<vmem>>) target_semaphore(%76 : memref<!tpu.dma_semaphore, #tpu.memory_space<semaphore_mem>>)
    %77 = arith.index_cast %62 : i32 to index
    %c2_59 = arith.constant 2 : index
    %78 = memref.load %arg1[%77, %c2_59] : memref<8x8xi32, #tpu.memory_space<smem>>
    %c1_i32_60 = arith.constant 1 : i32
    %c1_i32_61 = arith.constant 1 : i32
    %c2_i32_62 = arith.constant 2 : i32
    %c0_i32_63 = arith.constant 0 : i32
    %79 = tpu.memref_slice %arg2[%78, %c0_i32_63] : memref<100x128xf32, #tpu.memory_space<any>> -> memref<1x128xf32, #tpu.memory_space<any>>
    %c2_i32_64 = arith.constant 2 : i32
    %c0_i32_65 = arith.constant 0 : i32
    %80 = tpu.memref_slice %arg8[%c1_i32_60, %c2_i32_64, %c0_i32_65] : memref<8x8x128xf32, #tpu.memory_space<vmem>> -> memref<1x1x128xf32, #tpu.memory_space<vmem>>
    %81 = tpu.memref_squeeze %80 : memref<1x1x128xf32, #tpu.memory_space<vmem>> -> memref<1x128xf32, #tpu.memory_space<vmem>>
    %82 = tpu.memref_slice %arg9[%c1_i32_61, %c2_i32_62] : memref<8x8x!tpu.dma_semaphore, #tpu.memory_space<semaphore_mem>> -> memref<1x1x!tpu.dma_semaphore, #tpu.memory_space<semaphore_mem>>
    %83 = tpu.memref_squeeze %82 : memref<1x1x!tpu.dma_semaphore, #tpu.memory_space<semaphore_mem>> -> memref<!tpu.dma_semaphore, #tpu.memory_space<semaphore_mem>>
    tpu.enqueue_dma source(%79 : memref<1x128xf32, #tpu.memory_space<any>>) target(%81 : memref<1x128xf32, #tpu.memory_space<vmem>>) target_semaphore(%83 : memref<!tpu.dma_semaphore, #tpu.memory_space<semaphore_mem>>)
    %84 = arith.index_cast %62 : i32 to index
    %c3_66 = arith.constant 3 : index
    %85 = memref.load %arg1[%84, %c3_66] : memref<8x8xi32, #tpu.memory_space<smem>>
    %c1_i32_67 = arith.constant 1 : i32
    %c1_i32_68 = arith.constant 1 : i32
    %c3_i32_69 = arith.constant 3 : i32
    %c0_i32_70 = arith.constant 0 : i32
    %86 = tpu.memref_slice %arg2[%85, %c0_i32_70] : memref<100x128xf32, #tpu.memory_space<any>> -> memref<1x128xf32, #tpu.memory_space<any>>
    %c3_i32_71 = arith.constant 3 : i32
    %c0_i32_72 = arith.constant 0 : i32
    %87 = tpu.memref_slice %arg8[%c1_i32_67, %c3_i32_71, %c0_i32_72] : memref<8x8x128xf32, #tpu.memory_space<vmem>> -> memref<1x1x128xf32, #tpu.memory_space<vmem>>
    %88 = tpu.memref_squeeze %87 : memref<1x1x128xf32, #tpu.memory_space<vmem>> -> memref<1x128xf32, #tpu.memory_space<vmem>>
    %89 = tpu.memref_slice %arg9[%c1_i32_68, %c3_i32_69] : memref<8x8x!tpu.dma_semaphore, #tpu.memory_space<semaphore_mem>> -> memref<1x1x!tpu.dma_semaphore, #tpu.memory_space<semaphore_mem>>
    %90 = tpu.memref_squeeze %89 : memref<1x1x!tpu.dma_semaphore, #tpu.memory_space<semaphore_mem>> -> memref<!tpu.dma_semaphore, #tpu.memory_space<semaphore_mem>>
    tpu.enqueue_dma source(%86 : memref<1x128xf32, #tpu.memory_space<any>>) target(%88 : memref<1x128xf32, #tpu.memory_space<vmem>>) target_semaphore(%90 : memref<!tpu.dma_semaphore, #tpu.memory_space<semaphore_mem>>)
    %91 = arith.index_cast %62 : i32 to index
    %c4_73 = arith.constant 4 : index
    %92 = memref.load %arg1[%91, %c4_73] : memref<8x8xi32, #tpu.memory_space<smem>>
    %c1_i32_74 = arith.constant 1 : i32
    %c1_i32_75 = arith.constant 1 : i32
    %c4_i32_76 = arith.constant 4 : i32
    %c0_i32_77 = arith.constant 0 : i32
    %93 = tpu.memref_slice %arg2[%92, %c0_i32_77] : memref<100x128xf32, #tpu.memory_space<any>> -> memref<1x128xf32, #tpu.memory_space<any>>
    %c4_i32_78 = arith.constant 4 : i32
    %c0_i32_79 = arith.constant 0 : i32
    %94 = tpu.memref_slice %arg8[%c1_i32_74, %c4_i32_78, %c0_i32_79] : memref<8x8x128xf32, #tpu.memory_space<vmem>> -> memref<1x1x128xf32, #tpu.memory_space<vmem>>
    %95 = tpu.memref_squeeze %94 : memref<1x1x128xf32, #tpu.memory_space<vmem>> -> memref<1x128xf32, #tpu.memory_space<vmem>>
    %96 = tpu.memref_slice %arg9[%c1_i32_75, %c4_i32_76] : memref<8x8x!tpu.dma_semaphore, #tpu.memory_space<semaphore_mem>> -> memref<1x1x!tpu.dma_semaphore, #tpu.memory_space<semaphore_mem>>
    %97 = tpu.memref_squeeze %96 : memref<1x1x!tpu.dma_semaphore, #tpu.memory_space<semaphore_mem>> -> memref<!tpu.dma_semaphore, #tpu.memory_space<semaphore_mem>>
    tpu.enqueue_dma source(%93 : memref<1x128xf32, #tpu.memory_space<any>>) target(%95 : memref<1x128xf32, #tpu.memory_space<vmem>>) target_semaphore(%97 : memref<!tpu.dma_semaphore, #tpu.memory_space<semaphore_mem>>)
    %98 = arith.index_cast %62 : i32 to index
    %c5_80 = arith.constant 5 : index
    %99 = memref.load %arg1[%98, %c5_80] : memref<8x8xi32, #tpu.memory_space<smem>>
    %c1_i32_81 = arith.constant 1 : i32
    %c1_i32_82 = arith.constant 1 : i32
    %c5_i32_83 = arith.constant 5 : i32
    %c0_i32_84 = arith.constant 0 : i32
    %100 = tpu.memref_slice %arg2[%99, %c0_i32_84] : memref<100x128xf32, #tpu.memory_space<any>> -> memref<1x128xf32, #tpu.memory_space<any>>
    %c5_i32_85 = arith.constant 5 : i32
    %c0_i32_86 = arith.constant 0 : i32
    %101 = tpu.memref_slice %arg8[%c1_i32_81, %c5_i32_85, %c0_i32_86] : memref<8x8x128xf32, #tpu.memory_space<vmem>> -> memref<1x1x128xf32, #tpu.memory_space<vmem>>
    %102 = tpu.memref_squeeze %101 : memref<1x1x128xf32, #tpu.memory_space<vmem>> -> memref<1x128xf32, #tpu.memory_space<vmem>>
    %103 = tpu.memref_slice %arg9[%c1_i32_82, %c5_i32_83] : memref<8x8x!tpu.dma_semaphore, #tpu.memory_space<semaphore_mem>> -> memref<1x1x!tpu.dma_semaphore, #tpu.memory_space<semaphore_mem>>
    %104 = tpu.memref_squeeze %103 : memref<1x1x!tpu.dma_semaphore, #tpu.memory_space<semaphore_mem>> -> memref<!tpu.dma_semaphore, #tpu.memory_space<semaphore_mem>>
    tpu.enqueue_dma source(%100 : memref<1x128xf32, #tpu.memory_space<any>>) target(%102 : memref<1x128xf32, #tpu.memory_space<vmem>>) target_semaphore(%104 : memref<!tpu.dma_semaphore, #tpu.memory_space<semaphore_mem>>)
    %105 = arith.index_cast %62 : i32 to index
    %c6_87 = arith.constant 6 : index
    %106 = memref.load %arg1[%105, %c6_87] : memref<8x8xi32, #tpu.memory_space<smem>>
    %c1_i32_88 = arith.constant 1 : i32
    %c1_i32_89 = arith.constant 1 : i32
    %c6_i32_90 = arith.constant 6 : i32
    %c0_i32_91 = arith.constant 0 : i32
    %107 = tpu.memref_slice %arg2[%106, %c0_i32_91] : memref<100x128xf32, #tpu.memory_space<any>> -> memref<1x128xf32, #tpu.memory_space<any>>
    %c6_i32_92 = arith.constant 6 : i32
    %c0_i32_93 = arith.constant 0 : i32
    %108 = tpu.memref_slice %arg8[%c1_i32_88, %c6_i32_92, %c0_i32_93] : memref<8x8x128xf32, #tpu.memory_space<vmem>> -> memref<1x1x128xf32, #tpu.memory_space<vmem>>
    %109 = tpu.memref_squeeze %108 : memref<1x1x128xf32, #tpu.memory_space<vmem>> -> memref<1x128xf32, #tpu.memory_space<vmem>>
    %110 = tpu.memref_slice %arg9[%c1_i32_89, %c6_i32_90] : memref<8x8x!tpu.dma_semaphore, #tpu.memory_space<semaphore_mem>> -> memref<1x1x!tpu.dma_semaphore, #tpu.memory_space<semaphore_mem>>
    %111 = tpu.memref_squeeze %110 : memref<1x1x!tpu.dma_semaphore, #tpu.memory_space<semaphore_mem>> -> memref<!tpu.dma_semaphore, #tpu.memory_space<semaphore_mem>>
    tpu.enqueue_dma source(%107 : memref<1x128xf32, #tpu.memory_space<any>>) target(%109 : memref<1x128xf32, #tpu.memory_space<vmem>>) target_semaphore(%111 : memref<!tpu.dma_semaphore, #tpu.memory_space<semaphore_mem>>)
    %112 = arith.index_cast %62 : i32 to index
    %c7_94 = arith.constant 7 : index
    %113 = memref.load %arg1[%112, %c7_94] : memref<8x8xi32, #tpu.memory_space<smem>>
    %c1_i32_95 = arith.constant 1 : i32
    %c1_i32_96 = arith.constant 1 : i32
    %c7_i32_97 = arith.constant 7 : i32
    %c0_i32_98 = arith.constant 0 : i32
    %114 = tpu.memref_slice %arg2[%113, %c0_i32_98] : memref<100x128xf32, #tpu.memory_space<any>> -> memref<1x128xf32, #tpu.memory_space<any>>
    %c7_i32_99 = arith.constant 7 : i32
    %c0_i32_100 = arith.constant 0 : i32
    %115 = tpu.memref_slice %arg8[%c1_i32_95, %c7_i32_99, %c0_i32_100] : memref<8x8x128xf32, #tpu.memory_space<vmem>> -> memref<1x1x128xf32, #tpu.memory_space<vmem>>
    %116 = tpu.memref_squeeze %115 : memref<1x1x128xf32, #tpu.memory_space<vmem>> -> memref<1x128xf32, #tpu.memory_space<vmem>>
    %117 = tpu.memref_slice %arg9[%c1_i32_96, %c7_i32_97] : memref<8x8x!tpu.dma_semaphore, #tpu.memory_space<semaphore_mem>> -> memref<1x1x!tpu.dma_semaphore, #tpu.memory_space<semaphore_mem>>
    %118 = tpu.memref_squeeze %117 : memref<1x1x!tpu.dma_semaphore, #tpu.memory_space<semaphore_mem>> -> memref<!tpu.dma_semaphore, #tpu.memory_space<semaphore_mem>>
    tpu.enqueue_dma source(%114 : memref<1x128xf32, #tpu.memory_space<any>>) target(%116 : memref<1x128xf32, #tpu.memory_space<vmem>>) target_semaphore(%118 : memref<!tpu.dma_semaphore, #tpu.memory_space<semaphore_mem>>)
    %c8_i32_101 = arith.constant 8 : i32
    %119 = arith.muli %arg0, %c8_i32_101 : i32
    %c2_i32_102 = arith.constant 2 : i32
    %120 = arith.addi %119, %c2_i32_102 : i32
    %121 = arith.index_cast %120 : i32 to index
    %c0_103 = arith.constant 0 : index
    %122 = memref.load %arg1[%121, %c0_103] : memref<8x8xi32, #tpu.memory_space<smem>>
    %c2_i32_104 = arith.constant 2 : i32
    %c2_i32_105 = arith.constant 2 : i32
    %c0_i32_106 = arith.constant 0 : i32
    %c0_i32_107 = arith.constant 0 : i32
    %123 = tpu.memref_slice %arg2[%122, %c0_i32_107] : memref<100x128xf32, #tpu.memory_space<any>> -> memref<1x128xf32, #tpu.memory_space<any>>
    %c0_i32_108 = arith.constant 0 : i32
    %c0_i32_109 = arith.constant 0 : i32
    %124 = tpu.memref_slice %arg8[%c2_i32_104, %c0_i32_108, %c0_i32_109] : memref<8x8x128xf32, #tpu.memory_space<vmem>> -> memref<1x1x128xf32, #tpu.memory_space<vmem>>
    %125 = tpu.memref_squeeze %124 : memref<1x1x128xf32, #tpu.memory_space<vmem>> -> memref<1x128xf32, #tpu.memory_space<vmem>>
    %126 = tpu.memref_slice %arg9[%c2_i32_105, %c0_i32_106] : memref<8x8x!tpu.dma_semaphore, #tpu.memory_space<semaphore_mem>> -> memref<1x1x!tpu.dma_semaphore, #tpu.memory_space<semaphore_mem>>
    %127 = tpu.memref_squeeze %126 : memref<1x1x!tpu.dma_semaphore, #tpu.memory_space<semaphore_mem>> -> memref<!tpu.dma_semaphore, #tpu.memory_space<semaphore_mem>>
    tpu.enqueue_dma source(%123 : memref<1x128xf32, #tpu.memory_space<any>>) target(%125 : memref<1x128xf32, #tpu.memory_space<vmem>>) target_semaphore(%127 : memref<!tpu.dma_semaphore, #tpu.memory_space<semaphore_mem>>)
    %128 = arith.index_cast %120 : i32 to index
    %c1_110 = arith.constant 1 : index
    %129 = memref.load %arg1[%128, %c1_110] : memref<8x8xi32, #tpu.memory_space<smem>>
    %c2_i32_111 = arith.constant 2 : i32
    %c2_i32_112 = arith.constant 2 : i32
    %c1_i32_113 = arith.constant 1 : i32
    %c0_i32_114 = arith.constant 0 : i32
    %130 = tpu.memref_slice %arg2[%129, %c0_i32_114] : memref<100x128xf32, #tpu.memory_space<any>> -> memref<1x128xf32, #tpu.memory_space<any>>
    %c1_i32_115 = arith.constant 1 : i32
    %c0_i32_116 = arith.constant 0 : i32
    %131 = tpu.memref_slice %arg8[%c2_i32_111, %c1_i32_115, %c0_i32_116] : memref<8x8x128xf32, #tpu.memory_space<vmem>> -> memref<1x1x128xf32, #tpu.memory_space<vmem>>
    %132 = tpu.memref_squeeze %131 : memref<1x1x128xf32, #tpu.memory_space<vmem>> -> memref<1x128xf32, #tpu.memory_space<vmem>>
    %133 = tpu.memref_slice %arg9[%c2_i32_112, %c1_i32_113] : memref<8x8x!tpu.dma_semaphore, #tpu.memory_space<semaphore_mem>> -> memref<1x1x!tpu.dma_semaphore, #tpu.memory_space<semaphore_mem>>
    %134 = tpu.memref_squeeze %133 : memref<1x1x!tpu.dma_semaphore, #tpu.memory_space<semaphore_mem>> -> memref<!tpu.dma_semaphore, #tpu.memory_space<semaphore_mem>>
    tpu.enqueue_dma source(%130 : memref<1x128xf32, #tpu.memory_space<any>>) target(%132 : memref<1x128xf32, #tpu.memory_space<vmem>>) target_semaphore(%134 : memref<!tpu.dma_semaphore, #tpu.memory_space<semaphore_mem>>)
    %135 = arith.index_cast %120 : i32 to index
    %c2_117 = arith.constant 2 : index
    %136 = memref.load %arg1[%135, %c2_117] : memref<8x8xi32, #tpu.memory_space<smem>>
    %c2_i32_118 = arith.constant 2 : i32
    %c2_i32_119 = arith.constant 2 : i32
    %c2_i32_120 = arith.constant 2 : i32
    %c0_i32_121 = arith.constant 0 : i32
    %137 = tpu.memref_slice %arg2[%136, %c0_i32_121] : memref<100x128xf32, #tpu.memory_space<any>> -> memref<1x128xf32, #tpu.memory_space<any>>
    %c2_i32_122 = arith.constant 2 : i32
    %c0_i32_123 = arith.constant 0 : i32
    %138 = tpu.memref_slice %arg8[%c2_i32_118, %c2_i32_122, %c0_i32_123] : memref<8x8x128xf32, #tpu.memory_space<vmem>> -> memref<1x1x128xf32, #tpu.memory_space<vmem>>
    %139 = tpu.memref_squeeze %138 : memref<1x1x128xf32, #tpu.memory_space<vmem>> -> memref<1x128xf32, #tpu.memory_space<vmem>>
    %140 = tpu.memref_slice %arg9[%c2_i32_119, %c2_i32_120] : memref<8x8x!tpu.dma_semaphore, #tpu.memory_space<semaphore_mem>> -> memref<1x1x!tpu.dma_semaphore, #tpu.memory_space<semaphore_mem>>
    %141 = tpu.memref_squeeze %140 : memref<1x1x!tpu.dma_semaphore, #tpu.memory_space<semaphore_mem>> -> memref<!tpu.dma_semaphore, #tpu.memory_space<semaphore_mem>>
    tpu.enqueue_dma source(%137 : memref<1x128xf32, #tpu.memory_space<any>>) target(%139 : memref<1x128xf32, #tpu.memory_space<vmem>>) target_semaphore(%141 : memref<!tpu.dma_semaphore, #tpu.memory_space<semaphore_mem>>)
    %142 = arith.index_cast %120 : i32 to index
    %c3_124 = arith.constant 3 : index
    %143 = memref.load %arg1[%142, %c3_124] : memref<8x8xi32, #tpu.memory_space<smem>>
    %c2_i32_125 = arith.constant 2 : i32
    %c2_i32_126 = arith.constant 2 : i32
    %c3_i32_127 = arith.constant 3 : i32
    %c0_i32_128 = arith.constant 0 : i32
    %144 = tpu.memref_slice %arg2[%143, %c0_i32_128] : memref<100x128xf32, #tpu.memory_space<any>> -> memref<1x128xf32, #tpu.memory_space<any>>
    %c3_i32_129 = arith.constant 3 : i32
    %c0_i32_130 = arith.constant 0 : i32
    %145 = tpu.memref_slice %arg8[%c2_i32_125, %c3_i32_129, %c0_i32_130] : memref<8x8x128xf32, #tpu.memory_space<vmem>> -> memref<1x1x128xf32, #tpu.memory_space<vmem>>
    %146 = tpu.memref_squeeze %145 : memref<1x1x128xf32, #tpu.memory_space<vmem>> -> memref<1x128xf32, #tpu.memory_space<vmem>>
    %147 = tpu.memref_slice %arg9[%c2_i32_126, %c3_i32_127] : memref<8x8x!tpu.dma_semaphore, #tpu.memory_space<semaphore_mem>> -> memref<1x1x!tpu.dma_semaphore, #tpu.memory_space<semaphore_mem>>
    %148 = tpu.memref_squeeze %147 : memref<1x1x!tpu.dma_semaphore, #tpu.memory_space<semaphore_mem>> -> memref<!tpu.dma_semaphore, #tpu.memory_space<semaphore_mem>>
    tpu.enqueue_dma source(%144 : memref<1x128xf32, #tpu.memory_space<any>>) target(%146 : memref<1x128xf32, #tpu.memory_space<vmem>>) target_semaphore(%148 : memref<!tpu.dma_semaphore, #tpu.memory_space<semaphore_mem>>)
    %149 = arith.index_cast %120 : i32 to index
    %c4_131 = arith.constant 4 : index
    %150 = memref.load %arg1[%149, %c4_131] : memref<8x8xi32, #tpu.memory_space<smem>>
    %c2_i32_132 = arith.constant 2 : i32
    %c2_i32_133 = arith.constant 2 : i32
    %c4_i32_134 = arith.constant 4 : i32
    %c0_i32_135 = arith.constant 0 : i32
    %151 = tpu.memref_slice %arg2[%150, %c0_i32_135] : memref<100x128xf32, #tpu.memory_space<any>> -> memref<1x128xf32, #tpu.memory_space<any>>
    %c4_i32_136 = arith.constant 4 : i32
    %c0_i32_137 = arith.constant 0 : i32
    %152 = tpu.memref_slice %arg8[%c2_i32_132, %c4_i32_136, %c0_i32_137] : memref<8x8x128xf32, #tpu.memory_space<vmem>> -> memref<1x1x128xf32, #tpu.memory_space<vmem>>
    %153 = tpu.memref_squeeze %152 : memref<1x1x128xf32, #tpu.memory_space<vmem>> -> memref<1x128xf32, #tpu.memory_space<vmem>>
    %154 = tpu.memref_slice %arg9[%c2_i32_133, %c4_i32_134] : memref<8x8x!tpu.dma_semaphore, #tpu.memory_space<semaphore_mem>> -> memref<1x1x!tpu.dma_semaphore, #tpu.memory_space<semaphore_mem>>
    %155 = tpu.memref_squeeze %154 : memref<1x1x!tpu.dma_semaphore, #tpu.memory_space<semaphore_mem>> -> memref<!tpu.dma_semaphore, #tpu.memory_space<semaphore_mem>>
    tpu.enqueue_dma source(%151 : memref<1x128xf32, #tpu.memory_space<any>>) target(%153 : memref<1x128xf32, #tpu.memory_space<vmem>>) target_semaphore(%155 : memref<!tpu.dma_semaphore, #tpu.memory_space<semaphore_mem>>)
    %156 = arith.index_cast %120 : i32 to index
    %c5_138 = arith.constant 5 : index
    %157 = memref.load %arg1[%156, %c5_138] : memref<8x8xi32, #tpu.memory_space<smem>>
    %c2_i32_139 = arith.constant 2 : i32
    %c2_i32_140 = arith.constant 2 : i32
    %c5_i32_141 = arith.constant 5 : i32
    %c0_i32_142 = arith.constant 0 : i32
    %158 = tpu.memref_slice %arg2[%157, %c0_i32_142] : memref<100x128xf32, #tpu.memory_space<any>> -> memref<1x128xf32, #tpu.memory_space<any>>
    %c5_i32_143 = arith.constant 5 : i32
    %c0_i32_144 = arith.constant 0 : i32
    %159 = tpu.memref_slice %arg8[%c2_i32_139, %c5_i32_143, %c0_i32_144] : memref<8x8x128xf32, #tpu.memory_space<vmem>> -> memref<1x1x128xf32, #tpu.memory_space<vmem>>
    %160 = tpu.memref_squeeze %159 : memref<1x1x128xf32, #tpu.memory_space<vmem>> -> memref<1x128xf32, #tpu.memory_space<vmem>>
    %161 = tpu.memref_slice %arg9[%c2_i32_140, %c5_i32_141] : memref<8x8x!tpu.dma_semaphore, #tpu.memory_space<semaphore_mem>> -> memref<1x1x!tpu.dma_semaphore, #tpu.memory_space<semaphore_mem>>
    %162 = tpu.memref_squeeze %161 : memref<1x1x!tpu.dma_semaphore, #tpu.memory_space<semaphore_mem>> -> memref<!tpu.dma_semaphore, #tpu.memory_space<semaphore_mem>>
    tpu.enqueue_dma source(%158 : memref<1x128xf32, #tpu.memory_space<any>>) target(%160 : memref<1x128xf32, #tpu.memory_space<vmem>>) target_semaphore(%162 : memref<!tpu.dma_semaphore, #tpu.memory_space<semaphore_mem>>)
    %163 = arith.index_cast %120 : i32 to index
    %c6_145 = arith.constant 6 : index
    %164 = memref.load %arg1[%163, %c6_145] : memref<8x8xi32, #tpu.memory_space<smem>>
    %c2_i32_146 = arith.constant 2 : i32
    %c2_i32_147 = arith.constant 2 : i32
    %c6_i32_148 = arith.constant 6 : i32
    %c0_i32_149 = arith.constant 0 : i32
    %165 = tpu.memref_slice %arg2[%164, %c0_i32_149] : memref<100x128xf32, #tpu.memory_space<any>> -> memref<1x128xf32, #tpu.memory_space<any>>
    %c6_i32_150 = arith.constant 6 : i32
    %c0_i32_151 = arith.constant 0 : i32
    %166 = tpu.memref_slice %arg8[%c2_i32_146, %c6_i32_150, %c0_i32_151] : memref<8x8x128xf32, #tpu.memory_space<vmem>> -> memref<1x1x128xf32, #tpu.memory_space<vmem>>
    %167 = tpu.memref_squeeze %166 : memref<1x1x128xf32, #tpu.memory_space<vmem>> -> memref<1x128xf32, #tpu.memory_space<vmem>>
    %168 = tpu.memref_slice %arg9[%c2_i32_147, %c6_i32_148] : memref<8x8x!tpu.dma_semaphore, #tpu.memory_space<semaphore_mem>> -> memref<1x1x!tpu.dma_semaphore, #tpu.memory_space<semaphore_mem>>
    %169 = tpu.memref_squeeze %168 : memref<1x1x!tpu.dma_semaphore, #tpu.memory_space<semaphore_mem>> -> memref<!tpu.dma_semaphore, #tpu.memory_space<semaphore_mem>>
    tpu.enqueue_dma source(%165 : memref<1x128xf32, #tpu.memory_space<any>>) target(%167 : memref<1x128xf32, #tpu.memory_space<vmem>>) target_semaphore(%169 : memref<!tpu.dma_semaphore, #tpu.memory_space<semaphore_mem>>)
    %170 = arith.index_cast %120 : i32 to index
    %c7_152 = arith.constant 7 : index
    %171 = memref.load %arg1[%170, %c7_152] : memref<8x8xi32, #tpu.memory_space<smem>>
    %c2_i32_153 = arith.constant 2 : i32
    %c2_i32_154 = arith.constant 2 : i32
    %c7_i32_155 = arith.constant 7 : i32
    %c0_i32_156 = arith.constant 0 : i32
    %172 = tpu.memref_slice %arg2[%171, %c0_i32_156] : memref<100x128xf32, #tpu.memory_space<any>> -> memref<1x128xf32, #tpu.memory_space<any>>
    %c7_i32_157 = arith.constant 7 : i32
    %c0_i32_158 = arith.constant 0 : i32
    %173 = tpu.memref_slice %arg8[%c2_i32_153, %c7_i32_157, %c0_i32_158] : memref<8x8x128xf32, #tpu.memory_space<vmem>> -> memref<1x1x128xf32, #tpu.memory_space<vmem>>
    %174 = tpu.memref_squeeze %173 : memref<1x1x128xf32, #tpu.memory_space<vmem>> -> memref<1x128xf32, #tpu.memory_space<vmem>>
    %175 = tpu.memref_slice %arg9[%c2_i32_154, %c7_i32_155] : memref<8x8x!tpu.dma_semaphore, #tpu.memory_space<semaphore_mem>> -> memref<1x1x!tpu.dma_semaphore, #tpu.memory_space<semaphore_mem>>
    %176 = tpu.memref_squeeze %175 : memref<1x1x!tpu.dma_semaphore, #tpu.memory_space<semaphore_mem>> -> memref<!tpu.dma_semaphore, #tpu.memory_space<semaphore_mem>>
    tpu.enqueue_dma source(%172 : memref<1x128xf32, #tpu.memory_space<any>>) target(%174 : memref<1x128xf32, #tpu.memory_space<vmem>>) target_semaphore(%176 : memref<!tpu.dma_semaphore, #tpu.memory_space<semaphore_mem>>)
    %c8_i32_159 = arith.constant 8 : i32
    %177 = arith.muli %arg0, %c8_i32_159 : i32
    %c3_i32_160 = arith.constant 3 : i32
    %178 = arith.addi %177, %c3_i32_160 : i32
    %179 = arith.index_cast %178 : i32 to index
    %c0_161 = arith.constant 0 : index
    %180 = memref.load %arg1[%179, %c0_161] : memref<8x8xi32, #tpu.memory_space<smem>>
    %c3_i32_162 = arith.constant 3 : i32
    %c3_i32_163 = arith.constant 3 : i32
    %c0_i32_164 = arith.constant 0 : i32
    %c0_i32_165 = arith.constant 0 : i32
    %181 = tpu.memref_slice %arg2[%180, %c0_i32_165] : memref<100x128xf32, #tpu.memory_space<any>> -> memref<1x128xf32, #tpu.memory_space<any>>
    %c0_i32_166 = arith.constant 0 : i32
    %c0_i32_167 = arith.constant 0 : i32
    %182 = tpu.memref_slice %arg8[%c3_i32_162, %c0_i32_166, %c0_i32_167] : memref<8x8x128xf32, #tpu.memory_space<vmem>> -> memref<1x1x128xf32, #tpu.memory_space<vmem>>
    %183 = tpu.memref_squeeze %182 : memref<1x1x128xf32, #tpu.memory_space<vmem>> -> memref<1x128xf32, #tpu.memory_space<vmem>>
    %184 = tpu.memref_slice %arg9[%c3_i32_163, %c0_i32_164] : memref<8x8x!tpu.dma_semaphore, #tpu.memory_space<semaphore_mem>> -> memref<1x1x!tpu.dma_semaphore, #tpu.memory_space<semaphore_mem>>
    %185 = tpu.memref_squeeze %184 : memref<1x1x!tpu.dma_semaphore, #tpu.memory_space<semaphore_mem>> -> memref<!tpu.dma_semaphore, #tpu.memory_space<semaphore_mem>>
    tpu.enqueue_dma source(%181 : memref<1x128xf32, #tpu.memory_space<any>>) target(%183 : memref<1x128xf32, #tpu.memory_space<vmem>>) target_semaphore(%185 : memref<!tpu.dma_semaphore, #tpu.memory_space<semaphore_mem>>)
    %186 = arith.index_cast %178 : i32 to index
    %c1_168 = arith.constant 1 : index
    %187 = memref.load %arg1[%186, %c1_168] : memref<8x8xi32, #tpu.memory_space<smem>>
    %c3_i32_169 = arith.constant 3 : i32
    %c3_i32_170 = arith.constant 3 : i32
    %c1_i32_171 = arith.constant 1 : i32
    %c0_i32_172 = arith.constant 0 : i32
    %188 = tpu.memref_slice %arg2[%187, %c0_i32_172] : memref<100x128xf32, #tpu.memory_space<any>> -> memref<1x128xf32, #tpu.memory_space<any>>
    %c1_i32_173 = arith.constant 1 : i32
    %c0_i32_174 = arith.constant 0 : i32
    %189 = tpu.memref_slice %arg8[%c3_i32_169, %c1_i32_173, %c0_i32_174] : memref<8x8x128xf32, #tpu.memory_space<vmem>> -> memref<1x1x128xf32, #tpu.memory_space<vmem>>
    %190 = tpu.memref_squeeze %189 : memref<1x1x128xf32, #tpu.memory_space<vmem>> -> memref<1x128xf32, #tpu.memory_space<vmem>>
    %191 = tpu.memref_slice %arg9[%c3_i32_170, %c1_i32_171] : memref<8x8x!tpu.dma_semaphore, #tpu.memory_space<semaphore_mem>> -> memref<1x1x!tpu.dma_semaphore, #tpu.memory_space<semaphore_mem>>
    %192 = tpu.memref_squeeze %191 : memref<1x1x!tpu.dma_semaphore, #tpu.memory_space<semaphore_mem>> -> memref<!tpu.dma_semaphore, #tpu.memory_space<semaphore_mem>>
    tpu.enqueue_dma source(%188 : memref<1x128xf32, #tpu.memory_space<any>>) target(%190 : memref<1x128xf32, #tpu.memory_space<vmem>>) target_semaphore(%192 : memref<!tpu.dma_semaphore, #tpu.memory_space<semaphore_mem>>)
    %193 = arith.index_cast %178 : i32 to index
    %c2_175 = arith.constant 2 : index
    %194 = memref.load %arg1[%193, %c2_175] : memref<8x8xi32, #tpu.memory_space<smem>>
    %c3_i32_176 = arith.constant 3 : i32
    %c3_i32_177 = arith.constant 3 : i32
    %c2_i32_178 = arith.constant 2 : i32
    %c0_i32_179 = arith.constant 0 : i32
    %195 = tpu.memref_slice %arg2[%194, %c0_i32_179] : memref<100x128xf32, #tpu.memory_space<any>> -> memref<1x128xf32, #tpu.memory_space<any>>
    %c2_i32_180 = arith.constant 2 : i32
    %c0_i32_181 = arith.constant 0 : i32
    %196 = tpu.memref_slice %arg8[%c3_i32_176, %c2_i32_180, %c0_i32_181] : memref<8x8x128xf32, #tpu.memory_space<vmem>> -> memref<1x1x128xf32, #tpu.memory_space<vmem>>
    %197 = tpu.memref_squeeze %196 : memref<1x1x128xf32, #tpu.memory_space<vmem>> -> memref<1x128xf32, #tpu.memory_space<vmem>>
    %198 = tpu.memref_slice %arg9[%c3_i32_177, %c2_i32_178] : memref<8x8x!tpu.dma_semaphore, #tpu.memory_space<semaphore_mem>> -> memref<1x1x!tpu.dma_semaphore, #tpu.memory_space<semaphore_mem>>
    %199 = tpu.memref_squeeze %198 : memref<1x1x!tpu.dma_semaphore, #tpu.memory_space<semaphore_mem>> -> memref<!tpu.dma_semaphore, #tpu.memory_space<semaphore_mem>>
    tpu.enqueue_dma source(%195 : memref<1x128xf32, #tpu.memory_space<any>>) target(%197 : memref<1x128xf32, #tpu.memory_space<vmem>>) target_semaphore(%199 : memref<!tpu.dma_semaphore, #tpu.memory_space<semaphore_mem>>)
    %200 = arith.index_cast %178 : i32 to index
    %c3_182 = arith.constant 3 : index
    %201 = memref.load %arg1[%200, %c3_182] : memref<8x8xi32, #tpu.memory_space<smem>>
    %c3_i32_183 = arith.constant 3 : i32
    %c3_i32_184 = arith.constant 3 : i32
    %c3_i32_185 = arith.constant 3 : i32
    %c0_i32_186 = arith.constant 0 : i32
    %202 = tpu.memref_slice %arg2[%201, %c0_i32_186] : memref<100x128xf32, #tpu.memory_space<any>> -> memref<1x128xf32, #tpu.memory_space<any>>
    %c3_i32_187 = arith.constant 3 : i32
    %c0_i32_188 = arith.constant 0 : i32
    %203 = tpu.memref_slice %arg8[%c3_i32_183, %c3_i32_187, %c0_i32_188] : memref<8x8x128xf32, #tpu.memory_space<vmem>> -> memref<1x1x128xf32, #tpu.memory_space<vmem>>
    %204 = tpu.memref_squeeze %203 : memref<1x1x128xf32, #tpu.memory_space<vmem>> -> memref<1x128xf32, #tpu.memory_space<vmem>>
    %205 = tpu.memref_slice %arg9[%c3_i32_184, %c3_i32_185] : memref<8x8x!tpu.dma_semaphore, #tpu.memory_space<semaphore_mem>> -> memref<1x1x!tpu.dma_semaphore, #tpu.memory_space<semaphore_mem>>
    %206 = tpu.memref_squeeze %205 : memref<1x1x!tpu.dma_semaphore, #tpu.memory_space<semaphore_mem>> -> memref<!tpu.dma_semaphore, #tpu.memory_space<semaphore_mem>>
    tpu.enqueue_dma source(%202 : memref<1x128xf32, #tpu.memory_space<any>>) target(%204 : memref<1x128xf32, #tpu.memory_space<vmem>>) target_semaphore(%206 : memref<!tpu.dma_semaphore, #tpu.memory_space<semaphore_mem>>)
    %207 = arith.index_cast %178 : i32 to index
    %c4_189 = arith.constant 4 : index
    %208 = memref.load %arg1[%207, %c4_189] : memref<8x8xi32, #tpu.memory_space<smem>>
    %c3_i32_190 = arith.constant 3 : i32
    %c3_i32_191 = arith.constant 3 : i32
    %c4_i32_192 = arith.constant 4 : i32
    %c0_i32_193 = arith.constant 0 : i32
    %209 = tpu.memref_slice %arg2[%208, %c0_i32_193] : memref<100x128xf32, #tpu.memory_space<any>> -> memref<1x128xf32, #tpu.memory_space<any>>
    %c4_i32_194 = arith.constant 4 : i32
    %c0_i32_195 = arith.constant 0 : i32
    %210 = tpu.memref_slice %arg8[%c3_i32_190, %c4_i32_194, %c0_i32_195] : memref<8x8x128xf32, #tpu.memory_space<vmem>> -> memref<1x1x128xf32, #tpu.memory_space<vmem>>
    %211 = tpu.memref_squeeze %210 : memref<1x1x128xf32, #tpu.memory_space<vmem>> -> memref<1x128xf32, #tpu.memory_space<vmem>>
    %212 = tpu.memref_slice %arg9[%c3_i32_191, %c4_i32_192] : memref<8x8x!tpu.dma_semaphore, #tpu.memory_space<semaphore_mem>> -> memref<1x1x!tpu.dma_semaphore, #tpu.memory_space<semaphore_mem>>
    %213 = tpu.memref_squeeze %212 : memref<1x1x!tpu.dma_semaphore, #tpu.memory_space<semaphore_mem>> -> memref<!tpu.dma_semaphore, #tpu.memory_space<semaphore_mem>>
    tpu.enqueue_dma source(%209 : memref<1x128xf32, #tpu.memory_space<any>>) target(%211 : memref<1x128xf32, #tpu.memory_space<vmem>>) target_semaphore(%213 : memref<!tpu.dma_semaphore, #tpu.memory_space<semaphore_mem>>)
    %214 = arith.index_cast %178 : i32 to index
    %c5_196 = arith.constant 5 : index
    %215 = memref.load %arg1[%214, %c5_196] : memref<8x8xi32, #tpu.memory_space<smem>>
    %c3_i32_197 = arith.constant 3 : i32
    %c3_i32_198 = arith.constant 3 : i32
    %c5_i32_199 = arith.constant 5 : i32
    %c0_i32_200 = arith.constant 0 : i32
    %216 = tpu.memref_slice %arg2[%215, %c0_i32_200] : memref<100x128xf32, #tpu.memory_space<any>> -> memref<1x128xf32, #tpu.memory_space<any>>
    %c5_i32_201 = arith.constant 5 : i32
    %c0_i32_202 = arith.constant 0 : i32
    %217 = tpu.memref_slice %arg8[%c3_i32_197, %c5_i32_201, %c0_i32_202] : memref<8x8x128xf32, #tpu.memory_space<vmem>> -> memref<1x1x128xf32, #tpu.memory_space<vmem>>
    %218 = tpu.memref_squeeze %217 : memref<1x1x128xf32, #tpu.memory_space<vmem>> -> memref<1x128xf32, #tpu.memory_space<vmem>>
    %219 = tpu.memref_slice %arg9[%c3_i32_198, %c5_i32_199] : memref<8x8x!tpu.dma_semaphore, #tpu.memory_space<semaphore_mem>> -> memref<1x1x!tpu.dma_semaphore, #tpu.memory_space<semaphore_mem>>
    %220 = tpu.memref_squeeze %219 : memref<1x1x!tpu.dma_semaphore, #tpu.memory_space<semaphore_mem>> -> memref<!tpu.dma_semaphore, #tpu.memory_space<semaphore_mem>>
    tpu.enqueue_dma source(%216 : memref<1x128xf32, #tpu.memory_space<any>>) target(%218 : memref<1x128xf32, #tpu.memory_space<vmem>>) target_semaphore(%220 : memref<!tpu.dma_semaphore, #tpu.memory_space<semaphore_mem>>)
    %221 = arith.index_cast %178 : i32 to index
    %c6_203 = arith.constant 6 : index
    %222 = memref.load %arg1[%221, %c6_203] : memref<8x8xi32, #tpu.memory_space<smem>>
    %c3_i32_204 = arith.constant 3 : i32
    %c3_i32_205 = arith.constant 3 : i32
    %c6_i32_206 = arith.constant 6 : i32
    %c0_i32_207 = arith.constant 0 : i32
    %223 = tpu.memref_slice %arg2[%222, %c0_i32_207] : memref<100x128xf32, #tpu.memory_space<any>> -> memref<1x128xf32, #tpu.memory_space<any>>
    %c6_i32_208 = arith.constant 6 : i32
    %c0_i32_209 = arith.constant 0 : i32
    %224 = tpu.memref_slice %arg8[%c3_i32_204, %c6_i32_208, %c0_i32_209] : memref<8x8x128xf32, #tpu.memory_space<vmem>> -> memref<1x1x128xf32, #tpu.memory_space<vmem>>
    %225 = tpu.memref_squeeze %224 : memref<1x1x128xf32, #tpu.memory_space<vmem>> -> memref<1x128xf32, #tpu.memory_space<vmem>>
    %226 = tpu.memref_slice %arg9[%c3_i32_205, %c6_i32_206] : memref<8x8x!tpu.dma_semaphore, #tpu.memory_space<semaphore_mem>> -> memref<1x1x!tpu.dma_semaphore, #tpu.memory_space<semaphore_mem>>
    %227 = tpu.memref_squeeze %226 : memref<1x1x!tpu.dma_semaphore, #tpu.memory_space<semaphore_mem>> -> memref<!tpu.dma_semaphore, #tpu.memory_space<semaphore_mem>>
    tpu.enqueue_dma source(%223 : memref<1x128xf32, #tpu.memory_space<any>>) target(%225 : memref<1x128xf32, #tpu.memory_space<vmem>>) target_semaphore(%227 : memref<!tpu.dma_semaphore, #tpu.memory_space<semaphore_mem>>)
    %228 = arith.index_cast %178 : i32 to index
    %c7_210 = arith.constant 7 : index
    %229 = memref.load %arg1[%228, %c7_210] : memref<8x8xi32, #tpu.memory_space<smem>>
    %c3_i32_211 = arith.constant 3 : i32
    %c3_i32_212 = arith.constant 3 : i32
    %c7_i32_213 = arith.constant 7 : i32
    %c0_i32_214 = arith.constant 0 : i32
    %230 = tpu.memref_slice %arg2[%229, %c0_i32_214] : memref<100x128xf32, #tpu.memory_space<any>> -> memref<1x128xf32, #tpu.memory_space<any>>
    %c7_i32_215 = arith.constant 7 : i32
    %c0_i32_216 = arith.constant 0 : i32
    %231 = tpu.memref_slice %arg8[%c3_i32_211, %c7_i32_215, %c0_i32_216] : memref<8x8x128xf32, #tpu.memory_space<vmem>> -> memref<1x1x128xf32, #tpu.memory_space<vmem>>
    %232 = tpu.memref_squeeze %231 : memref<1x1x128xf32, #tpu.memory_space<vmem>> -> memref<1x128xf32, #tpu.memory_space<vmem>>
    %233 = tpu.memref_slice %arg9[%c3_i32_212, %c7_i32_213] : memref<8x8x!tpu.dma_semaphore, #tpu.memory_space<semaphore_mem>> -> memref<1x1x!tpu.dma_semaphore, #tpu.memory_space<semaphore_mem>>
    %234 = tpu.memref_squeeze %233 : memref<1x1x!tpu.dma_semaphore, #tpu.memory_space<semaphore_mem>> -> memref<!tpu.dma_semaphore, #tpu.memory_space<semaphore_mem>>
    tpu.enqueue_dma source(%230 : memref<1x128xf32, #tpu.memory_space<any>>) target(%232 : memref<1x128xf32, #tpu.memory_space<vmem>>) target_semaphore(%234 : memref<!tpu.dma_semaphore, #tpu.memory_space<semaphore_mem>>)
    %c8_i32_217 = arith.constant 8 : i32
    %235 = arith.muli %arg0, %c8_i32_217 : i32
    %c4_i32_218 = arith.constant 4 : i32
    %236 = arith.addi %235, %c4_i32_218 : i32
    %237 = arith.index_cast %236 : i32 to index
    %c0_219 = arith.constant 0 : index
    %238 = memref.load %arg1[%237, %c0_219] : memref<8x8xi32, #tpu.memory_space<smem>>
    %c4_i32_220 = arith.constant 4 : i32
    %c4_i32_221 = arith.constant 4 : i32
    %c0_i32_222 = arith.constant 0 : i32
    %c0_i32_223 = arith.constant 0 : i32
    %239 = tpu.memref_slice %arg2[%238, %c0_i32_223] : memref<100x128xf32, #tpu.memory_space<any>> -> memref<1x128xf32, #tpu.memory_space<any>>
    %c0_i32_224 = arith.constant 0 : i32
    %c0_i32_225 = arith.constant 0 : i32
    %240 = tpu.memref_slice %arg8[%c4_i32_220, %c0_i32_224, %c0_i32_225] : memref<8x8x128xf32, #tpu.memory_space<vmem>> -> memref<1x1x128xf32, #tpu.memory_space<vmem>>
    %241 = tpu.memref_squeeze %240 : memref<1x1x128xf32, #tpu.memory_space<vmem>> -> memref<1x128xf32, #tpu.memory_space<vmem>>
    %242 = tpu.memref_slice %arg9[%c4_i32_221, %c0_i32_222] : memref<8x8x!tpu.dma_semaphore, #tpu.memory_space<semaphore_mem>> -> memref<1x1x!tpu.dma_semaphore, #tpu.memory_space<semaphore_mem>>
    %243 = tpu.memref_squeeze %242 : memref<1x1x!tpu.dma_semaphore, #tpu.memory_space<semaphore_mem>> -> memref<!tpu.dma_semaphore, #tpu.memory_space<semaphore_mem>>
    tpu.enqueue_dma source(%239 : memref<1x128xf32, #tpu.memory_space<any>>) target(%241 : memref<1x128xf32, #tpu.memory_space<vmem>>) target_semaphore(%243 : memref<!tpu.dma_semaphore, #tpu.memory_space<semaphore_mem>>)
    %244 = arith.index_cast %236 : i32 to index
    %c1_226 = arith.constant 1 : index
    %245 = memref.load %arg1[%244, %c1_226] : memref<8x8xi32, #tpu.memory_space<smem>>
    %c4_i32_227 = arith.constant 4 : i32
    %c4_i32_228 = arith.constant 4 : i32
    %c1_i32_229 = arith.constant 1 : i32
    %c0_i32_230 = arith.constant 0 : i32
    %246 = tpu.memref_slice %arg2[%245, %c0_i32_230] : memref<100x128xf32, #tpu.memory_space<any>> -> memref<1x128xf32, #tpu.memory_space<any>>
    %c1_i32_231 = arith.constant 1 : i32
    %c0_i32_232 = arith.constant 0 : i32
    %247 = tpu.memref_slice %arg8[%c4_i32_227, %c1_i32_231, %c0_i32_232] : memref<8x8x128xf32, #tpu.memory_space<vmem>> -> memref<1x1x128xf32, #tpu.memory_space<vmem>>
    %248 = tpu.memref_squeeze %247 : memref<1x1x128xf32, #tpu.memory_space<vmem>> -> memref<1x128xf32, #tpu.memory_space<vmem>>
    %249 = tpu.memref_slice %arg9[%c4_i32_228, %c1_i32_229] : memref<8x8x!tpu.dma_semaphore, #tpu.memory_space<semaphore_mem>> -> memref<1x1x!tpu.dma_semaphore, #tpu.memory_space<semaphore_mem>>
    %250 = tpu.memref_squeeze %249 : memref<1x1x!tpu.dma_semaphore, #tpu.memory_space<semaphore_mem>> -> memref<!tpu.dma_semaphore, #tpu.memory_space<semaphore_mem>>
    tpu.enqueue_dma source(%246 : memref<1x128xf32, #tpu.memory_space<any>>) target(%248 : memref<1x128xf32, #tpu.memory_space<vmem>>) target_semaphore(%250 : memref<!tpu.dma_semaphore, #tpu.memory_space<semaphore_mem>>)
    %251 = arith.index_cast %236 : i32 to index
    %c2_233 = arith.constant 2 : index
    %252 = memref.load %arg1[%251, %c2_233] : memref<8x8xi32, #tpu.memory_space<smem>>
    %c4_i32_234 = arith.constant 4 : i32
    %c4_i32_235 = arith.constant 4 : i32
    %c2_i32_236 = arith.constant 2 : i32
    %c0_i32_237 = arith.constant 0 : i32
    %253 = tpu.memref_slice %arg2[%252, %c0_i32_237] : memref<100x128xf32, #tpu.memory_space<any>> -> memref<1x128xf32, #tpu.memory_space<any>>
    %c2_i32_238 = arith.constant 2 : i32
    %c0_i32_239 = arith.constant 0 : i32
    %254 = tpu.memref_slice %arg8[%c4_i32_234, %c2_i32_238, %c0_i32_239] : memref<8x8x128xf32, #tpu.memory_space<vmem>> -> memref<1x1x128xf32, #tpu.memory_space<vmem>>
    %255 = tpu.memref_squeeze %254 : memref<1x1x128xf32, #tpu.memory_space<vmem>> -> memref<1x128xf32, #tpu.memory_space<vmem>>
    %256 = tpu.memref_slice %arg9[%c4_i32_235, %c2_i32_236] : memref<8x8x!tpu.dma_semaphore, #tpu.memory_space<semaphore_mem>> -> memref<1x1x!tpu.dma_semaphore, #tpu.memory_space<semaphore_mem>>
    %257 = tpu.memref_squeeze %256 : memref<1x1x!tpu.dma_semaphore, #tpu.memory_space<semaphore_mem>> -> memref<!tpu.dma_semaphore, #tpu.memory_space<semaphore_mem>>
    tpu.enqueue_dma source(%253 : memref<1x128xf32, #tpu.memory_space<any>>) target(%255 : memref<1x128xf32, #tpu.memory_space<vmem>>) target_semaphore(%257 : memref<!tpu.dma_semaphore, #tpu.memory_space<semaphore_mem>>)
    %258 = arith.index_cast %236 : i32 to index
    %c3_240 = arith.constant 3 : index
    %259 = memref.load %arg1[%258, %c3_240] : memref<8x8xi32, #tpu.memory_space<smem>>
    %c4_i32_241 = arith.constant 4 : i32
    %c4_i32_242 = arith.constant 4 : i32
    %c3_i32_243 = arith.constant 3 : i32
    %c0_i32_244 = arith.constant 0 : i32
    %260 = tpu.memref_slice %arg2[%259, %c0_i32_244] : memref<100x128xf32, #tpu.memory_space<any>> -> memref<1x128xf32, #tpu.memory_space<any>>
    %c3_i32_245 = arith.constant 3 : i32
    %c0_i32_246 = arith.constant 0 : i32
    %261 = tpu.memref_slice %arg8[%c4_i32_241, %c3_i32_245, %c0_i32_246] : memref<8x8x128xf32, #tpu.memory_space<vmem>> -> memref<1x1x128xf32, #tpu.memory_space<vmem>>
    %262 = tpu.memref_squeeze %261 : memref<1x1x128xf32, #tpu.memory_space<vmem>> -> memref<1x128xf32, #tpu.memory_space<vmem>>
    %263 = tpu.memref_slice %arg9[%c4_i32_242, %c3_i32_243] : memref<8x8x!tpu.dma_semaphore, #tpu.memory_space<semaphore_mem>> -> memref<1x1x!tpu.dma_semaphore, #tpu.memory_space<semaphore_mem>>
    %264 = tpu.memref_squeeze %263 : memref<1x1x!tpu.dma_semaphore, #tpu.memory_space<semaphore_mem>> -> memref<!tpu.dma_semaphore, #tpu.memory_space<semaphore_mem>>
    tpu.enqueue_dma source(%260 : memref<1x128xf32, #tpu.memory_space<any>>) target(%262 : memref<1x128xf32, #tpu.memory_space<vmem>>) target_semaphore(%264 : memref<!tpu.dma_semaphore, #tpu.memory_space<semaphore_mem>>)
    %265 = arith.index_cast %236 : i32 to index
    %c4_247 = arith.constant 4 : index
    %266 = memref.load %arg1[%265, %c4_247] : memref<8x8xi32, #tpu.memory_space<smem>>
    %c4_i32_248 = arith.constant 4 : i32
    %c4_i32_249 = arith.constant 4 : i32
    %c4_i32_250 = arith.constant 4 : i32
    %c0_i32_251 = arith.constant 0 : i32
    %267 = tpu.memref_slice %arg2[%266, %c0_i32_251] : memref<100x128xf32, #tpu.memory_space<any>> -> memref<1x128xf32, #tpu.memory_space<any>>
    %c4_i32_252 = arith.constant 4 : i32
    %c0_i32_253 = arith.constant 0 : i32
    %268 = tpu.memref_slice %arg8[%c4_i32_248, %c4_i32_252, %c0_i32_253] : memref<8x8x128xf32, #tpu.memory_space<vmem>> -> memref<1x1x128xf32, #tpu.memory_space<vmem>>
    %269 = tpu.memref_squeeze %268 : memref<1x1x128xf32, #tpu.memory_space<vmem>> -> memref<1x128xf32, #tpu.memory_space<vmem>>
    %270 = tpu.memref_slice %arg9[%c4_i32_249, %c4_i32_250] : memref<8x8x!tpu.dma_semaphore, #tpu.memory_space<semaphore_mem>> -> memref<1x1x!tpu.dma_semaphore, #tpu.memory_space<semaphore_mem>>
    %271 = tpu.memref_squeeze %270 : memref<1x1x!tpu.dma_semaphore, #tpu.memory_space<semaphore_mem>> -> memref<!tpu.dma_semaphore, #tpu.memory_space<semaphore_mem>>
    tpu.enqueue_dma source(%267 : memref<1x128xf32, #tpu.memory_space<any>>) target(%269 : memref<1x128xf32, #tpu.memory_space<vmem>>) target_semaphore(%271 : memref<!tpu.dma_semaphore, #tpu.memory_space<semaphore_mem>>)
    %272 = arith.index_cast %236 : i32 to index
    %c5_254 = arith.constant 5 : index
    %273 = memref.load %arg1[%272, %c5_254] : memref<8x8xi32, #tpu.memory_space<smem>>
    %c4_i32_255 = arith.constant 4 : i32
    %c4_i32_256 = arith.constant 4 : i32
    %c5_i32_257 = arith.constant 5 : i32
    %c0_i32_258 = arith.constant 0 : i32
    %274 = tpu.memref_slice %arg2[%273, %c0_i32_258] : memref<100x128xf32, #tpu.memory_space<any>> -> memref<1x128xf32, #tpu.memory_space<any>>
    %c5_i32_259 = arith.constant 5 : i32
    %c0_i32_260 = arith.constant 0 : i32
    %275 = tpu.memref_slice %arg8[%c4_i32_255, %c5_i32_259, %c0_i32_260] : memref<8x8x128xf32, #tpu.memory_space<vmem>> -> memref<1x1x128xf32, #tpu.memory_space<vmem>>
    %276 = tpu.memref_squeeze %275 : memref<1x1x128xf32, #tpu.memory_space<vmem>> -> memref<1x128xf32, #tpu.memory_space<vmem>>
    %277 = tpu.memref_slice %arg9[%c4_i32_256, %c5_i32_257] : memref<8x8x!tpu.dma_semaphore, #tpu.memory_space<semaphore_mem>> -> memref<1x1x!tpu.dma_semaphore, #tpu.memory_space<semaphore_mem>>
    %278 = tpu.memref_squeeze %277 : memref<1x1x!tpu.dma_semaphore, #tpu.memory_space<semaphore_mem>> -> memref<!tpu.dma_semaphore, #tpu.memory_space<semaphore_mem>>
    tpu.enqueue_dma source(%274 : memref<1x128xf32, #tpu.memory_space<any>>) target(%276 : memref<1x128xf32, #tpu.memory_space<vmem>>) target_semaphore(%278 : memref<!tpu.dma_semaphore, #tpu.memory_space<semaphore_mem>>)
    %279 = arith.index_cast %236 : i32 to index
    %c6_261 = arith.constant 6 : index
    %280 = memref.load %arg1[%279, %c6_261] : memref<8x8xi32, #tpu.memory_space<smem>>
    %c4_i32_262 = arith.constant 4 : i32
    %c4_i32_263 = arith.constant 4 : i32
    %c6_i32_264 = arith.constant 6 : i32
    %c0_i32_265 = arith.constant 0 : i32
    %281 = tpu.memref_slice %arg2[%280, %c0_i32_265] : memref<100x128xf32, #tpu.memory_space<any>> -> memref<1x128xf32, #tpu.memory_space<any>>
    %c6_i32_266 = arith.constant 6 : i32
    %c0_i32_267 = arith.constant 0 : i32
    %282 = tpu.memref_slice %arg8[%c4_i32_262, %c6_i32_266, %c0_i32_267] : memref<8x8x128xf32, #tpu.memory_space<vmem>> -> memref<1x1x128xf32, #tpu.memory_space<vmem>>
    %283 = tpu.memref_squeeze %282 : memref<1x1x128xf32, #tpu.memory_space<vmem>> -> memref<1x128xf32, #tpu.memory_space<vmem>>
    %284 = tpu.memref_slice %arg9[%c4_i32_263, %c6_i32_264] : memref<8x8x!tpu.dma_semaphore, #tpu.memory_space<semaphore_mem>> -> memref<1x1x!tpu.dma_semaphore, #tpu.memory_space<semaphore_mem>>
    %285 = tpu.memref_squeeze %284 : memref<1x1x!tpu.dma_semaphore, #tpu.memory_space<semaphore_mem>> -> memref<!tpu.dma_semaphore, #tpu.memory_space<semaphore_mem>>
    tpu.enqueue_dma source(%281 : memref<1x128xf32, #tpu.memory_space<any>>) target(%283 : memref<1x128xf32, #tpu.memory_space<vmem>>) target_semaphore(%285 : memref<!tpu.dma_semaphore, #tpu.memory_space<semaphore_mem>>)
    %286 = arith.index_cast %236 : i32 to index
    %c7_268 = arith.constant 7 : index
    %287 = memref.load %arg1[%286, %c7_268] : memref<8x8xi32, #tpu.memory_space<smem>>
    %c4_i32_269 = arith.constant 4 : i32
    %c4_i32_270 = arith.constant 4 : i32
    %c7_i32_271 = arith.constant 7 : i32
    %c0_i32_272 = arith.constant 0 : i32
    %288 = tpu.memref_slice %arg2[%287, %c0_i32_272] : memref<100x128xf32, #tpu.memory_space<any>> -> memref<1x128xf32, #tpu.memory_space<any>>
    %c7_i32_273 = arith.constant 7 : i32
    %c0_i32_274 = arith.constant 0 : i32
    %289 = tpu.memref_slice %arg8[%c4_i32_269, %c7_i32_273, %c0_i32_274] : memref<8x8x128xf32, #tpu.memory_space<vmem>> -> memref<1x1x128xf32, #tpu.memory_space<vmem>>
    %290 = tpu.memref_squeeze %289 : memref<1x1x128xf32, #tpu.memory_space<vmem>> -> memref<1x128xf32, #tpu.memory_space<vmem>>
    %291 = tpu.memref_slice %arg9[%c4_i32_270, %c7_i32_271] : memref<8x8x!tpu.dma_semaphore, #tpu.memory_space<semaphore_mem>> -> memref<1x1x!tpu.dma_semaphore, #tpu.memory_space<semaphore_mem>>
    %292 = tpu.memref_squeeze %291 : memref<1x1x!tpu.dma_semaphore, #tpu.memory_space<semaphore_mem>> -> memref<!tpu.dma_semaphore, #tpu.memory_space<semaphore_mem>>
    tpu.enqueue_dma source(%288 : memref<1x128xf32, #tpu.memory_space<any>>) target(%290 : memref<1x128xf32, #tpu.memory_space<vmem>>) target_semaphore(%292 : memref<!tpu.dma_semaphore, #tpu.memory_space<semaphore_mem>>)
    %c8_i32_275 = arith.constant 8 : i32
    %293 = arith.muli %arg0, %c8_i32_275 : i32
    %c5_i32_276 = arith.constant 5 : i32
    %294 = arith.addi %293, %c5_i32_276 : i32
    %295 = arith.index_cast %294 : i32 to index
    %c0_277 = arith.constant 0 : index
    %296 = memref.load %arg1[%295, %c0_277] : memref<8x8xi32, #tpu.memory_space<smem>>
    %c5_i32_278 = arith.constant 5 : i32
    %c5_i32_279 = arith.constant 5 : i32
    %c0_i32_280 = arith.constant 0 : i32
    %c0_i32_281 = arith.constant 0 : i32
    %297 = tpu.memref_slice %arg2[%296, %c0_i32_281] : memref<100x128xf32, #tpu.memory_space<any>> -> memref<1x128xf32, #tpu.memory_space<any>>
    %c0_i32_282 = arith.constant 0 : i32
    %c0_i32_283 = arith.constant 0 : i32
    %298 = tpu.memref_slice %arg8[%c5_i32_278, %c0_i32_282, %c0_i32_283] : memref<8x8x128xf32, #tpu.memory_space<vmem>> -> memref<1x1x128xf32, #tpu.memory_space<vmem>>
    %299 = tpu.memref_squeeze %298 : memref<1x1x128xf32, #tpu.memory_space<vmem>> -> memref<1x128xf32, #tpu.memory_space<vmem>>
    %300 = tpu.memref_slice %arg9[%c5_i32_279, %c0_i32_280] : memref<8x8x!tpu.dma_semaphore, #tpu.memory_space<semaphore_mem>> -> memref<1x1x!tpu.dma_semaphore, #tpu.memory_space<semaphore_mem>>
    %301 = tpu.memref_squeeze %300 : memref<1x1x!tpu.dma_semaphore, #tpu.memory_space<semaphore_mem>> -> memref<!tpu.dma_semaphore, #tpu.memory_space<semaphore_mem>>
    tpu.enqueue_dma source(%297 : memref<1x128xf32, #tpu.memory_space<any>>) target(%299 : memref<1x128xf32, #tpu.memory_space<vmem>>) target_semaphore(%301 : memref<!tpu.dma_semaphore, #tpu.memory_space<semaphore_mem>>)
    %302 = arith.index_cast %294 : i32 to index
    %c1_284 = arith.constant 1 : index
    %303 = memref.load %arg1[%302, %c1_284] : memref<8x8xi32, #tpu.memory_space<smem>>
    %c5_i32_285 = arith.constant 5 : i32
    %c5_i32_286 = arith.constant 5 : i32
    %c1_i32_287 = arith.constant 1 : i32
    %c0_i32_288 = arith.constant 0 : i32
    %304 = tpu.memref_slice %arg2[%303, %c0_i32_288] : memref<100x128xf32, #tpu.memory_space<any>> -> memref<1x128xf32, #tpu.memory_space<any>>
    %c1_i32_289 = arith.constant 1 : i32
    %c0_i32_290 = arith.constant 0 : i32
    %305 = tpu.memref_slice %arg8[%c5_i32_285, %c1_i32_289, %c0_i32_290] : memref<8x8x128xf32, #tpu.memory_space<vmem>> -> memref<1x1x128xf32, #tpu.memory_space<vmem>>
    %306 = tpu.memref_squeeze %305 : memref<1x1x128xf32, #tpu.memory_space<vmem>> -> memref<1x128xf32, #tpu.memory_space<vmem>>
    %307 = tpu.memref_slice %arg9[%c5_i32_286, %c1_i32_287] : memref<8x8x!tpu.dma_semaphore, #tpu.memory_space<semaphore_mem>> -> memref<1x1x!tpu.dma_semaphore, #tpu.memory_space<semaphore_mem>>
    %308 = tpu.memref_squeeze %307 : memref<1x1x!tpu.dma_semaphore, #tpu.memory_space<semaphore_mem>> -> memref<!tpu.dma_semaphore, #tpu.memory_space<semaphore_mem>>
    tpu.enqueue_dma source(%304 : memref<1x128xf32, #tpu.memory_space<any>>) target(%306 : memref<1x128xf32, #tpu.memory_space<vmem>>) target_semaphore(%308 : memref<!tpu.dma_semaphore, #tpu.memory_space<semaphore_mem>>)
    %309 = arith.index_cast %294 : i32 to index
    %c2_291 = arith.constant 2 : index
    %310 = memref.load %arg1[%309, %c2_291] : memref<8x8xi32, #tpu.memory_space<smem>>
    %c5_i32_292 = arith.constant 5 : i32
    %c5_i32_293 = arith.constant 5 : i32
    %c2_i32_294 = arith.constant 2 : i32
    %c0_i32_295 = arith.constant 0 : i32
    %311 = tpu.memref_slice %arg2[%310, %c0_i32_295] : memref<100x128xf32, #tpu.memory_space<any>> -> memref<1x128xf32, #tpu.memory_space<any>>
    %c2_i32_296 = arith.constant 2 : i32
    %c0_i32_297 = arith.constant 0 : i32
    %312 = tpu.memref_slice %arg8[%c5_i32_292, %c2_i32_296, %c0_i32_297] : memref<8x8x128xf32, #tpu.memory_space<vmem>> -> memref<1x1x128xf32, #tpu.memory_space<vmem>>
    %313 = tpu.memref_squeeze %312 : memref<1x1x128xf32, #tpu.memory_space<vmem>> -> memref<1x128xf32, #tpu.memory_space<vmem>>
    %314 = tpu.memref_slice %arg9[%c5_i32_293, %c2_i32_294] : memref<8x8x!tpu.dma_semaphore, #tpu.memory_space<semaphore_mem>> -> memref<1x1x!tpu.dma_semaphore, #tpu.memory_space<semaphore_mem>>
    %315 = tpu.memref_squeeze %314 : memref<1x1x!tpu.dma_semaphore, #tpu.memory_space<semaphore_mem>> -> memref<!tpu.dma_semaphore, #tpu.memory_space<semaphore_mem>>
    tpu.enqueue_dma source(%311 : memref<1x128xf32, #tpu.memory_space<any>>) target(%313 : memref<1x128xf32, #tpu.memory_space<vmem>>) target_semaphore(%315 : memref<!tpu.dma_semaphore, #tpu.memory_space<semaphore_mem>>)
    %316 = arith.index_cast %294 : i32 to index
    %c3_298 = arith.constant 3 : index
    %317 = memref.load %arg1[%316, %c3_298] : memref<8x8xi32, #tpu.memory_space<smem>>
    %c5_i32_299 = arith.constant 5 : i32
    %c5_i32_300 = arith.constant 5 : i32
    %c3_i32_301 = arith.constant 3 : i32
    %c0_i32_302 = arith.constant 0 : i32
    %318 = tpu.memref_slice %arg2[%317, %c0_i32_302] : memref<100x128xf32, #tpu.memory_space<any>> -> memref<1x128xf32, #tpu.memory_space<any>>
    %c3_i32_303 = arith.constant 3 : i32
    %c0_i32_304 = arith.constant 0 : i32
    %319 = tpu.memref_slice %arg8[%c5_i32_299, %c3_i32_303, %c0_i32_304] : memref<8x8x128xf32, #tpu.memory_space<vmem>> -> memref<1x1x128xf32, #tpu.memory_space<vmem>>
    %320 = tpu.memref_squeeze %319 : memref<1x1x128xf32, #tpu.memory_space<vmem>> -> memref<1x128xf32, #tpu.memory_space<vmem>>
    %321 = tpu.memref_slice %arg9[%c5_i32_300, %c3_i32_301] : memref<8x8x!tpu.dma_semaphore, #tpu.memory_space<semaphore_mem>> -> memref<1x1x!tpu.dma_semaphore, #tpu.memory_space<semaphore_mem>>
    %322 = tpu.memref_squeeze %321 : memref<1x1x!tpu.dma_semaphore, #tpu.memory_space<semaphore_mem>> -> memref<!tpu.dma_semaphore, #tpu.memory_space<semaphore_mem>>
    tpu.enqueue_dma source(%318 : memref<1x128xf32, #tpu.memory_space<any>>) target(%320 : memref<1x128xf32, #tpu.memory_space<vmem>>) target_semaphore(%322 : memref<!tpu.dma_semaphore, #tpu.memory_space<semaphore_mem>>)
    %323 = arith.index_cast %294 : i32 to index
    %c4_305 = arith.constant 4 : index
    %324 = memref.load %arg1[%323, %c4_305] : memref<8x8xi32, #tpu.memory_space<smem>>
    %c5_i32_306 = arith.constant 5 : i32
    %c5_i32_307 = arith.constant 5 : i32
    %c4_i32_308 = arith.constant 4 : i32
    %c0_i32_309 = arith.constant 0 : i32
    %325 = tpu.memref_slice %arg2[%324, %c0_i32_309] : memref<100x128xf32, #tpu.memory_space<any>> -> memref<1x128xf32, #tpu.memory_space<any>>
    %c4_i32_310 = arith.constant 4 : i32
    %c0_i32_311 = arith.constant 0 : i32
    %326 = tpu.memref_slice %arg8[%c5_i32_306, %c4_i32_310, %c0_i32_311] : memref<8x8x128xf32, #tpu.memory_space<vmem>> -> memref<1x1x128xf32, #tpu.memory_space<vmem>>
    %327 = tpu.memref_squeeze %326 : memref<1x1x128xf32, #tpu.memory_space<vmem>> -> memref<1x128xf32, #tpu.memory_space<vmem>>
    %328 = tpu.memref_slice %arg9[%c5_i32_307, %c4_i32_308] : memref<8x8x!tpu.dma_semaphore, #tpu.memory_space<semaphore_mem>> -> memref<1x1x!tpu.dma_semaphore, #tpu.memory_space<semaphore_mem>>
    %329 = tpu.memref_squeeze %328 : memref<1x1x!tpu.dma_semaphore, #tpu.memory_space<semaphore_mem>> -> memref<!tpu.dma_semaphore, #tpu.memory_space<semaphore_mem>>
    tpu.enqueue_dma source(%325 : memref<1x128xf32, #tpu.memory_space<any>>) target(%327 : memref<1x128xf32, #tpu.memory_space<vmem>>) target_semaphore(%329 : memref<!tpu.dma_semaphore, #tpu.memory_space<semaphore_mem>>)
    %330 = arith.index_cast %294 : i32 to index
    %c5_312 = arith.constant 5 : index
    %331 = memref.load %arg1[%330, %c5_312] : memref<8x8xi32, #tpu.memory_space<smem>>
    %c5_i32_313 = arith.constant 5 : i32
    %c5_i32_314 = arith.constant 5 : i32
    %c5_i32_315 = arith.constant 5 : i32
    %c0_i32_316 = arith.constant 0 : i32
    %332 = tpu.memref_slice %arg2[%331, %c0_i32_316] : memref<100x128xf32, #tpu.memory_space<any>> -> memref<1x128xf32, #tpu.memory_space<any>>
    %c5_i32_317 = arith.constant 5 : i32
    %c0_i32_318 = arith.constant 0 : i32
    %333 = tpu.memref_slice %arg8[%c5_i32_313, %c5_i32_317, %c0_i32_318] : memref<8x8x128xf32, #tpu.memory_space<vmem>> -> memref<1x1x128xf32, #tpu.memory_space<vmem>>
    %334 = tpu.memref_squeeze %333 : memref<1x1x128xf32, #tpu.memory_space<vmem>> -> memref<1x128xf32, #tpu.memory_space<vmem>>
    %335 = tpu.memref_slice %arg9[%c5_i32_314, %c5_i32_315] : memref<8x8x!tpu.dma_semaphore, #tpu.memory_space<semaphore_mem>> -> memref<1x1x!tpu.dma_semaphore, #tpu.memory_space<semaphore_mem>>
    %336 = tpu.memref_squeeze %335 : memref<1x1x!tpu.dma_semaphore, #tpu.memory_space<semaphore_mem>> -> memref<!tpu.dma_semaphore, #tpu.memory_space<semaphore_mem>>
    tpu.enqueue_dma source(%332 : memref<1x128xf32, #tpu.memory_space<any>>) target(%334 : memref<1x128xf32, #tpu.memory_space<vmem>>) target_semaphore(%336 : memref<!tpu.dma_semaphore, #tpu.memory_space<semaphore_mem>>)
    %337 = arith.index_cast %294 : i32 to index
    %c6_319 = arith.constant 6 : index
    %338 = memref.load %arg1[%337, %c6_319] : memref<8x8xi32, #tpu.memory_space<smem>>
    %c5_i32_320 = arith.constant 5 : i32
    %c5_i32_321 = arith.constant 5 : i32
    %c6_i32_322 = arith.constant 6 : i32
    %c0_i32_323 = arith.constant 0 : i32
    %339 = tpu.memref_slice %arg2[%338, %c0_i32_323] : memref<100x128xf32, #tpu.memory_space<any>> -> memref<1x128xf32, #tpu.memory_space<any>>
    %c6_i32_324 = arith.constant 6 : i32
    %c0_i32_325 = arith.constant 0 : i32
    %340 = tpu.memref_slice %arg8[%c5_i32_320, %c6_i32_324, %c0_i32_325] : memref<8x8x128xf32, #tpu.memory_space<vmem>> -> memref<1x1x128xf32, #tpu.memory_space<vmem>>
    %341 = tpu.memref_squeeze %340 : memref<1x1x128xf32, #tpu.memory_space<vmem>> -> memref<1x128xf32, #tpu.memory_space<vmem>>
    %342 = tpu.memref_slice %arg9[%c5_i32_321, %c6_i32_322] : memref<8x8x!tpu.dma_semaphore, #tpu.memory_space<semaphore_mem>> -> memref<1x1x!tpu.dma_semaphore, #tpu.memory_space<semaphore_mem>>
    %343 = tpu.memref_squeeze %342 : memref<1x1x!tpu.dma_semaphore, #tpu.memory_space<semaphore_mem>> -> memref<!tpu.dma_semaphore, #tpu.memory_space<semaphore_mem>>
    tpu.enqueue_dma source(%339 : memref<1x128xf32, #tpu.memory_space<any>>) target(%341 : memref<1x128xf32, #tpu.memory_space<vmem>>) target_semaphore(%343 : memref<!tpu.dma_semaphore, #tpu.memory_space<semaphore_mem>>)
    %344 = arith.index_cast %294 : i32 to index
    %c7_326 = arith.constant 7 : index
    %345 = memref.load %arg1[%344, %c7_326] : memref<8x8xi32, #tpu.memory_space<smem>>
    %c5_i32_327 = arith.constant 5 : i32
    %c5_i32_328 = arith.constant 5 : i32
    %c7_i32_329 = arith.constant 7 : i32
    %c0_i32_330 = arith.constant 0 : i32
    %346 = tpu.memref_slice %arg2[%345, %c0_i32_330] : memref<100x128xf32, #tpu.memory_space<any>> -> memref<1x128xf32, #tpu.memory_space<any>>
    %c7_i32_331 = arith.constant 7 : i32
    %c0_i32_332 = arith.constant 0 : i32
    %347 = tpu.memref_slice %arg8[%c5_i32_327, %c7_i32_331, %c0_i32_332] : memref<8x8x128xf32, #tpu.memory_space<vmem>> -> memref<1x1x128xf32, #tpu.memory_space<vmem>>
    %348 = tpu.memref_squeeze %347 : memref<1x1x128xf32, #tpu.memory_space<vmem>> -> memref<1x128xf32, #tpu.memory_space<vmem>>
    %349 = tpu.memref_slice %arg9[%c5_i32_328, %c7_i32_329] : memref<8x8x!tpu.dma_semaphore, #tpu.memory_space<semaphore_mem>> -> memref<1x1x!tpu.dma_semaphore, #tpu.memory_space<semaphore_mem>>
    %350 = tpu.memref_squeeze %349 : memref<1x1x!tpu.dma_semaphore, #tpu.memory_space<semaphore_mem>> -> memref<!tpu.dma_semaphore, #tpu.memory_space<semaphore_mem>>
    tpu.enqueue_dma source(%346 : memref<1x128xf32, #tpu.memory_space<any>>) target(%348 : memref<1x128xf32, #tpu.memory_space<vmem>>) target_semaphore(%350 : memref<!tpu.dma_semaphore, #tpu.memory_space<semaphore_mem>>)
    %c8_i32_333 = arith.constant 8 : i32
    %351 = arith.muli %arg0, %c8_i32_333 : i32
    %c6_i32_334 = arith.constant 6 : i32
    %352 = arith.addi %351, %c6_i32_334 : i32
    %353 = arith.index_cast %352 : i32 to index
    %c0_335 = arith.constant 0 : index
    %354 = memref.load %arg1[%353, %c0_335] : memref<8x8xi32, #tpu.memory_space<smem>>
    %c6_i32_336 = arith.constant 6 : i32
    %c6_i32_337 = arith.constant 6 : i32
    %c0_i32_338 = arith.constant 0 : i32
    %c0_i32_339 = arith.constant 0 : i32
    %355 = tpu.memref_slice %arg2[%354, %c0_i32_339] : memref<100x128xf32, #tpu.memory_space<any>> -> memref<1x128xf32, #tpu.memory_space<any>>
    %c0_i32_340 = arith.constant 0 : i32
    %c0_i32_341 = arith.constant 0 : i32
    %356 = tpu.memref_slice %arg8[%c6_i32_336, %c0_i32_340, %c0_i32_341] : memref<8x8x128xf32, #tpu.memory_space<vmem>> -> memref<1x1x128xf32, #tpu.memory_space<vmem>>
    %357 = tpu.memref_squeeze %356 : memref<1x1x128xf32, #tpu.memory_space<vmem>> -> memref<1x128xf32, #tpu.memory_space<vmem>>
    %358 = tpu.memref_slice %arg9[%c6_i32_337, %c0_i32_338] : memref<8x8x!tpu.dma_semaphore, #tpu.memory_space<semaphore_mem>> -> memref<1x1x!tpu.dma_semaphore, #tpu.memory_space<semaphore_mem>>
    %359 = tpu.memref_squeeze %358 : memref<1x1x!tpu.dma_semaphore, #tpu.memory_space<semaphore_mem>> -> memref<!tpu.dma_semaphore, #tpu.memory_space<semaphore_mem>>
    tpu.enqueue_dma source(%355 : memref<1x128xf32, #tpu.memory_space<any>>) target(%357 : memref<1x128xf32, #tpu.memory_space<vmem>>) target_semaphore(%359 : memref<!tpu.dma_semaphore, #tpu.memory_space<semaphore_mem>>)
    %360 = arith.index_cast %352 : i32 to index
    %c1_342 = arith.constant 1 : index
    %361 = memref.load %arg1[%360, %c1_342] : memref<8x8xi32, #tpu.memory_space<smem>>
    %c6_i32_343 = arith.constant 6 : i32
    %c6_i32_344 = arith.constant 6 : i32
    %c1_i32_345 = arith.constant 1 : i32
    %c0_i32_346 = arith.constant 0 : i32
    %362 = tpu.memref_slice %arg2[%361, %c0_i32_346] : memref<100x128xf32, #tpu.memory_space<any>> -> memref<1x128xf32, #tpu.memory_space<any>>
    %c1_i32_347 = arith.constant 1 : i32
    %c0_i32_348 = arith.constant 0 : i32
    %363 = tpu.memref_slice %arg8[%c6_i32_343, %c1_i32_347, %c0_i32_348] : memref<8x8x128xf32, #tpu.memory_space<vmem>> -> memref<1x1x128xf32, #tpu.memory_space<vmem>>
    %364 = tpu.memref_squeeze %363 : memref<1x1x128xf32, #tpu.memory_space<vmem>> -> memref<1x128xf32, #tpu.memory_space<vmem>>
    %365 = tpu.memref_slice %arg9[%c6_i32_344, %c1_i32_345] : memref<8x8x!tpu.dma_semaphore, #tpu.memory_space<semaphore_mem>> -> memref<1x1x!tpu.dma_semaphore, #tpu.memory_space<semaphore_mem>>
    %366 = tpu.memref_squeeze %365 : memref<1x1x!tpu.dma_semaphore, #tpu.memory_space<semaphore_mem>> -> memref<!tpu.dma_semaphore, #tpu.memory_space<semaphore_mem>>
    tpu.enqueue_dma source(%362 : memref<1x128xf32, #tpu.memory_space<any>>) target(%364 : memref<1x128xf32, #tpu.memory_space<vmem>>) target_semaphore(%366 : memref<!tpu.dma_semaphore, #tpu.memory_space<semaphore_mem>>)
    %367 = arith.index_cast %352 : i32 to index
    %c2_349 = arith.constant 2 : index
    %368 = memref.load %arg1[%367, %c2_349] : memref<8x8xi32, #tpu.memory_space<smem>>
    %c6_i32_350 = arith.constant 6 : i32
    %c6_i32_351 = arith.constant 6 : i32
    %c2_i32_352 = arith.constant 2 : i32
    %c0_i32_353 = arith.constant 0 : i32
    %369 = tpu.memref_slice %arg2[%368, %c0_i32_353] : memref<100x128xf32, #tpu.memory_space<any>> -> memref<1x128xf32, #tpu.memory_space<any>>
    %c2_i32_354 = arith.constant 2 : i32
    %c0_i32_355 = arith.constant 0 : i32
    %370 = tpu.memref_slice %arg8[%c6_i32_350, %c2_i32_354, %c0_i32_355] : memref<8x8x128xf32, #tpu.memory_space<vmem>> -> memref<1x1x128xf32, #tpu.memory_space<vmem>>
    %371 = tpu.memref_squeeze %370 : memref<1x1x128xf32, #tpu.memory_space<vmem>> -> memref<1x128xf32, #tpu.memory_space<vmem>>
    %372 = tpu.memref_slice %arg9[%c6_i32_351, %c2_i32_352] : memref<8x8x!tpu.dma_semaphore, #tpu.memory_space<semaphore_mem>> -> memref<1x1x!tpu.dma_semaphore, #tpu.memory_space<semaphore_mem>>
    %373 = tpu.memref_squeeze %372 : memref<1x1x!tpu.dma_semaphore, #tpu.memory_space<semaphore_mem>> -> memref<!tpu.dma_semaphore, #tpu.memory_space<semaphore_mem>>
    tpu.enqueue_dma source(%369 : memref<1x128xf32, #tpu.memory_space<any>>) target(%371 : memref<1x128xf32, #tpu.memory_space<vmem>>) target_semaphore(%373 : memref<!tpu.dma_semaphore, #tpu.memory_space<semaphore_mem>>)
    %374 = arith.index_cast %352 : i32 to index
    %c3_356 = arith.constant 3 : index
    %375 = memref.load %arg1[%374, %c3_356] : memref<8x8xi32, #tpu.memory_space<smem>>
    %c6_i32_357 = arith.constant 6 : i32
    %c6_i32_358 = arith.constant 6 : i32
    %c3_i32_359 = arith.constant 3 : i32
    %c0_i32_360 = arith.constant 0 : i32
    %376 = tpu.memref_slice %arg2[%375, %c0_i32_360] : memref<100x128xf32, #tpu.memory_space<any>> -> memref<1x128xf32, #tpu.memory_space<any>>
    %c3_i32_361 = arith.constant 3 : i32
    %c0_i32_362 = arith.constant 0 : i32
    %377 = tpu.memref_slice %arg8[%c6_i32_357, %c3_i32_361, %c0_i32_362] : memref<8x8x128xf32, #tpu.memory_space<vmem>> -> memref<1x1x128xf32, #tpu.memory_space<vmem>>
    %378 = tpu.memref_squeeze %377 : memref<1x1x128xf32, #tpu.memory_space<vmem>> -> memref<1x128xf32, #tpu.memory_space<vmem>>
    %379 = tpu.memref_slice %arg9[%c6_i32_358, %c3_i32_359] : memref<8x8x!tpu.dma_semaphore, #tpu.memory_space<semaphore_mem>> -> memref<1x1x!tpu.dma_semaphore, #tpu.memory_space<semaphore_mem>>
    %380 = tpu.memref_squeeze %379 : memref<1x1x!tpu.dma_semaphore, #tpu.memory_space<semaphore_mem>> -> memref<!tpu.dma_semaphore, #tpu.memory_space<semaphore_mem>>
    tpu.enqueue_dma source(%376 : memref<1x128xf32, #tpu.memory_space<any>>) target(%378 : memref<1x128xf32, #tpu.memory_space<vmem>>) target_semaphore(%380 : memref<!tpu.dma_semaphore, #tpu.memory_space<semaphore_mem>>)
    %381 = arith.index_cast %352 : i32 to index
    %c4_363 = arith.constant 4 : index
    %382 = memref.load %arg1[%381, %c4_363] : memref<8x8xi32, #tpu.memory_space<smem>>
    %c6_i32_364 = arith.constant 6 : i32
    %c6_i32_365 = arith.constant 6 : i32
    %c4_i32_366 = arith.constant 4 : i32
    %c0_i32_367 = arith.constant 0 : i32
    %383 = tpu.memref_slice %arg2[%382, %c0_i32_367] : memref<100x128xf32, #tpu.memory_space<any>> -> memref<1x128xf32, #tpu.memory_space<any>>
    %c4_i32_368 = arith.constant 4 : i32
    %c0_i32_369 = arith.constant 0 : i32
    %384 = tpu.memref_slice %arg8[%c6_i32_364, %c4_i32_368, %c0_i32_369] : memref<8x8x128xf32, #tpu.memory_space<vmem>> -> memref<1x1x128xf32, #tpu.memory_space<vmem>>
    %385 = tpu.memref_squeeze %384 : memref<1x1x128xf32, #tpu.memory_space<vmem>> -> memref<1x128xf32, #tpu.memory_space<vmem>>
    %386 = tpu.memref_slice %arg9[%c6_i32_365, %c4_i32_366] : memref<8x8x!tpu.dma_semaphore, #tpu.memory_space<semaphore_mem>> -> memref<1x1x!tpu.dma_semaphore, #tpu.memory_space<semaphore_mem>>
    %387 = tpu.memref_squeeze %386 : memref<1x1x!tpu.dma_semaphore, #tpu.memory_space<semaphore_mem>> -> memref<!tpu.dma_semaphore, #tpu.memory_space<semaphore_mem>>
    tpu.enqueue_dma source(%383 : memref<1x128xf32, #tpu.memory_space<any>>) target(%385 : memref<1x128xf32, #tpu.memory_space<vmem>>) target_semaphore(%387 : memref<!tpu.dma_semaphore, #tpu.memory_space<semaphore_mem>>)
    %388 = arith.index_cast %352 : i32 to index
    %c5_370 = arith.constant 5 : index
    %389 = memref.load %arg1[%388, %c5_370] : memref<8x8xi32, #tpu.memory_space<smem>>
    %c6_i32_371 = arith.constant 6 : i32
    %c6_i32_372 = arith.constant 6 : i32
    %c5_i32_373 = arith.constant 5 : i32
    %c0_i32_374 = arith.constant 0 : i32
    %390 = tpu.memref_slice %arg2[%389, %c0_i32_374] : memref<100x128xf32, #tpu.memory_space<any>> -> memref<1x128xf32, #tpu.memory_space<any>>
    %c5_i32_375 = arith.constant 5 : i32
    %c0_i32_376 = arith.constant 0 : i32
    %391 = tpu.memref_slice %arg8[%c6_i32_371, %c5_i32_375, %c0_i32_376] : memref<8x8x128xf32, #tpu.memory_space<vmem>> -> memref<1x1x128xf32, #tpu.memory_space<vmem>>
    %392 = tpu.memref_squeeze %391 : memref<1x1x128xf32, #tpu.memory_space<vmem>> -> memref<1x128xf32, #tpu.memory_space<vmem>>
    %393 = tpu.memref_slice %arg9[%c6_i32_372, %c5_i32_373] : memref<8x8x!tpu.dma_semaphore, #tpu.memory_space<semaphore_mem>> -> memref<1x1x!tpu.dma_semaphore, #tpu.memory_space<semaphore_mem>>
    %394 = tpu.memref_squeeze %393 : memref<1x1x!tpu.dma_semaphore, #tpu.memory_space<semaphore_mem>> -> memref<!tpu.dma_semaphore, #tpu.memory_space<semaphore_mem>>
    tpu.enqueue_dma source(%390 : memref<1x128xf32, #tpu.memory_space<any>>) target(%392 : memref<1x128xf32, #tpu.memory_space<vmem>>) target_semaphore(%394 : memref<!tpu.dma_semaphore, #tpu.memory_space<semaphore_mem>>)
    %395 = arith.index_cast %352 : i32 to index
    %c6_377 = arith.constant 6 : index
    %396 = memref.load %arg1[%395, %c6_377] : memref<8x8xi32, #tpu.memory_space<smem>>
    %c6_i32_378 = arith.constant 6 : i32
    %c6_i32_379 = arith.constant 6 : i32
    %c6_i32_380 = arith.constant 6 : i32
    %c0_i32_381 = arith.constant 0 : i32
    %397 = tpu.memref_slice %arg2[%396, %c0_i32_381] : memref<100x128xf32, #tpu.memory_space<any>> -> memref<1x128xf32, #tpu.memory_space<any>>
    %c6_i32_382 = arith.constant 6 : i32
    %c0_i32_383 = arith.constant 0 : i32
    %398 = tpu.memref_slice %arg8[%c6_i32_378, %c6_i32_382, %c0_i32_383] : memref<8x8x128xf32, #tpu.memory_space<vmem>> -> memref<1x1x128xf32, #tpu.memory_space<vmem>>
    %399 = tpu.memref_squeeze %398 : memref<1x1x128xf32, #tpu.memory_space<vmem>> -> memref<1x128xf32, #tpu.memory_space<vmem>>
    %400 = tpu.memref_slice %arg9[%c6_i32_379, %c6_i32_380] : memref<8x8x!tpu.dma_semaphore, #tpu.memory_space<semaphore_mem>> -> memref<1x1x!tpu.dma_semaphore, #tpu.memory_space<semaphore_mem>>
    %401 = tpu.memref_squeeze %400 : memref<1x1x!tpu.dma_semaphore, #tpu.memory_space<semaphore_mem>> -> memref<!tpu.dma_semaphore, #tpu.memory_space<semaphore_mem>>
    tpu.enqueue_dma source(%397 : memref<1x128xf32, #tpu.memory_space<any>>) target(%399 : memref<1x128xf32, #tpu.memory_space<vmem>>) target_semaphore(%401 : memref<!tpu.dma_semaphore, #tpu.memory_space<semaphore_mem>>)
    %402 = arith.index_cast %352 : i32 to index
    %c7_384 = arith.constant 7 : index
    %403 = memref.load %arg1[%402, %c7_384] : memref<8x8xi32, #tpu.memory_space<smem>>
    %c6_i32_385 = arith.constant 6 : i32
    %c6_i32_386 = arith.constant 6 : i32
    %c7_i32_387 = arith.constant 7 : i32
    %c0_i32_388 = arith.constant 0 : i32
    %404 = tpu.memref_slice %arg2[%403, %c0_i32_388] : memref<100x128xf32, #tpu.memory_space<any>> -> memref<1x128xf32, #tpu.memory_space<any>>
    %c7_i32_389 = arith.constant 7 : i32
    %c0_i32_390 = arith.constant 0 : i32
    %405 = tpu.memref_slice %arg8[%c6_i32_385, %c7_i32_389, %c0_i32_390] : memref<8x8x128xf32, #tpu.memory_space<vmem>> -> memref<1x1x128xf32, #tpu.memory_space<vmem>>
    %406 = tpu.memref_squeeze %405 : memref<1x1x128xf32, #tpu.memory_space<vmem>> -> memref<1x128xf32, #tpu.memory_space<vmem>>
    %407 = tpu.memref_slice %arg9[%c6_i32_386, %c7_i32_387] : memref<8x8x!tpu.dma_semaphore, #tpu.memory_space<semaphore_mem>> -> memref<1x1x!tpu.dma_semaphore, #tpu.memory_space<semaphore_mem>>
    %408 = tpu.memref_squeeze %407 : memref<1x1x!tpu.dma_semaphore, #tpu.memory_space<semaphore_mem>> -> memref<!tpu.dma_semaphore, #tpu.memory_space<semaphore_mem>>
    tpu.enqueue_dma source(%404 : memref<1x128xf32, #tpu.memory_space<any>>) target(%406 : memref<1x128xf32, #tpu.memory_space<vmem>>) target_semaphore(%408 : memref<!tpu.dma_semaphore, #tpu.memory_space<semaphore_mem>>)
    %c8_i32_391 = arith.constant 8 : i32
    %409 = arith.muli %arg0, %c8_i32_391 : i32
    %c7_i32_392 = arith.constant 7 : i32
    %410 = arith.addi %409, %c7_i32_392 : i32
    %411 = arith.index_cast %410 : i32 to index
    %c0_393 = arith.constant 0 : index
    %412 = memref.load %arg1[%411, %c0_393] : memref<8x8xi32, #tpu.memory_space<smem>>
    %c7_i32_394 = arith.constant 7 : i32
    %c7_i32_395 = arith.constant 7 : i32
    %c0_i32_396 = arith.constant 0 : i32
    %c0_i32_397 = arith.constant 0 : i32
    %413 = tpu.memref_slice %arg2[%412, %c0_i32_397] : memref<100x128xf32, #tpu.memory_space<any>> -> memref<1x128xf32, #tpu.memory_space<any>>
    %c0_i32_398 = arith.constant 0 : i32
    %c0_i32_399 = arith.constant 0 : i32
    %414 = tpu.memref_slice %arg8[%c7_i32_394, %c0_i32_398, %c0_i32_399] : memref<8x8x128xf32, #tpu.memory_space<vmem>> -> memref<1x1x128xf32, #tpu.memory_space<vmem>>
    %415 = tpu.memref_squeeze %414 : memref<1x1x128xf32, #tpu.memory_space<vmem>> -> memref<1x128xf32, #tpu.memory_space<vmem>>
    %416 = tpu.memref_slice %arg9[%c7_i32_395, %c0_i32_396] : memref<8x8x!tpu.dma_semaphore, #tpu.memory_space<semaphore_mem>> -> memref<1x1x!tpu.dma_semaphore, #tpu.memory_space<semaphore_mem>>
    %417 = tpu.memref_squeeze %416 : memref<1x1x!tpu.dma_semaphore, #tpu.memory_space<semaphore_mem>> -> memref<!tpu.dma_semaphore, #tpu.memory_space<semaphore_mem>>
    tpu.enqueue_dma source(%413 : memref<1x128xf32, #tpu.memory_space<any>>) target(%415 : memref<1x128xf32, #tpu.memory_space<vmem>>) target_semaphore(%417 : memref<!tpu.dma_semaphore, #tpu.memory_space<semaphore_mem>>)
    %418 = arith.index_cast %410 : i32 to index
    %c1_400 = arith.constant 1 : index
    %419 = memref.load %arg1[%418, %c1_400] : memref<8x8xi32, #tpu.memory_space<smem>>
    %c7_i32_401 = arith.constant 7 : i32
    %c7_i32_402 = arith.constant 7 : i32
    %c1_i32_403 = arith.constant 1 : i32
    %c0_i32_404 = arith.constant 0 : i32
    %420 = tpu.memref_slice %arg2[%419, %c0_i32_404] : memref<100x128xf32, #tpu.memory_space<any>> -> memref<1x128xf32, #tpu.memory_space<any>>
    %c1_i32_405 = arith.constant 1 : i32
    %c0_i32_406 = arith.constant 0 : i32
    %421 = tpu.memref_slice %arg8[%c7_i32_401, %c1_i32_405, %c0_i32_406] : memref<8x8x128xf32, #tpu.memory_space<vmem>> -> memref<1x1x128xf32, #tpu.memory_space<vmem>>
    %422 = tpu.memref_squeeze %421 : memref<1x1x128xf32, #tpu.memory_space<vmem>> -> memref<1x128xf32, #tpu.memory_space<vmem>>
    %423 = tpu.memref_slice %arg9[%c7_i32_402, %c1_i32_403] : memref<8x8x!tpu.dma_semaphore, #tpu.memory_space<semaphore_mem>> -> memref<1x1x!tpu.dma_semaphore, #tpu.memory_space<semaphore_mem>>
    %424 = tpu.memref_squeeze %423 : memref<1x1x!tpu.dma_semaphore, #tpu.memory_space<semaphore_mem>> -> memref<!tpu.dma_semaphore, #tpu.memory_space<semaphore_mem>>
    tpu.enqueue_dma source(%420 : memref<1x128xf32, #tpu.memory_space<any>>) target(%422 : memref<1x128xf32, #tpu.memory_space<vmem>>) target_semaphore(%424 : memref<!tpu.dma_semaphore, #tpu.memory_space<semaphore_mem>>)
    %425 = arith.index_cast %410 : i32 to index
    %c2_407 = arith.constant 2 : index
    %426 = memref.load %arg1[%425, %c2_407] : memref<8x8xi32, #tpu.memory_space<smem>>
    %c7_i32_408 = arith.constant 7 : i32
    %c7_i32_409 = arith.constant 7 : i32
    %c2_i32_410 = arith.constant 2 : i32
    %c0_i32_411 = arith.constant 0 : i32
    %427 = tpu.memref_slice %arg2[%426, %c0_i32_411] : memref<100x128xf32, #tpu.memory_space<any>> -> memref<1x128xf32, #tpu.memory_space<any>>
    %c2_i32_412 = arith.constant 2 : i32
    %c0_i32_413 = arith.constant 0 : i32
    %428 = tpu.memref_slice %arg8[%c7_i32_408, %c2_i32_412, %c0_i32_413] : memref<8x8x128xf32, #tpu.memory_space<vmem>> -> memref<1x1x128xf32, #tpu.memory_space<vmem>>
    %429 = tpu.memref_squeeze %428 : memref<1x1x128xf32, #tpu.memory_space<vmem>> -> memref<1x128xf32, #tpu.memory_space<vmem>>
    %430 = tpu.memref_slice %arg9[%c7_i32_409, %c2_i32_410] : memref<8x8x!tpu.dma_semaphore, #tpu.memory_space<semaphore_mem>> -> memref<1x1x!tpu.dma_semaphore, #tpu.memory_space<semaphore_mem>>
    %431 = tpu.memref_squeeze %430 : memref<1x1x!tpu.dma_semaphore, #tpu.memory_space<semaphore_mem>> -> memref<!tpu.dma_semaphore, #tpu.memory_space<semaphore_mem>>
    tpu.enqueue_dma source(%427 : memref<1x128xf32, #tpu.memory_space<any>>) target(%429 : memref<1x128xf32, #tpu.memory_space<vmem>>) target_semaphore(%431 : memref<!tpu.dma_semaphore, #tpu.memory_space<semaphore_mem>>)
    %432 = arith.index_cast %410 : i32 to index
    %c3_414 = arith.constant 3 : index
    %433 = memref.load %arg1[%432, %c3_414] : memref<8x8xi32, #tpu.memory_space<smem>>
    %c7_i32_415 = arith.constant 7 : i32
    %c7_i32_416 = arith.constant 7 : i32
    %c3_i32_417 = arith.constant 3 : i32
    %c0_i32_418 = arith.constant 0 : i32
    %434 = tpu.memref_slice %arg2[%433, %c0_i32_418] : memref<100x128xf32, #tpu.memory_space<any>> -> memref<1x128xf32, #tpu.memory_space<any>>
    %c3_i32_419 = arith.constant 3 : i32
    %c0_i32_420 = arith.constant 0 : i32
    %435 = tpu.memref_slice %arg8[%c7_i32_415, %c3_i32_419, %c0_i32_420] : memref<8x8x128xf32, #tpu.memory_space<vmem>> -> memref<1x1x128xf32, #tpu.memory_space<vmem>>
    %436 = tpu.memref_squeeze %435 : memref<1x1x128xf32, #tpu.memory_space<vmem>> -> memref<1x128xf32, #tpu.memory_space<vmem>>
    %437 = tpu.memref_slice %arg9[%c7_i32_416, %c3_i32_417] : memref<8x8x!tpu.dma_semaphore, #tpu.memory_space<semaphore_mem>> -> memref<1x1x!tpu.dma_semaphore, #tpu.memory_space<semaphore_mem>>
    %438 = tpu.memref_squeeze %437 : memref<1x1x!tpu.dma_semaphore, #tpu.memory_space<semaphore_mem>> -> memref<!tpu.dma_semaphore, #tpu.memory_space<semaphore_mem>>
    tpu.enqueue_dma source(%434 : memref<1x128xf32, #tpu.memory_space<any>>) target(%436 : memref<1x128xf32, #tpu.memory_space<vmem>>) target_semaphore(%438 : memref<!tpu.dma_semaphore, #tpu.memory_space<semaphore_mem>>)
    %439 = arith.index_cast %410 : i32 to index
    %c4_421 = arith.constant 4 : index
    %440 = memref.load %arg1[%439, %c4_421] : memref<8x8xi32, #tpu.memory_space<smem>>
    %c7_i32_422 = arith.constant 7 : i32
    %c7_i32_423 = arith.constant 7 : i32
    %c4_i32_424 = arith.constant 4 : i32
    %c0_i32_425 = arith.constant 0 : i32
    %441 = tpu.memref_slice %arg2[%440, %c0_i32_425] : memref<100x128xf32, #tpu.memory_space<any>> -> memref<1x128xf32, #tpu.memory_space<any>>
    %c4_i32_426 = arith.constant 4 : i32
    %c0_i32_427 = arith.constant 0 : i32
    %442 = tpu.memref_slice %arg8[%c7_i32_422, %c4_i32_426, %c0_i32_427] : memref<8x8x128xf32, #tpu.memory_space<vmem>> -> memref<1x1x128xf32, #tpu.memory_space<vmem>>
    %443 = tpu.memref_squeeze %442 : memref<1x1x128xf32, #tpu.memory_space<vmem>> -> memref<1x128xf32, #tpu.memory_space<vmem>>
    %444 = tpu.memref_slice %arg9[%c7_i32_423, %c4_i32_424] : memref<8x8x!tpu.dma_semaphore, #tpu.memory_space<semaphore_mem>> -> memref<1x1x!tpu.dma_semaphore, #tpu.memory_space<semaphore_mem>>
    %445 = tpu.memref_squeeze %444 : memref<1x1x!tpu.dma_semaphore, #tpu.memory_space<semaphore_mem>> -> memref<!tpu.dma_semaphore, #tpu.memory_space<semaphore_mem>>
    tpu.enqueue_dma source(%441 : memref<1x128xf32, #tpu.memory_space<any>>) target(%443 : memref<1x128xf32, #tpu.memory_space<vmem>>) target_semaphore(%445 : memref<!tpu.dma_semaphore, #tpu.memory_space<semaphore_mem>>)
    %446 = arith.index_cast %410 : i32 to index
    %c5_428 = arith.constant 5 : index
    %447 = memref.load %arg1[%446, %c5_428] : memref<8x8xi32, #tpu.memory_space<smem>>
    %c7_i32_429 = arith.constant 7 : i32
    %c7_i32_430 = arith.constant 7 : i32
    %c5_i32_431 = arith.constant 5 : i32
    %c0_i32_432 = arith.constant 0 : i32
    %448 = tpu.memref_slice %arg2[%447, %c0_i32_432] : memref<100x128xf32, #tpu.memory_space<any>> -> memref<1x128xf32, #tpu.memory_space<any>>
    %c5_i32_433 = arith.constant 5 : i32
    %c0_i32_434 = arith.constant 0 : i32
    %449 = tpu.memref_slice %arg8[%c7_i32_429, %c5_i32_433, %c0_i32_434] : memref<8x8x128xf32, #tpu.memory_space<vmem>> -> memref<1x1x128xf32, #tpu.memory_space<vmem>>
    %450 = tpu.memref_squeeze %449 : memref<1x1x128xf32, #tpu.memory_space<vmem>> -> memref<1x128xf32, #tpu.memory_space<vmem>>
    %451 = tpu.memref_slice %arg9[%c7_i32_430, %c5_i32_431] : memref<8x8x!tpu.dma_semaphore, #tpu.memory_space<semaphore_mem>> -> memref<1x1x!tpu.dma_semaphore, #tpu.memory_space<semaphore_mem>>
    %452 = tpu.memref_squeeze %451 : memref<1x1x!tpu.dma_semaphore, #tpu.memory_space<semaphore_mem>> -> memref<!tpu.dma_semaphore, #tpu.memory_space<semaphore_mem>>
    tpu.enqueue_dma source(%448 : memref<1x128xf32, #tpu.memory_space<any>>) target(%450 : memref<1x128xf32, #tpu.memory_space<vmem>>) target_semaphore(%452 : memref<!tpu.dma_semaphore, #tpu.memory_space<semaphore_mem>>)
    %453 = arith.index_cast %410 : i32 to index
    %c6_435 = arith.constant 6 : index
    %454 = memref.load %arg1[%453, %c6_435] : memref<8x8xi32, #tpu.memory_space<smem>>
    %c7_i32_436 = arith.constant 7 : i32
    %c7_i32_437 = arith.constant 7 : i32
    %c6_i32_438 = arith.constant 6 : i32
    %c0_i32_439 = arith.constant 0 : i32
    %455 = tpu.memref_slice %arg2[%454, %c0_i32_439] : memref<100x128xf32, #tpu.memory_space<any>> -> memref<1x128xf32, #tpu.memory_space<any>>
    %c6_i32_440 = arith.constant 6 : i32
    %c0_i32_441 = arith.constant 0 : i32
    %456 = tpu.memref_slice %arg8[%c7_i32_436, %c6_i32_440, %c0_i32_441] : memref<8x8x128xf32, #tpu.memory_space<vmem>> -> memref<1x1x128xf32, #tpu.memory_space<vmem>>
    %457 = tpu.memref_squeeze %456 : memref<1x1x128xf32, #tpu.memory_space<vmem>> -> memref<1x128xf32, #tpu.memory_space<vmem>>
    %458 = tpu.memref_slice %arg9[%c7_i32_437, %c6_i32_438] : memref<8x8x!tpu.dma_semaphore, #tpu.memory_space<semaphore_mem>> -> memref<1x1x!tpu.dma_semaphore, #tpu.memory_space<semaphore_mem>>
    %459 = tpu.memref_squeeze %458 : memref<1x1x!tpu.dma_semaphore, #tpu.memory_space<semaphore_mem>> -> memref<!tpu.dma_semaphore, #tpu.memory_space<semaphore_mem>>
    tpu.enqueue_dma source(%455 : memref<1x128xf32, #tpu.memory_space<any>>) target(%457 : memref<1x128xf32, #tpu.memory_space<vmem>>) target_semaphore(%459 : memref<!tpu.dma_semaphore, #tpu.memory_space<semaphore_mem>>)
    %460 = arith.index_cast %410 : i32 to index
    %c7_442 = arith.constant 7 : index
    %461 = memref.load %arg1[%460, %c7_442] : memref<8x8xi32, #tpu.memory_space<smem>>
    %c7_i32_443 = arith.constant 7 : i32
    %c7_i32_444 = arith.constant 7 : i32
    %c7_i32_445 = arith.constant 7 : i32
    %c0_i32_446 = arith.constant 0 : i32
    %462 = tpu.memref_slice %arg2[%461, %c0_i32_446] : memref<100x128xf32, #tpu.memory_space<any>> -> memref<1x128xf32, #tpu.memory_space<any>>
    %c7_i32_447 = arith.constant 7 : i32
    %c0_i32_448 = arith.constant 0 : i32
    %463 = tpu.memref_slice %arg8[%c7_i32_443, %c7_i32_447, %c0_i32_448] : memref<8x8x128xf32, #tpu.memory_space<vmem>> -> memref<1x1x128xf32, #tpu.memory_space<vmem>>
    %464 = tpu.memref_squeeze %463 : memref<1x1x128xf32, #tpu.memory_space<vmem>> -> memref<1x128xf32, #tpu.memory_space<vmem>>
    %465 = tpu.memref_slice %arg9[%c7_i32_444, %c7_i32_445] : memref<8x8x!tpu.dma_semaphore, #tpu.memory_space<semaphore_mem>> -> memref<1x1x!tpu.dma_semaphore, #tpu.memory_space<semaphore_mem>>
    %466 = tpu.memref_squeeze %465 : memref<1x1x!tpu.dma_semaphore, #tpu.memory_space<semaphore_mem>> -> memref<!tpu.dma_semaphore, #tpu.memory_space<semaphore_mem>>
    tpu.enqueue_dma source(%462 : memref<1x128xf32, #tpu.memory_space<any>>) target(%464 : memref<1x128xf32, #tpu.memory_space<vmem>>) target_semaphore(%466 : memref<!tpu.dma_semaphore, #tpu.memory_space<semaphore_mem>>)
    %c0_i32_449 = arith.constant 0 : i32
    %c0_i32_450 = arith.constant 0 : i32
    %c0_i32_451 = arith.constant 0 : i32
    %c0_i32_452 = arith.constant 0 : i32
    %467 = tpu.memref_slice %arg2[%6, %c0_i32_452] : memref<100x128xf32, #tpu.memory_space<any>> -> memref<1x128xf32, #tpu.memory_space<any>>
    %c0_i32_453 = arith.constant 0 : i32
    %c0_i32_454 = arith.constant 0 : i32
    %468 = tpu.memref_slice %arg8[%c0_i32_449, %c0_i32_453, %c0_i32_454] : memref<8x8x128xf32, #tpu.memory_space<vmem>> -> memref<1x1x128xf32, #tpu.memory_space<vmem>>
    %469 = tpu.memref_squeeze %468 : memref<1x1x128xf32, #tpu.memory_space<vmem>> -> memref<1x128xf32, #tpu.memory_space<vmem>>
    %470 = tpu.memref_slice %arg9[%c0_i32_450, %c0_i32_451] : memref<8x8x!tpu.dma_semaphore, #tpu.memory_space<semaphore_mem>> -> memref<1x1x!tpu.dma_semaphore, #tpu.memory_space<semaphore_mem>>
    %471 = tpu.memref_squeeze %470 : memref<1x1x!tpu.dma_semaphore, #tpu.memory_space<semaphore_mem>> -> memref<!tpu.dma_semaphore, #tpu.memory_space<semaphore_mem>>
    tpu.wait_dma2 semaphore(%471 : memref<!tpu.dma_semaphore, #tpu.memory_space<semaphore_mem>>) src(%467 : memref<1x128xf32, #tpu.memory_space<any>>) dst(%469 : memref<1x128xf32, #tpu.memory_space<vmem>>)
    %c0_i32_455 = arith.constant 0 : i32
    %c0_i32_456 = arith.constant 0 : i32
    %c1_i32_457 = arith.constant 1 : i32
    %c0_i32_458 = arith.constant 0 : i32
    %472 = tpu.memref_slice %arg2[%13, %c0_i32_458] : memref<100x128xf32, #tpu.memory_space<any>> -> memref<1x128xf32, #tpu.memory_space<any>>
    %c1_i32_459 = arith.constant 1 : i32
    %c0_i32_460 = arith.constant 0 : i32
    %473 = tpu.memref_slice %arg8[%c0_i32_455, %c1_i32_459, %c0_i32_460] : memref<8x8x128xf32, #tpu.memory_space<vmem>> -> memref<1x1x128xf32, #tpu.memory_space<vmem>>
    %474 = tpu.memref_squeeze %473 : memref<1x1x128xf32, #tpu.memory_space<vmem>> -> memref<1x128xf32, #tpu.memory_space<vmem>>
    %475 = tpu.memref_slice %arg9[%c0_i32_456, %c1_i32_457] : memref<8x8x!tpu.dma_semaphore, #tpu.memory_space<semaphore_mem>> -> memref<1x1x!tpu.dma_semaphore, #tpu.memory_space<semaphore_mem>>
    %476 = tpu.memref_squeeze %475 : memref<1x1x!tpu.dma_semaphore, #tpu.memory_space<semaphore_mem>> -> memref<!tpu.dma_semaphore, #tpu.memory_space<semaphore_mem>>
    tpu.wait_dma2 semaphore(%476 : memref<!tpu.dma_semaphore, #tpu.memory_space<semaphore_mem>>) src(%472 : memref<1x128xf32, #tpu.memory_space<any>>) dst(%474 : memref<1x128xf32, #tpu.memory_space<vmem>>)
    %c0_i32_461 = arith.constant 0 : i32
    %c0_i32_462 = arith.constant 0 : i32
    %c2_i32_463 = arith.constant 2 : i32
    %c0_i32_464 = arith.constant 0 : i32
    %477 = tpu.memref_slice %arg2[%20, %c0_i32_464] : memref<100x128xf32, #tpu.memory_space<any>> -> memref<1x128xf32, #tpu.memory_space<any>>
    %c2_i32_465 = arith.constant 2 : i32
    %c0_i32_466 = arith.constant 0 : i32
    %478 = tpu.memref_slice %arg8[%c0_i32_461, %c2_i32_465, %c0_i32_466] : memref<8x8x128xf32, #tpu.memory_space<vmem>> -> memref<1x1x128xf32, #tpu.memory_space<vmem>>
    %479 = tpu.memref_squeeze %478 : memref<1x1x128xf32, #tpu.memory_space<vmem>> -> memref<1x128xf32, #tpu.memory_space<vmem>>
    %480 = tpu.memref_slice %arg9[%c0_i32_462, %c2_i32_463] : memref<8x8x!tpu.dma_semaphore, #tpu.memory_space<semaphore_mem>> -> memref<1x1x!tpu.dma_semaphore, #tpu.memory_space<semaphore_mem>>
    %481 = tpu.memref_squeeze %480 : memref<1x1x!tpu.dma_semaphore, #tpu.memory_space<semaphore_mem>> -> memref<!tpu.dma_semaphore, #tpu.memory_space<semaphore_mem>>
    tpu.wait_dma2 semaphore(%481 : memref<!tpu.dma_semaphore, #tpu.memory_space<semaphore_mem>>) src(%477 : memref<1x128xf32, #tpu.memory_space<any>>) dst(%479 : memref<1x128xf32, #tpu.memory_space<vmem>>)
    %c0_i32_467 = arith.constant 0 : i32
    %c0_i32_468 = arith.constant 0 : i32
    %c3_i32_469 = arith.constant 3 : i32
    %c0_i32_470 = arith.constant 0 : i32
    %482 = tpu.memref_slice %arg2[%27, %c0_i32_470] : memref<100x128xf32, #tpu.memory_space<any>> -> memref<1x128xf32, #tpu.memory_space<any>>
    %c3_i32_471 = arith.constant 3 : i32
    %c0_i32_472 = arith.constant 0 : i32
    %483 = tpu.memref_slice %arg8[%c0_i32_467, %c3_i32_471, %c0_i32_472] : memref<8x8x128xf32, #tpu.memory_space<vmem>> -> memref<1x1x128xf32, #tpu.memory_space<vmem>>
    %484 = tpu.memref_squeeze %483 : memref<1x1x128xf32, #tpu.memory_space<vmem>> -> memref<1x128xf32, #tpu.memory_space<vmem>>
    %485 = tpu.memref_slice %arg9[%c0_i32_468, %c3_i32_469] : memref<8x8x!tpu.dma_semaphore, #tpu.memory_space<semaphore_mem>> -> memref<1x1x!tpu.dma_semaphore, #tpu.memory_space<semaphore_mem>>
    %486 = tpu.memref_squeeze %485 : memref<1x1x!tpu.dma_semaphore, #tpu.memory_space<semaphore_mem>> -> memref<!tpu.dma_semaphore, #tpu.memory_space<semaphore_mem>>
    tpu.wait_dma2 semaphore(%486 : memref<!tpu.dma_semaphore, #tpu.memory_space<semaphore_mem>>) src(%482 : memref<1x128xf32, #tpu.memory_space<any>>) dst(%484 : memref<1x128xf32, #tpu.memory_space<vmem>>)
    %c0_i32_473 = arith.constant 0 : i32
    %c0_i32_474 = arith.constant 0 : i32
    %c4_i32_475 = arith.constant 4 : i32
    %c0_i32_476 = arith.constant 0 : i32
    %487 = tpu.memref_slice %arg2[%34, %c0_i32_476] : memref<100x128xf32, #tpu.memory_space<any>> -> memref<1x128xf32, #tpu.memory_space<any>>
    %c4_i32_477 = arith.constant 4 : i32
    %c0_i32_478 = arith.constant 0 : i32
    %488 = tpu.memref_slice %arg8[%c0_i32_473, %c4_i32_477, %c0_i32_478] : memref<8x8x128xf32, #tpu.memory_space<vmem>> -> memref<1x1x128xf32, #tpu.memory_space<vmem>>
    %489 = tpu.memref_squeeze %488 : memref<1x1x128xf32, #tpu.memory_space<vmem>> -> memref<1x128xf32, #tpu.memory_space<vmem>>
    %490 = tpu.memref_slice %arg9[%c0_i32_474, %c4_i32_475] : memref<8x8x!tpu.dma_semaphore, #tpu.memory_space<semaphore_mem>> -> memref<1x1x!tpu.dma_semaphore, #tpu.memory_space<semaphore_mem>>
    %491 = tpu.memref_squeeze %490 : memref<1x1x!tpu.dma_semaphore, #tpu.memory_space<semaphore_mem>> -> memref<!tpu.dma_semaphore, #tpu.memory_space<semaphore_mem>>
    tpu.wait_dma2 semaphore(%491 : memref<!tpu.dma_semaphore, #tpu.memory_space<semaphore_mem>>) src(%487 : memref<1x128xf32, #tpu.memory_space<any>>) dst(%489 : memref<1x128xf32, #tpu.memory_space<vmem>>)
    %c0_i32_479 = arith.constant 0 : i32
    %c0_i32_480 = arith.constant 0 : i32
    %c5_i32_481 = arith.constant 5 : i32
    %c0_i32_482 = arith.constant 0 : i32
    %492 = tpu.memref_slice %arg2[%41, %c0_i32_482] : memref<100x128xf32, #tpu.memory_space<any>> -> memref<1x128xf32, #tpu.memory_space<any>>
    %c5_i32_483 = arith.constant 5 : i32
    %c0_i32_484 = arith.constant 0 : i32
    %493 = tpu.memref_slice %arg8[%c0_i32_479, %c5_i32_483, %c0_i32_484] : memref<8x8x128xf32, #tpu.memory_space<vmem>> -> memref<1x1x128xf32, #tpu.memory_space<vmem>>
    %494 = tpu.memref_squeeze %493 : memref<1x1x128xf32, #tpu.memory_space<vmem>> -> memref<1x128xf32, #tpu.memory_space<vmem>>
    %495 = tpu.memref_slice %arg9[%c0_i32_480, %c5_i32_481] : memref<8x8x!tpu.dma_semaphore, #tpu.memory_space<semaphore_mem>> -> memref<1x1x!tpu.dma_semaphore, #tpu.memory_space<semaphore_mem>>
    %496 = tpu.memref_squeeze %495 : memref<1x1x!tpu.dma_semaphore, #tpu.memory_space<semaphore_mem>> -> memref<!tpu.dma_semaphore, #tpu.memory_space<semaphore_mem>>
    tpu.wait_dma2 semaphore(%496 : memref<!tpu.dma_semaphore, #tpu.memory_space<semaphore_mem>>) src(%492 : memref<1x128xf32, #tpu.memory_space<any>>) dst(%494 : memref<1x128xf32, #tpu.memory_space<vmem>>)
    %c0_i32_485 = arith.constant 0 : i32
    %c0_i32_486 = arith.constant 0 : i32
    %c6_i32_487 = arith.constant 6 : i32
    %c0_i32_488 = arith.constant 0 : i32
    %497 = tpu.memref_slice %arg2[%48, %c0_i32_488] : memref<100x128xf32, #tpu.memory_space<any>> -> memref<1x128xf32, #tpu.memory_space<any>>
    %c6_i32_489 = arith.constant 6 : i32
    %c0_i32_490 = arith.constant 0 : i32
    %498 = tpu.memref_slice %arg8[%c0_i32_485, %c6_i32_489, %c0_i32_490] : memref<8x8x128xf32, #tpu.memory_space<vmem>> -> memref<1x1x128xf32, #tpu.memory_space<vmem>>
    %499 = tpu.memref_squeeze %498 : memref<1x1x128xf32, #tpu.memory_space<vmem>> -> memref<1x128xf32, #tpu.memory_space<vmem>>
    %500 = tpu.memref_slice %arg9[%c0_i32_486, %c6_i32_487] : memref<8x8x!tpu.dma_semaphore, #tpu.memory_space<semaphore_mem>> -> memref<1x1x!tpu.dma_semaphore, #tpu.memory_space<semaphore_mem>>
    %501 = tpu.memref_squeeze %500 : memref<1x1x!tpu.dma_semaphore, #tpu.memory_space<semaphore_mem>> -> memref<!tpu.dma_semaphore, #tpu.memory_space<semaphore_mem>>
    tpu.wait_dma2 semaphore(%501 : memref<!tpu.dma_semaphore, #tpu.memory_space<semaphore_mem>>) src(%497 : memref<1x128xf32, #tpu.memory_space<any>>) dst(%499 : memref<1x128xf32, #tpu.memory_space<vmem>>)
    %c0_i32_491 = arith.constant 0 : i32
    %c0_i32_492 = arith.constant 0 : i32
    %c7_i32_493 = arith.constant 7 : i32
    %c0_i32_494 = arith.constant 0 : i32
    %502 = tpu.memref_slice %arg2[%55, %c0_i32_494] : memref<100x128xf32, #tpu.memory_space<any>> -> memref<1x128xf32, #tpu.memory_space<any>>
    %c7_i32_495 = arith.constant 7 : i32
    %c0_i32_496 = arith.constant 0 : i32
    %503 = tpu.memref_slice %arg8[%c0_i32_491, %c7_i32_495, %c0_i32_496] : memref<8x8x128xf32, #tpu.memory_space<vmem>> -> memref<1x1x128xf32, #tpu.memory_space<vmem>>
    %504 = tpu.memref_squeeze %503 : memref<1x1x128xf32, #tpu.memory_space<vmem>> -> memref<1x128xf32, #tpu.memory_space<vmem>>
    %505 = tpu.memref_slice %arg9[%c0_i32_492, %c7_i32_493] : memref<8x8x!tpu.dma_semaphore, #tpu.memory_space<semaphore_mem>> -> memref<1x1x!tpu.dma_semaphore, #tpu.memory_space<semaphore_mem>>
    %506 = tpu.memref_squeeze %505 : memref<1x1x!tpu.dma_semaphore, #tpu.memory_space<semaphore_mem>> -> memref<!tpu.dma_semaphore, #tpu.memory_space<semaphore_mem>>
    tpu.wait_dma2 semaphore(%506 : memref<!tpu.dma_semaphore, #tpu.memory_space<semaphore_mem>>) src(%502 : memref<1x128xf32, #tpu.memory_space<any>>) dst(%504 : memref<1x128xf32, #tpu.memory_space<vmem>>)
    %c1_i32_497 = arith.constant 1 : i32
    %c1_i32_498 = arith.constant 1 : i32
    %c0_i32_499 = arith.constant 0 : i32
    %c0_i32_500 = arith.constant 0 : i32
    %507 = tpu.memref_slice %arg2[%64, %c0_i32_500] : memref<100x128xf32, #tpu.memory_space<any>> -> memref<1x128xf32, #tpu.memory_space<any>>
    %c0_i32_501 = arith.constant 0 : i32
    %c0_i32_502 = arith.constant 0 : i32
    %508 = tpu.memref_slice %arg8[%c1_i32_497, %c0_i32_501, %c0_i32_502] : memref<8x8x128xf32, #tpu.memory_space<vmem>> -> memref<1x1x128xf32, #tpu.memory_space<vmem>>
    %509 = tpu.memref_squeeze %508 : memref<1x1x128xf32, #tpu.memory_space<vmem>> -> memref<1x128xf32, #tpu.memory_space<vmem>>
    %510 = tpu.memref_slice %arg9[%c1_i32_498, %c0_i32_499] : memref<8x8x!tpu.dma_semaphore, #tpu.memory_space<semaphore_mem>> -> memref<1x1x!tpu.dma_semaphore, #tpu.memory_space<semaphore_mem>>
    %511 = tpu.memref_squeeze %510 : memref<1x1x!tpu.dma_semaphore, #tpu.memory_space<semaphore_mem>> -> memref<!tpu.dma_semaphore, #tpu.memory_space<semaphore_mem>>
    tpu.wait_dma2 semaphore(%511 : memref<!tpu.dma_semaphore, #tpu.memory_space<semaphore_mem>>) src(%507 : memref<1x128xf32, #tpu.memory_space<any>>) dst(%509 : memref<1x128xf32, #tpu.memory_space<vmem>>)
    %c1_i32_503 = arith.constant 1 : i32
    %c1_i32_504 = arith.constant 1 : i32
    %c1_i32_505 = arith.constant 1 : i32
    %c0_i32_506 = arith.constant 0 : i32
    %512 = tpu.memref_slice %arg2[%71, %c0_i32_506] : memref<100x128xf32, #tpu.memory_space<any>> -> memref<1x128xf32, #tpu.memory_space<any>>
    %c1_i32_507 = arith.constant 1 : i32
    %c0_i32_508 = arith.constant 0 : i32
    %513 = tpu.memref_slice %arg8[%c1_i32_503, %c1_i32_507, %c0_i32_508] : memref<8x8x128xf32, #tpu.memory_space<vmem>> -> memref<1x1x128xf32, #tpu.memory_space<vmem>>
    %514 = tpu.memref_squeeze %513 : memref<1x1x128xf32, #tpu.memory_space<vmem>> -> memref<1x128xf32, #tpu.memory_space<vmem>>
    %515 = tpu.memref_slice %arg9[%c1_i32_504, %c1_i32_505] : memref<8x8x!tpu.dma_semaphore, #tpu.memory_space<semaphore_mem>> -> memref<1x1x!tpu.dma_semaphore, #tpu.memory_space<semaphore_mem>>
    %516 = tpu.memref_squeeze %515 : memref<1x1x!tpu.dma_semaphore, #tpu.memory_space<semaphore_mem>> -> memref<!tpu.dma_semaphore, #tpu.memory_space<semaphore_mem>>
    tpu.wait_dma2 semaphore(%516 : memref<!tpu.dma_semaphore, #tpu.memory_space<semaphore_mem>>) src(%512 : memref<1x128xf32, #tpu.memory_space<any>>) dst(%514 : memref<1x128xf32, #tpu.memory_space<vmem>>)
    %c1_i32_509 = arith.constant 1 : i32
    %c1_i32_510 = arith.constant 1 : i32
    %c2_i32_511 = arith.constant 2 : i32
    %c0_i32_512 = arith.constant 0 : i32
    %517 = tpu.memref_slice %arg2[%78, %c0_i32_512] : memref<100x128xf32, #tpu.memory_space<any>> -> memref<1x128xf32, #tpu.memory_space<any>>
    %c2_i32_513 = arith.constant 2 : i32
    %c0_i32_514 = arith.constant 0 : i32
    %518 = tpu.memref_slice %arg8[%c1_i32_509, %c2_i32_513, %c0_i32_514] : memref<8x8x128xf32, #tpu.memory_space<vmem>> -> memref<1x1x128xf32, #tpu.memory_space<vmem>>
    %519 = tpu.memref_squeeze %518 : memref<1x1x128xf32, #tpu.memory_space<vmem>> -> memref<1x128xf32, #tpu.memory_space<vmem>>
    %520 = tpu.memref_slice %arg9[%c1_i32_510, %c2_i32_511] : memref<8x8x!tpu.dma_semaphore, #tpu.memory_space<semaphore_mem>> -> memref<1x1x!tpu.dma_semaphore, #tpu.memory_space<semaphore_mem>>
    %521 = tpu.memref_squeeze %520 : memref<1x1x!tpu.dma_semaphore, #tpu.memory_space<semaphore_mem>> -> memref<!tpu.dma_semaphore, #tpu.memory_space<semaphore_mem>>
    tpu.wait_dma2 semaphore(%521 : memref<!tpu.dma_semaphore, #tpu.memory_space<semaphore_mem>>) src(%517 : memref<1x128xf32, #tpu.memory_space<any>>) dst(%519 : memref<1x128xf32, #tpu.memory_space<vmem>>)
    %c1_i32_515 = arith.constant 1 : i32
    %c1_i32_516 = arith.constant 1 : i32
    %c3_i32_517 = arith.constant 3 : i32
    %c0_i32_518 = arith.constant 0 : i32
    %522 = tpu.memref_slice %arg2[%85, %c0_i32_518] : memref<100x128xf32, #tpu.memory_space<any>> -> memref<1x128xf32, #tpu.memory_space<any>>
    %c3_i32_519 = arith.constant 3 : i32
    %c0_i32_520 = arith.constant 0 : i32
    %523 = tpu.memref_slice %arg8[%c1_i32_515, %c3_i32_519, %c0_i32_520] : memref<8x8x128xf32, #tpu.memory_space<vmem>> -> memref<1x1x128xf32, #tpu.memory_space<vmem>>
    %524 = tpu.memref_squeeze %523 : memref<1x1x128xf32, #tpu.memory_space<vmem>> -> memref<1x128xf32, #tpu.memory_space<vmem>>
    %525 = tpu.memref_slice %arg9[%c1_i32_516, %c3_i32_517] : memref<8x8x!tpu.dma_semaphore, #tpu.memory_space<semaphore_mem>> -> memref<1x1x!tpu.dma_semaphore, #tpu.memory_space<semaphore_mem>>
    %526 = tpu.memref_squeeze %525 : memref<1x1x!tpu.dma_semaphore, #tpu.memory_space<semaphore_mem>> -> memref<!tpu.dma_semaphore, #tpu.memory_space<semaphore_mem>>
    tpu.wait_dma2 semaphore(%526 : memref<!tpu.dma_semaphore, #tpu.memory_space<semaphore_mem>>) src(%522 : memref<1x128xf32, #tpu.memory_space<any>>) dst(%524 : memref<1x128xf32, #tpu.memory_space<vmem>>)
    %c1_i32_521 = arith.constant 1 : i32
    %c1_i32_522 = arith.constant 1 : i32
    %c4_i32_523 = arith.constant 4 : i32
    %c0_i32_524 = arith.constant 0 : i32
    %527 = tpu.memref_slice %arg2[%92, %c0_i32_524] : memref<100x128xf32, #tpu.memory_space<any>> -> memref<1x128xf32, #tpu.memory_space<any>>
    %c4_i32_525 = arith.constant 4 : i32
    %c0_i32_526 = arith.constant 0 : i32
    %528 = tpu.memref_slice %arg8[%c1_i32_521, %c4_i32_525, %c0_i32_526] : memref<8x8x128xf32, #tpu.memory_space<vmem>> -> memref<1x1x128xf32, #tpu.memory_space<vmem>>
    %529 = tpu.memref_squeeze %528 : memref<1x1x128xf32, #tpu.memory_space<vmem>> -> memref<1x128xf32, #tpu.memory_space<vmem>>
    %530 = tpu.memref_slice %arg9[%c1_i32_522, %c4_i32_523] : memref<8x8x!tpu.dma_semaphore, #tpu.memory_space<semaphore_mem>> -> memref<1x1x!tpu.dma_semaphore, #tpu.memory_space<semaphore_mem>>
    %531 = tpu.memref_squeeze %530 : memref<1x1x!tpu.dma_semaphore, #tpu.memory_space<semaphore_mem>> -> memref<!tpu.dma_semaphore, #tpu.memory_space<semaphore_mem>>
    tpu.wait_dma2 semaphore(%531 : memref<!tpu.dma_semaphore, #tpu.memory_space<semaphore_mem>>) src(%527 : memref<1x128xf32, #tpu.memory_space<any>>) dst(%529 : memref<1x128xf32, #tpu.memory_space<vmem>>)
    %c1_i32_527 = arith.constant 1 : i32
    %c1_i32_528 = arith.constant 1 : i32
    %c5_i32_529 = arith.constant 5 : i32
    %c0_i32_530 = arith.constant 0 : i32
    %532 = tpu.memref_slice %arg2[%99, %c0_i32_530] : memref<100x128xf32, #tpu.memory_space<any>> -> memref<1x128xf32, #tpu.memory_space<any>>
    %c5_i32_531 = arith.constant 5 : i32
    %c0_i32_532 = arith.constant 0 : i32
    %533 = tpu.memref_slice %arg8[%c1_i32_527, %c5_i32_531, %c0_i32_532] : memref<8x8x128xf32, #tpu.memory_space<vmem>> -> memref<1x1x128xf32, #tpu.memory_space<vmem>>
    %534 = tpu.memref_squeeze %533 : memref<1x1x128xf32, #tpu.memory_space<vmem>> -> memref<1x128xf32, #tpu.memory_space<vmem>>
    %535 = tpu.memref_slice %arg9[%c1_i32_528, %c5_i32_529] : memref<8x8x!tpu.dma_semaphore, #tpu.memory_space<semaphore_mem>> -> memref<1x1x!tpu.dma_semaphore, #tpu.memory_space<semaphore_mem>>
    %536 = tpu.memref_squeeze %535 : memref<1x1x!tpu.dma_semaphore, #tpu.memory_space<semaphore_mem>> -> memref<!tpu.dma_semaphore, #tpu.memory_space<semaphore_mem>>
    tpu.wait_dma2 semaphore(%536 : memref<!tpu.dma_semaphore, #tpu.memory_space<semaphore_mem>>) src(%532 : memref<1x128xf32, #tpu.memory_space<any>>) dst(%534 : memref<1x128xf32, #tpu.memory_space<vmem>>)
    %c1_i32_533 = arith.constant 1 : i32
    %c1_i32_534 = arith.constant 1 : i32
    %c6_i32_535 = arith.constant 6 : i32
    %c0_i32_536 = arith.constant 0 : i32
    %537 = tpu.memref_slice %arg2[%106, %c0_i32_536] : memref<100x128xf32, #tpu.memory_space<any>> -> memref<1x128xf32, #tpu.memory_space<any>>
    %c6_i32_537 = arith.constant 6 : i32
    %c0_i32_538 = arith.constant 0 : i32
    %538 = tpu.memref_slice %arg8[%c1_i32_533, %c6_i32_537, %c0_i32_538] : memref<8x8x128xf32, #tpu.memory_space<vmem>> -> memref<1x1x128xf32, #tpu.memory_space<vmem>>
    %539 = tpu.memref_squeeze %538 : memref<1x1x128xf32, #tpu.memory_space<vmem>> -> memref<1x128xf32, #tpu.memory_space<vmem>>
    %540 = tpu.memref_slice %arg9[%c1_i32_534, %c6_i32_535] : memref<8x8x!tpu.dma_semaphore, #tpu.memory_space<semaphore_mem>> -> memref<1x1x!tpu.dma_semaphore, #tpu.memory_space<semaphore_mem>>
    %541 = tpu.memref_squeeze %540 : memref<1x1x!tpu.dma_semaphore, #tpu.memory_space<semaphore_mem>> -> memref<!tpu.dma_semaphore, #tpu.memory_space<semaphore_mem>>
    tpu.wait_dma2 semaphore(%541 : memref<!tpu.dma_semaphore, #tpu.memory_space<semaphore_mem>>) src(%537 : memref<1x128xf32, #tpu.memory_space<any>>) dst(%539 : memref<1x128xf32, #tpu.memory_space<vmem>>)
    %c1_i32_539 = arith.constant 1 : i32
    %c1_i32_540 = arith.constant 1 : i32
    %c7_i32_541 = arith.constant 7 : i32
    %c0_i32_542 = arith.constant 0 : i32
    %542 = tpu.memref_slice %arg2[%113, %c0_i32_542] : memref<100x128xf32, #tpu.memory_space<any>> -> memref<1x128xf32, #tpu.memory_space<any>>
    %c7_i32_543 = arith.constant 7 : i32
    %c0_i32_544 = arith.constant 0 : i32
    %543 = tpu.memref_slice %arg8[%c1_i32_539, %c7_i32_543, %c0_i32_544] : memref<8x8x128xf32, #tpu.memory_space<vmem>> -> memref<1x1x128xf32, #tpu.memory_space<vmem>>
    %544 = tpu.memref_squeeze %543 : memref<1x1x128xf32, #tpu.memory_space<vmem>> -> memref<1x128xf32, #tpu.memory_space<vmem>>
    %545 = tpu.memref_slice %arg9[%c1_i32_540, %c7_i32_541] : memref<8x8x!tpu.dma_semaphore, #tpu.memory_space<semaphore_mem>> -> memref<1x1x!tpu.dma_semaphore, #tpu.memory_space<semaphore_mem>>
    %546 = tpu.memref_squeeze %545 : memref<1x1x!tpu.dma_semaphore, #tpu.memory_space<semaphore_mem>> -> memref<!tpu.dma_semaphore, #tpu.memory_space<semaphore_mem>>
    tpu.wait_dma2 semaphore(%546 : memref<!tpu.dma_semaphore, #tpu.memory_space<semaphore_mem>>) src(%542 : memref<1x128xf32, #tpu.memory_space<any>>) dst(%544 : memref<1x128xf32, #tpu.memory_space<vmem>>)
    %c2_i32_545 = arith.constant 2 : i32
    %c2_i32_546 = arith.constant 2 : i32
    %c0_i32_547 = arith.constant 0 : i32
    %c0_i32_548 = arith.constant 0 : i32
    %547 = tpu.memref_slice %arg2[%122, %c0_i32_548] : memref<100x128xf32, #tpu.memory_space<any>> -> memref<1x128xf32, #tpu.memory_space<any>>
    %c0_i32_549 = arith.constant 0 : i32
    %c0_i32_550 = arith.constant 0 : i32
    %548 = tpu.memref_slice %arg8[%c2_i32_545, %c0_i32_549, %c0_i32_550] : memref<8x8x128xf32, #tpu.memory_space<vmem>> -> memref<1x1x128xf32, #tpu.memory_space<vmem>>
    %549 = tpu.memref_squeeze %548 : memref<1x1x128xf32, #tpu.memory_space<vmem>> -> memref<1x128xf32, #tpu.memory_space<vmem>>
    %550 = tpu.memref_slice %arg9[%c2_i32_546, %c0_i32_547] : memref<8x8x!tpu.dma_semaphore, #tpu.memory_space<semaphore_mem>> -> memref<1x1x!tpu.dma_semaphore, #tpu.memory_space<semaphore_mem>>
    %551 = tpu.memref_squeeze %550 : memref<1x1x!tpu.dma_semaphore, #tpu.memory_space<semaphore_mem>> -> memref<!tpu.dma_semaphore, #tpu.memory_space<semaphore_mem>>
    tpu.wait_dma2 semaphore(%551 : memref<!tpu.dma_semaphore, #tpu.memory_space<semaphore_mem>>) src(%547 : memref<1x128xf32, #tpu.memory_space<any>>) dst(%549 : memref<1x128xf32, #tpu.memory_space<vmem>>)
    %c2_i32_551 = arith.constant 2 : i32
    %c2_i32_552 = arith.constant 2 : i32
    %c1_i32_553 = arith.constant 1 : i32
    %c0_i32_554 = arith.constant 0 : i32
    %552 = tpu.memref_slice %arg2[%129, %c0_i32_554] : memref<100x128xf32, #tpu.memory_space<any>> -> memref<1x128xf32, #tpu.memory_space<any>>
    %c1_i32_555 = arith.constant 1 : i32
    %c0_i32_556 = arith.constant 0 : i32
    %553 = tpu.memref_slice %arg8[%c2_i32_551, %c1_i32_555, %c0_i32_556] : memref<8x8x128xf32, #tpu.memory_space<vmem>> -> memref<1x1x128xf32, #tpu.memory_space<vmem>>
    %554 = tpu.memref_squeeze %553 : memref<1x1x128xf32, #tpu.memory_space<vmem>> -> memref<1x128xf32, #tpu.memory_space<vmem>>
    %555 = tpu.memref_slice %arg9[%c2_i32_552, %c1_i32_553] : memref<8x8x!tpu.dma_semaphore, #tpu.memory_space<semaphore_mem>> -> memref<1x1x!tpu.dma_semaphore, #tpu.memory_space<semaphore_mem>>
    %556 = tpu.memref_squeeze %555 : memref<1x1x!tpu.dma_semaphore, #tpu.memory_space<semaphore_mem>> -> memref<!tpu.dma_semaphore, #tpu.memory_space<semaphore_mem>>
    tpu.wait_dma2 semaphore(%556 : memref<!tpu.dma_semaphore, #tpu.memory_space<semaphore_mem>>) src(%552 : memref<1x128xf32, #tpu.memory_space<any>>) dst(%554 : memref<1x128xf32, #tpu.memory_space<vmem>>)
    %c2_i32_557 = arith.constant 2 : i32
    %c2_i32_558 = arith.constant 2 : i32
    %c2_i32_559 = arith.constant 2 : i32
    %c0_i32_560 = arith.constant 0 : i32
    %557 = tpu.memref_slice %arg2[%136, %c0_i32_560] : memref<100x128xf32, #tpu.memory_space<any>> -> memref<1x128xf32, #tpu.memory_space<any>>
    %c2_i32_561 = arith.constant 2 : i32
    %c0_i32_562 = arith.constant 0 : i32
    %558 = tpu.memref_slice %arg8[%c2_i32_557, %c2_i32_561, %c0_i32_562] : memref<8x8x128xf32, #tpu.memory_space<vmem>> -> memref<1x1x128xf32, #tpu.memory_space<vmem>>
    %559 = tpu.memref_squeeze %558 : memref<1x1x128xf32, #tpu.memory_space<vmem>> -> memref<1x128xf32, #tpu.memory_space<vmem>>
    %560 = tpu.memref_slice %arg9[%c2_i32_558, %c2_i32_559] : memref<8x8x!tpu.dma_semaphore, #tpu.memory_space<semaphore_mem>> -> memref<1x1x!tpu.dma_semaphore, #tpu.memory_space<semaphore_mem>>
    %561 = tpu.memref_squeeze %560 : memref<1x1x!tpu.dma_semaphore, #tpu.memory_space<semaphore_mem>> -> memref<!tpu.dma_semaphore, #tpu.memory_space<semaphore_mem>>
    tpu.wait_dma2 semaphore(%561 : memref<!tpu.dma_semaphore, #tpu.memory_space<semaphore_mem>>) src(%557 : memref<1x128xf32, #tpu.memory_space<any>>) dst(%559 : memref<1x128xf32, #tpu.memory_space<vmem>>)
    %c2_i32_563 = arith.constant 2 : i32
    %c2_i32_564 = arith.constant 2 : i32
    %c3_i32_565 = arith.constant 3 : i32
    %c0_i32_566 = arith.constant 0 : i32
    %562 = tpu.memref_slice %arg2[%143, %c0_i32_566] : memref<100x128xf32, #tpu.memory_space<any>> -> memref<1x128xf32, #tpu.memory_space<any>>
    %c3_i32_567 = arith.constant 3 : i32
    %c0_i32_568 = arith.constant 0 : i32
    %563 = tpu.memref_slice %arg8[%c2_i32_563, %c3_i32_567, %c0_i32_568] : memref<8x8x128xf32, #tpu.memory_space<vmem>> -> memref<1x1x128xf32, #tpu.memory_space<vmem>>
    %564 = tpu.memref_squeeze %563 : memref<1x1x128xf32, #tpu.memory_space<vmem>> -> memref<1x128xf32, #tpu.memory_space<vmem>>
    %565 = tpu.memref_slice %arg9[%c2_i32_564, %c3_i32_565] : memref<8x8x!tpu.dma_semaphore, #tpu.memory_space<semaphore_mem>> -> memref<1x1x!tpu.dma_semaphore, #tpu.memory_space<semaphore_mem>>
    %566 = tpu.memref_squeeze %565 : memref<1x1x!tpu.dma_semaphore, #tpu.memory_space<semaphore_mem>> -> memref<!tpu.dma_semaphore, #tpu.memory_space<semaphore_mem>>
    tpu.wait_dma2 semaphore(%566 : memref<!tpu.dma_semaphore, #tpu.memory_space<semaphore_mem>>) src(%562 : memref<1x128xf32, #tpu.memory_space<any>>) dst(%564 : memref<1x128xf32, #tpu.memory_space<vmem>>)
    %c2_i32_569 = arith.constant 2 : i32
    %c2_i32_570 = arith.constant 2 : i32
    %c4_i32_571 = arith.constant 4 : i32
    %c0_i32_572 = arith.constant 0 : i32
    %567 = tpu.memref_slice %arg2[%150, %c0_i32_572] : memref<100x128xf32, #tpu.memory_space<any>> -> memref<1x128xf32, #tpu.memory_space<any>>
    %c4_i32_573 = arith.constant 4 : i32
    %c0_i32_574 = arith.constant 0 : i32
    %568 = tpu.memref_slice %arg8[%c2_i32_569, %c4_i32_573, %c0_i32_574] : memref<8x8x128xf32, #tpu.memory_space<vmem>> -> memref<1x1x128xf32, #tpu.memory_space<vmem>>
    %569 = tpu.memref_squeeze %568 : memref<1x1x128xf32, #tpu.memory_space<vmem>> -> memref<1x128xf32, #tpu.memory_space<vmem>>
    %570 = tpu.memref_slice %arg9[%c2_i32_570, %c4_i32_571] : memref<8x8x!tpu.dma_semaphore, #tpu.memory_space<semaphore_mem>> -> memref<1x1x!tpu.dma_semaphore, #tpu.memory_space<semaphore_mem>>
    %571 = tpu.memref_squeeze %570 : memref<1x1x!tpu.dma_semaphore, #tpu.memory_space<semaphore_mem>> -> memref<!tpu.dma_semaphore, #tpu.memory_space<semaphore_mem>>
    tpu.wait_dma2 semaphore(%571 : memref<!tpu.dma_semaphore, #tpu.memory_space<semaphore_mem>>) src(%567 : memref<1x128xf32, #tpu.memory_space<any>>) dst(%569 : memref<1x128xf32, #tpu.memory_space<vmem>>)
    %c2_i32_575 = arith.constant 2 : i32
    %c2_i32_576 = arith.constant 2 : i32
    %c5_i32_577 = arith.constant 5 : i32
    %c0_i32_578 = arith.constant 0 : i32
    %572 = tpu.memref_slice %arg2[%157, %c0_i32_578] : memref<100x128xf32, #tpu.memory_space<any>> -> memref<1x128xf32, #tpu.memory_space<any>>
    %c5_i32_579 = arith.constant 5 : i32
    %c0_i32_580 = arith.constant 0 : i32
    %573 = tpu.memref_slice %arg8[%c2_i32_575, %c5_i32_579, %c0_i32_580] : memref<8x8x128xf32, #tpu.memory_space<vmem>> -> memref<1x1x128xf32, #tpu.memory_space<vmem>>
    %574 = tpu.memref_squeeze %573 : memref<1x1x128xf32, #tpu.memory_space<vmem>> -> memref<1x128xf32, #tpu.memory_space<vmem>>
    %575 = tpu.memref_slice %arg9[%c2_i32_576, %c5_i32_577] : memref<8x8x!tpu.dma_semaphore, #tpu.memory_space<semaphore_mem>> -> memref<1x1x!tpu.dma_semaphore, #tpu.memory_space<semaphore_mem>>
    %576 = tpu.memref_squeeze %575 : memref<1x1x!tpu.dma_semaphore, #tpu.memory_space<semaphore_mem>> -> memref<!tpu.dma_semaphore, #tpu.memory_space<semaphore_mem>>
    tpu.wait_dma2 semaphore(%576 : memref<!tpu.dma_semaphore, #tpu.memory_space<semaphore_mem>>) src(%572 : memref<1x128xf32, #tpu.memory_space<any>>) dst(%574 : memref<1x128xf32, #tpu.memory_space<vmem>>)
    %c2_i32_581 = arith.constant 2 : i32
    %c2_i32_582 = arith.constant 2 : i32
    %c6_i32_583 = arith.constant 6 : i32
    %c0_i32_584 = arith.constant 0 : i32
    %577 = tpu.memref_slice %arg2[%164, %c0_i32_584] : memref<100x128xf32, #tpu.memory_space<any>> -> memref<1x128xf32, #tpu.memory_space<any>>
    %c6_i32_585 = arith.constant 6 : i32
    %c0_i32_586 = arith.constant 0 : i32
    %578 = tpu.memref_slice %arg8[%c2_i32_581, %c6_i32_585, %c0_i32_586] : memref<8x8x128xf32, #tpu.memory_space<vmem>> -> memref<1x1x128xf32, #tpu.memory_space<vmem>>
    %579 = tpu.memref_squeeze %578 : memref<1x1x128xf32, #tpu.memory_space<vmem>> -> memref<1x128xf32, #tpu.memory_space<vmem>>
    %580 = tpu.memref_slice %arg9[%c2_i32_582, %c6_i32_583] : memref<8x8x!tpu.dma_semaphore, #tpu.memory_space<semaphore_mem>> -> memref<1x1x!tpu.dma_semaphore, #tpu.memory_space<semaphore_mem>>
    %581 = tpu.memref_squeeze %580 : memref<1x1x!tpu.dma_semaphore, #tpu.memory_space<semaphore_mem>> -> memref<!tpu.dma_semaphore, #tpu.memory_space<semaphore_mem>>
    tpu.wait_dma2 semaphore(%581 : memref<!tpu.dma_semaphore, #tpu.memory_space<semaphore_mem>>) src(%577 : memref<1x128xf32, #tpu.memory_space<any>>) dst(%579 : memref<1x128xf32, #tpu.memory_space<vmem>>)
    %c2_i32_587 = arith.constant 2 : i32
    %c2_i32_588 = arith.constant 2 : i32
    %c7_i32_589 = arith.constant 7 : i32
    %c0_i32_590 = arith.constant 0 : i32
    %582 = tpu.memref_slice %arg2[%171, %c0_i32_590] : memref<100x128xf32, #tpu.memory_space<any>> -> memref<1x128xf32, #tpu.memory_space<any>>
    %c7_i32_591 = arith.constant 7 : i32
    %c0_i32_592 = arith.constant 0 : i32
    %583 = tpu.memref_slice %arg8[%c2_i32_587, %c7_i32_591, %c0_i32_592] : memref<8x8x128xf32, #tpu.memory_space<vmem>> -> memref<1x1x128xf32, #tpu.memory_space<vmem>>
    %584 = tpu.memref_squeeze %583 : memref<1x1x128xf32, #tpu.memory_space<vmem>> -> memref<1x128xf32, #tpu.memory_space<vmem>>
    %585 = tpu.memref_slice %arg9[%c2_i32_588, %c7_i32_589] : memref<8x8x!tpu.dma_semaphore, #tpu.memory_space<semaphore_mem>> -> memref<1x1x!tpu.dma_semaphore, #tpu.memory_space<semaphore_mem>>
    %586 = tpu.memref_squeeze %585 : memref<1x1x!tpu.dma_semaphore, #tpu.memory_space<semaphore_mem>> -> memref<!tpu.dma_semaphore, #tpu.memory_space<semaphore_mem>>
    tpu.wait_dma2 semaphore(%586 : memref<!tpu.dma_semaphore, #tpu.memory_space<semaphore_mem>>) src(%582 : memref<1x128xf32, #tpu.memory_space<any>>) dst(%584 : memref<1x128xf32, #tpu.memory_space<vmem>>)
    %c3_i32_593 = arith.constant 3 : i32
    %c3_i32_594 = arith.constant 3 : i32
    %c0_i32_595 = arith.constant 0 : i32
    %c0_i32_596 = arith.constant 0 : i32
    %587 = tpu.memref_slice %arg2[%180, %c0_i32_596] : memref<100x128xf32, #tpu.memory_space<any>> -> memref<1x128xf32, #tpu.memory_space<any>>
    %c0_i32_597 = arith.constant 0 : i32
    %c0_i32_598 = arith.constant 0 : i32
    %588 = tpu.memref_slice %arg8[%c3_i32_593, %c0_i32_597, %c0_i32_598] : memref<8x8x128xf32, #tpu.memory_space<vmem>> -> memref<1x1x128xf32, #tpu.memory_space<vmem>>
    %589 = tpu.memref_squeeze %588 : memref<1x1x128xf32, #tpu.memory_space<vmem>> -> memref<1x128xf32, #tpu.memory_space<vmem>>
    %590 = tpu.memref_slice %arg9[%c3_i32_594, %c0_i32_595] : memref<8x8x!tpu.dma_semaphore, #tpu.memory_space<semaphore_mem>> -> memref<1x1x!tpu.dma_semaphore, #tpu.memory_space<semaphore_mem>>
    %591 = tpu.memref_squeeze %590 : memref<1x1x!tpu.dma_semaphore, #tpu.memory_space<semaphore_mem>> -> memref<!tpu.dma_semaphore, #tpu.memory_space<semaphore_mem>>
    tpu.wait_dma2 semaphore(%591 : memref<!tpu.dma_semaphore, #tpu.memory_space<semaphore_mem>>) src(%587 : memref<1x128xf32, #tpu.memory_space<any>>) dst(%589 : memref<1x128xf32, #tpu.memory_space<vmem>>)
    %c3_i32_599 = arith.constant 3 : i32
    %c3_i32_600 = arith.constant 3 : i32
    %c1_i32_601 = arith.constant 1 : i32
    %c0_i32_602 = arith.constant 0 : i32
    %592 = tpu.memref_slice %arg2[%187, %c0_i32_602] : memref<100x128xf32, #tpu.memory_space<any>> -> memref<1x128xf32, #tpu.memory_space<any>>
    %c1_i32_603 = arith.constant 1 : i32
    %c0_i32_604 = arith.constant 0 : i32
    %593 = tpu.memref_slice %arg8[%c3_i32_599, %c1_i32_603, %c0_i32_604] : memref<8x8x128xf32, #tpu.memory_space<vmem>> -> memref<1x1x128xf32, #tpu.memory_space<vmem>>
    %594 = tpu.memref_squeeze %593 : memref<1x1x128xf32, #tpu.memory_space<vmem>> -> memref<1x128xf32, #tpu.memory_space<vmem>>
    %595 = tpu.memref_slice %arg9[%c3_i32_600, %c1_i32_601] : memref<8x8x!tpu.dma_semaphore, #tpu.memory_space<semaphore_mem>> -> memref<1x1x!tpu.dma_semaphore, #tpu.memory_space<semaphore_mem>>
    %596 = tpu.memref_squeeze %595 : memref<1x1x!tpu.dma_semaphore, #tpu.memory_space<semaphore_mem>> -> memref<!tpu.dma_semaphore, #tpu.memory_space<semaphore_mem>>
    tpu.wait_dma2 semaphore(%596 : memref<!tpu.dma_semaphore, #tpu.memory_space<semaphore_mem>>) src(%592 : memref<1x128xf32, #tpu.memory_space<any>>) dst(%594 : memref<1x128xf32, #tpu.memory_space<vmem>>)
    %c3_i32_605 = arith.constant 3 : i32
    %c3_i32_606 = arith.constant 3 : i32
    %c2_i32_607 = arith.constant 2 : i32
    %c0_i32_608 = arith.constant 0 : i32
    %597 = tpu.memref_slice %arg2[%194, %c0_i32_608] : memref<100x128xf32, #tpu.memory_space<any>> -> memref<1x128xf32, #tpu.memory_space<any>>
    %c2_i32_609 = arith.constant 2 : i32
    %c0_i32_610 = arith.constant 0 : i32
    %598 = tpu.memref_slice %arg8[%c3_i32_605, %c2_i32_609, %c0_i32_610] : memref<8x8x128xf32, #tpu.memory_space<vmem>> -> memref<1x1x128xf32, #tpu.memory_space<vmem>>
    %599 = tpu.memref_squeeze %598 : memref<1x1x128xf32, #tpu.memory_space<vmem>> -> memref<1x128xf32, #tpu.memory_space<vmem>>
    %600 = tpu.memref_slice %arg9[%c3_i32_606, %c2_i32_607] : memref<8x8x!tpu.dma_semaphore, #tpu.memory_space<semaphore_mem>> -> memref<1x1x!tpu.dma_semaphore, #tpu.memory_space<semaphore_mem>>
    %601 = tpu.memref_squeeze %600 : memref<1x1x!tpu.dma_semaphore, #tpu.memory_space<semaphore_mem>> -> memref<!tpu.dma_semaphore, #tpu.memory_space<semaphore_mem>>
    tpu.wait_dma2 semaphore(%601 : memref<!tpu.dma_semaphore, #tpu.memory_space<semaphore_mem>>) src(%597 : memref<1x128xf32, #tpu.memory_space<any>>) dst(%599 : memref<1x128xf32, #tpu.memory_space<vmem>>)
    %c3_i32_611 = arith.constant 3 : i32
    %c3_i32_612 = arith.constant 3 : i32
    %c3_i32_613 = arith.constant 3 : i32
    %c0_i32_614 = arith.constant 0 : i32
    %602 = tpu.memref_slice %arg2[%201, %c0_i32_614] : memref<100x128xf32, #tpu.memory_space<any>> -> memref<1x128xf32, #tpu.memory_space<any>>
    %c3_i32_615 = arith.constant 3 : i32
    %c0_i32_616 = arith.constant 0 : i32
    %603 = tpu.memref_slice %arg8[%c3_i32_611, %c3_i32_615, %c0_i32_616] : memref<8x8x128xf32, #tpu.memory_space<vmem>> -> memref<1x1x128xf32, #tpu.memory_space<vmem>>
    %604 = tpu.memref_squeeze %603 : memref<1x1x128xf32, #tpu.memory_space<vmem>> -> memref<1x128xf32, #tpu.memory_space<vmem>>
    %605 = tpu.memref_slice %arg9[%c3_i32_612, %c3_i32_613] : memref<8x8x!tpu.dma_semaphore, #tpu.memory_space<semaphore_mem>> -> memref<1x1x!tpu.dma_semaphore, #tpu.memory_space<semaphore_mem>>
    %606 = tpu.memref_squeeze %605 : memref<1x1x!tpu.dma_semaphore, #tpu.memory_space<semaphore_mem>> -> memref<!tpu.dma_semaphore, #tpu.memory_space<semaphore_mem>>
    tpu.wait_dma2 semaphore(%606 : memref<!tpu.dma_semaphore, #tpu.memory_space<semaphore_mem>>) src(%602 : memref<1x128xf32, #tpu.memory_space<any>>) dst(%604 : memref<1x128xf32, #tpu.memory_space<vmem>>)
    %c3_i32_617 = arith.constant 3 : i32
    %c3_i32_618 = arith.constant 3 : i32
    %c4_i32_619 = arith.constant 4 : i32
    %c0_i32_620 = arith.constant 0 : i32
    %607 = tpu.memref_slice %arg2[%208, %c0_i32_620] : memref<100x128xf32, #tpu.memory_space<any>> -> memref<1x128xf32, #tpu.memory_space<any>>
    %c4_i32_621 = arith.constant 4 : i32
    %c0_i32_622 = arith.constant 0 : i32
    %608 = tpu.memref_slice %arg8[%c3_i32_617, %c4_i32_621, %c0_i32_622] : memref<8x8x128xf32, #tpu.memory_space<vmem>> -> memref<1x1x128xf32, #tpu.memory_space<vmem>>
    %609 = tpu.memref_squeeze %608 : memref<1x1x128xf32, #tpu.memory_space<vmem>> -> memref<1x128xf32, #tpu.memory_space<vmem>>
    %610 = tpu.memref_slice %arg9[%c3_i32_618, %c4_i32_619] : memref<8x8x!tpu.dma_semaphore, #tpu.memory_space<semaphore_mem>> -> memref<1x1x!tpu.dma_semaphore, #tpu.memory_space<semaphore_mem>>
    %611 = tpu.memref_squeeze %610 : memref<1x1x!tpu.dma_semaphore, #tpu.memory_space<semaphore_mem>> -> memref<!tpu.dma_semaphore, #tpu.memory_space<semaphore_mem>>
    tpu.wait_dma2 semaphore(%611 : memref<!tpu.dma_semaphore, #tpu.memory_space<semaphore_mem>>) src(%607 : memref<1x128xf32, #tpu.memory_space<any>>) dst(%609 : memref<1x128xf32, #tpu.memory_space<vmem>>)
    %c3_i32_623 = arith.constant 3 : i32
    %c3_i32_624 = arith.constant 3 : i32
    %c5_i32_625 = arith.constant 5 : i32
    %c0_i32_626 = arith.constant 0 : i32
    %612 = tpu.memref_slice %arg2[%215, %c0_i32_626] : memref<100x128xf32, #tpu.memory_space<any>> -> memref<1x128xf32, #tpu.memory_space<any>>
    %c5_i32_627 = arith.constant 5 : i32
    %c0_i32_628 = arith.constant 0 : i32
    %613 = tpu.memref_slice %arg8[%c3_i32_623, %c5_i32_627, %c0_i32_628] : memref<8x8x128xf32, #tpu.memory_space<vmem>> -> memref<1x1x128xf32, #tpu.memory_space<vmem>>
    %614 = tpu.memref_squeeze %613 : memref<1x1x128xf32, #tpu.memory_space<vmem>> -> memref<1x128xf32, #tpu.memory_space<vmem>>
    %615 = tpu.memref_slice %arg9[%c3_i32_624, %c5_i32_625] : memref<8x8x!tpu.dma_semaphore, #tpu.memory_space<semaphore_mem>> -> memref<1x1x!tpu.dma_semaphore, #tpu.memory_space<semaphore_mem>>
    %616 = tpu.memref_squeeze %615 : memref<1x1x!tpu.dma_semaphore, #tpu.memory_space<semaphore_mem>> -> memref<!tpu.dma_semaphore, #tpu.memory_space<semaphore_mem>>
    tpu.wait_dma2 semaphore(%616 : memref<!tpu.dma_semaphore, #tpu.memory_space<semaphore_mem>>) src(%612 : memref<1x128xf32, #tpu.memory_space<any>>) dst(%614 : memref<1x128xf32, #tpu.memory_space<vmem>>)
    %c3_i32_629 = arith.constant 3 : i32
    %c3_i32_630 = arith.constant 3 : i32
    %c6_i32_631 = arith.constant 6 : i32
    %c0_i32_632 = arith.constant 0 : i32
    %617 = tpu.memref_slice %arg2[%222, %c0_i32_632] : memref<100x128xf32, #tpu.memory_space<any>> -> memref<1x128xf32, #tpu.memory_space<any>>
    %c6_i32_633 = arith.constant 6 : i32
    %c0_i32_634 = arith.constant 0 : i32
    %618 = tpu.memref_slice %arg8[%c3_i32_629, %c6_i32_633, %c0_i32_634] : memref<8x8x128xf32, #tpu.memory_space<vmem>> -> memref<1x1x128xf32, #tpu.memory_space<vmem>>
    %619 = tpu.memref_squeeze %618 : memref<1x1x128xf32, #tpu.memory_space<vmem>> -> memref<1x128xf32, #tpu.memory_space<vmem>>
    %620 = tpu.memref_slice %arg9[%c3_i32_630, %c6_i32_631] : memref<8x8x!tpu.dma_semaphore, #tpu.memory_space<semaphore_mem>> -> memref<1x1x!tpu.dma_semaphore, #tpu.memory_space<semaphore_mem>>
    %621 = tpu.memref_squeeze %620 : memref<1x1x!tpu.dma_semaphore, #tpu.memory_space<semaphore_mem>> -> memref<!tpu.dma_semaphore, #tpu.memory_space<semaphore_mem>>
    tpu.wait_dma2 semaphore(%621 : memref<!tpu.dma_semaphore, #tpu.memory_space<semaphore_mem>>) src(%617 : memref<1x128xf32, #tpu.memory_space<any>>) dst(%619 : memref<1x128xf32, #tpu.memory_space<vmem>>)
    %c3_i32_635 = arith.constant 3 : i32
    %c3_i32_636 = arith.constant 3 : i32
    %c7_i32_637 = arith.constant 7 : i32
    %c0_i32_638 = arith.constant 0 : i32
    %622 = tpu.memref_slice %arg2[%229, %c0_i32_638] : memref<100x128xf32, #tpu.memory_space<any>> -> memref<1x128xf32, #tpu.memory_space<any>>
    %c7_i32_639 = arith.constant 7 : i32
    %c0_i32_640 = arith.constant 0 : i32
    %623 = tpu.memref_slice %arg8[%c3_i32_635, %c7_i32_639, %c0_i32_640] : memref<8x8x128xf32, #tpu.memory_space<vmem>> -> memref<1x1x128xf32, #tpu.memory_space<vmem>>
    %624 = tpu.memref_squeeze %623 : memref<1x1x128xf32, #tpu.memory_space<vmem>> -> memref<1x128xf32, #tpu.memory_space<vmem>>
    %625 = tpu.memref_slice %arg9[%c3_i32_636, %c7_i32_637] : memref<8x8x!tpu.dma_semaphore, #tpu.memory_space<semaphore_mem>> -> memref<1x1x!tpu.dma_semaphore, #tpu.memory_space<semaphore_mem>>
    %626 = tpu.memref_squeeze %625 : memref<1x1x!tpu.dma_semaphore, #tpu.memory_space<semaphore_mem>> -> memref<!tpu.dma_semaphore, #tpu.memory_space<semaphore_mem>>
    tpu.wait_dma2 semaphore(%626 : memref<!tpu.dma_semaphore, #tpu.memory_space<semaphore_mem>>) src(%622 : memref<1x128xf32, #tpu.memory_space<any>>) dst(%624 : memref<1x128xf32, #tpu.memory_space<vmem>>)
    %c4_i32_641 = arith.constant 4 : i32
    %c4_i32_642 = arith.constant 4 : i32
    %c0_i32_643 = arith.constant 0 : i32
    %c0_i32_644 = arith.constant 0 : i32
    %627 = tpu.memref_slice %arg2[%238, %c0_i32_644] : memref<100x128xf32, #tpu.memory_space<any>> -> memref<1x128xf32, #tpu.memory_space<any>>
    %c0_i32_645 = arith.constant 0 : i32
    %c0_i32_646 = arith.constant 0 : i32
    %628 = tpu.memref_slice %arg8[%c4_i32_641, %c0_i32_645, %c0_i32_646] : memref<8x8x128xf32, #tpu.memory_space<vmem>> -> memref<1x1x128xf32, #tpu.memory_space<vmem>>
    %629 = tpu.memref_squeeze %628 : memref<1x1x128xf32, #tpu.memory_space<vmem>> -> memref<1x128xf32, #tpu.memory_space<vmem>>
    %630 = tpu.memref_slice %arg9[%c4_i32_642, %c0_i32_643] : memref<8x8x!tpu.dma_semaphore, #tpu.memory_space<semaphore_mem>> -> memref<1x1x!tpu.dma_semaphore, #tpu.memory_space<semaphore_mem>>
    %631 = tpu.memref_squeeze %630 : memref<1x1x!tpu.dma_semaphore, #tpu.memory_space<semaphore_mem>> -> memref<!tpu.dma_semaphore, #tpu.memory_space<semaphore_mem>>
    tpu.wait_dma2 semaphore(%631 : memref<!tpu.dma_semaphore, #tpu.memory_space<semaphore_mem>>) src(%627 : memref<1x128xf32, #tpu.memory_space<any>>) dst(%629 : memref<1x128xf32, #tpu.memory_space<vmem>>)
    %c4_i32_647 = arith.constant 4 : i32
    %c4_i32_648 = arith.constant 4 : i32
    %c1_i32_649 = arith.constant 1 : i32
    %c0_i32_650 = arith.constant 0 : i32
    %632 = tpu.memref_slice %arg2[%245, %c0_i32_650] : memref<100x128xf32, #tpu.memory_space<any>> -> memref<1x128xf32, #tpu.memory_space<any>>
    %c1_i32_651 = arith.constant 1 : i32
    %c0_i32_652 = arith.constant 0 : i32
    %633 = tpu.memref_slice %arg8[%c4_i32_647, %c1_i32_651, %c0_i32_652] : memref<8x8x128xf32, #tpu.memory_space<vmem>> -> memref<1x1x128xf32, #tpu.memory_space<vmem>>
    %634 = tpu.memref_squeeze %633 : memref<1x1x128xf32, #tpu.memory_space<vmem>> -> memref<1x128xf32, #tpu.memory_space<vmem>>
    %635 = tpu.memref_slice %arg9[%c4_i32_648, %c1_i32_649] : memref<8x8x!tpu.dma_semaphore, #tpu.memory_space<semaphore_mem>> -> memref<1x1x!tpu.dma_semaphore, #tpu.memory_space<semaphore_mem>>
    %636 = tpu.memref_squeeze %635 : memref<1x1x!tpu.dma_semaphore, #tpu.memory_space<semaphore_mem>> -> memref<!tpu.dma_semaphore, #tpu.memory_space<semaphore_mem>>
    tpu.wait_dma2 semaphore(%636 : memref<!tpu.dma_semaphore, #tpu.memory_space<semaphore_mem>>) src(%632 : memref<1x128xf32, #tpu.memory_space<any>>) dst(%634 : memref<1x128xf32, #tpu.memory_space<vmem>>)
    %c4_i32_653 = arith.constant 4 : i32
    %c4_i32_654 = arith.constant 4 : i32
    %c2_i32_655 = arith.constant 2 : i32
    %c0_i32_656 = arith.constant 0 : i32
    %637 = tpu.memref_slice %arg2[%252, %c0_i32_656] : memref<100x128xf32, #tpu.memory_space<any>> -> memref<1x128xf32, #tpu.memory_space<any>>
    %c2_i32_657 = arith.constant 2 : i32
    %c0_i32_658 = arith.constant 0 : i32
    %638 = tpu.memref_slice %arg8[%c4_i32_653, %c2_i32_657, %c0_i32_658] : memref<8x8x128xf32, #tpu.memory_space<vmem>> -> memref<1x1x128xf32, #tpu.memory_space<vmem>>
    %639 = tpu.memref_squeeze %638 : memref<1x1x128xf32, #tpu.memory_space<vmem>> -> memref<1x128xf32, #tpu.memory_space<vmem>>
    %640 = tpu.memref_slice %arg9[%c4_i32_654, %c2_i32_655] : memref<8x8x!tpu.dma_semaphore, #tpu.memory_space<semaphore_mem>> -> memref<1x1x!tpu.dma_semaphore, #tpu.memory_space<semaphore_mem>>
    %641 = tpu.memref_squeeze %640 : memref<1x1x!tpu.dma_semaphore, #tpu.memory_space<semaphore_mem>> -> memref<!tpu.dma_semaphore, #tpu.memory_space<semaphore_mem>>
    tpu.wait_dma2 semaphore(%641 : memref<!tpu.dma_semaphore, #tpu.memory_space<semaphore_mem>>) src(%637 : memref<1x128xf32, #tpu.memory_space<any>>) dst(%639 : memref<1x128xf32, #tpu.memory_space<vmem>>)
    %c4_i32_659 = arith.constant 4 : i32
    %c4_i32_660 = arith.constant 4 : i32
    %c3_i32_661 = arith.constant 3 : i32
    %c0_i32_662 = arith.constant 0 : i32
    %642 = tpu.memref_slice %arg2[%259, %c0_i32_662] : memref<100x128xf32, #tpu.memory_space<any>> -> memref<1x128xf32, #tpu.memory_space<any>>
    %c3_i32_663 = arith.constant 3 : i32
    %c0_i32_664 = arith.constant 0 : i32
    %643 = tpu.memref_slice %arg8[%c4_i32_659, %c3_i32_663, %c0_i32_664] : memref<8x8x128xf32, #tpu.memory_space<vmem>> -> memref<1x1x128xf32, #tpu.memory_space<vmem>>
    %644 = tpu.memref_squeeze %643 : memref<1x1x128xf32, #tpu.memory_space<vmem>> -> memref<1x128xf32, #tpu.memory_space<vmem>>
    %645 = tpu.memref_slice %arg9[%c4_i32_660, %c3_i32_661] : memref<8x8x!tpu.dma_semaphore, #tpu.memory_space<semaphore_mem>> -> memref<1x1x!tpu.dma_semaphore, #tpu.memory_space<semaphore_mem>>
    %646 = tpu.memref_squeeze %645 : memref<1x1x!tpu.dma_semaphore, #tpu.memory_space<semaphore_mem>> -> memref<!tpu.dma_semaphore, #tpu.memory_space<semaphore_mem>>
    tpu.wait_dma2 semaphore(%646 : memref<!tpu.dma_semaphore, #tpu.memory_space<semaphore_mem>>) src(%642 : memref<1x128xf32, #tpu.memory_space<any>>) dst(%644 : memref<1x128xf32, #tpu.memory_space<vmem>>)
    %c4_i32_665 = arith.constant 4 : i32
    %c4_i32_666 = arith.constant 4 : i32
    %c4_i32_667 = arith.constant 4 : i32
    %c0_i32_668 = arith.constant 0 : i32
    %647 = tpu.memref_slice %arg2[%266, %c0_i32_668] : memref<100x128xf32, #tpu.memory_space<any>> -> memref<1x128xf32, #tpu.memory_space<any>>
    %c4_i32_669 = arith.constant 4 : i32
    %c0_i32_670 = arith.constant 0 : i32
    %648 = tpu.memref_slice %arg8[%c4_i32_665, %c4_i32_669, %c0_i32_670] : memref<8x8x128xf32, #tpu.memory_space<vmem>> -> memref<1x1x128xf32, #tpu.memory_space<vmem>>
    %649 = tpu.memref_squeeze %648 : memref<1x1x128xf32, #tpu.memory_space<vmem>> -> memref<1x128xf32, #tpu.memory_space<vmem>>
    %650 = tpu.memref_slice %arg9[%c4_i32_666, %c4_i32_667] : memref<8x8x!tpu.dma_semaphore, #tpu.memory_space<semaphore_mem>> -> memref<1x1x!tpu.dma_semaphore, #tpu.memory_space<semaphore_mem>>
    %651 = tpu.memref_squeeze %650 : memref<1x1x!tpu.dma_semaphore, #tpu.memory_space<semaphore_mem>> -> memref<!tpu.dma_semaphore, #tpu.memory_space<semaphore_mem>>
    tpu.wait_dma2 semaphore(%651 : memref<!tpu.dma_semaphore, #tpu.memory_space<semaphore_mem>>) src(%647 : memref<1x128xf32, #tpu.memory_space<any>>) dst(%649 : memref<1x128xf32, #tpu.memory_space<vmem>>)
    %c4_i32_671 = arith.constant 4 : i32
    %c4_i32_672 = arith.constant 4 : i32
    %c5_i32_673 = arith.constant 5 : i32
    %c0_i32_674 = arith.constant 0 : i32
    %652 = tpu.memref_slice %arg2[%273, %c0_i32_674] : memref<100x128xf32, #tpu.memory_space<any>> -> memref<1x128xf32, #tpu.memory_space<any>>
    %c5_i32_675 = arith.constant 5 : i32
    %c0_i32_676 = arith.constant 0 : i32
    %653 = tpu.memref_slice %arg8[%c4_i32_671, %c5_i32_675, %c0_i32_676] : memref<8x8x128xf32, #tpu.memory_space<vmem>> -> memref<1x1x128xf32, #tpu.memory_space<vmem>>
    %654 = tpu.memref_squeeze %653 : memref<1x1x128xf32, #tpu.memory_space<vmem>> -> memref<1x128xf32, #tpu.memory_space<vmem>>
    %655 = tpu.memref_slice %arg9[%c4_i32_672, %c5_i32_673] : memref<8x8x!tpu.dma_semaphore, #tpu.memory_space<semaphore_mem>> -> memref<1x1x!tpu.dma_semaphore, #tpu.memory_space<semaphore_mem>>
    %656 = tpu.memref_squeeze %655 : memref<1x1x!tpu.dma_semaphore, #tpu.memory_space<semaphore_mem>> -> memref<!tpu.dma_semaphore, #tpu.memory_space<semaphore_mem>>
    tpu.wait_dma2 semaphore(%656 : memref<!tpu.dma_semaphore, #tpu.memory_space<semaphore_mem>>) src(%652 : memref<1x128xf32, #tpu.memory_space<any>>) dst(%654 : memref<1x128xf32, #tpu.memory_space<vmem>>)
    %c4_i32_677 = arith.constant 4 : i32
    %c4_i32_678 = arith.constant 4 : i32
    %c6_i32_679 = arith.constant 6 : i32
    %c0_i32_680 = arith.constant 0 : i32
    %657 = tpu.memref_slice %arg2[%280, %c0_i32_680] : memref<100x128xf32, #tpu.memory_space<any>> -> memref<1x128xf32, #tpu.memory_space<any>>
    %c6_i32_681 = arith.constant 6 : i32
    %c0_i32_682 = arith.constant 0 : i32
    %658 = tpu.memref_slice %arg8[%c4_i32_677, %c6_i32_681, %c0_i32_682] : memref<8x8x128xf32, #tpu.memory_space<vmem>> -> memref<1x1x128xf32, #tpu.memory_space<vmem>>
    %659 = tpu.memref_squeeze %658 : memref<1x1x128xf32, #tpu.memory_space<vmem>> -> memref<1x128xf32, #tpu.memory_space<vmem>>
    %660 = tpu.memref_slice %arg9[%c4_i32_678, %c6_i32_679] : memref<8x8x!tpu.dma_semaphore, #tpu.memory_space<semaphore_mem>> -> memref<1x1x!tpu.dma_semaphore, #tpu.memory_space<semaphore_mem>>
    %661 = tpu.memref_squeeze %660 : memref<1x1x!tpu.dma_semaphore, #tpu.memory_space<semaphore_mem>> -> memref<!tpu.dma_semaphore, #tpu.memory_space<semaphore_mem>>
    tpu.wait_dma2 semaphore(%661 : memref<!tpu.dma_semaphore, #tpu.memory_space<semaphore_mem>>) src(%657 : memref<1x128xf32, #tpu.memory_space<any>>) dst(%659 : memref<1x128xf32, #tpu.memory_space<vmem>>)
    %c4_i32_683 = arith.constant 4 : i32
    %c4_i32_684 = arith.constant 4 : i32
    %c7_i32_685 = arith.constant 7 : i32
    %c0_i32_686 = arith.constant 0 : i32
    %662 = tpu.memref_slice %arg2[%287, %c0_i32_686] : memref<100x128xf32, #tpu.memory_space<any>> -> memref<1x128xf32, #tpu.memory_space<any>>
    %c7_i32_687 = arith.constant 7 : i32
    %c0_i32_688 = arith.constant 0 : i32
    %663 = tpu.memref_slice %arg8[%c4_i32_683, %c7_i32_687, %c0_i32_688] : memref<8x8x128xf32, #tpu.memory_space<vmem>> -> memref<1x1x128xf32, #tpu.memory_space<vmem>>
    %664 = tpu.memref_squeeze %663 : memref<1x1x128xf32, #tpu.memory_space<vmem>> -> memref<1x128xf32, #tpu.memory_space<vmem>>
    %665 = tpu.memref_slice %arg9[%c4_i32_684, %c7_i32_685] : memref<8x8x!tpu.dma_semaphore, #tpu.memory_space<semaphore_mem>> -> memref<1x1x!tpu.dma_semaphore, #tpu.memory_space<semaphore_mem>>
    %666 = tpu.memref_squeeze %665 : memref<1x1x!tpu.dma_semaphore, #tpu.memory_space<semaphore_mem>> -> memref<!tpu.dma_semaphore, #tpu.memory_space<semaphore_mem>>
    tpu.wait_dma2 semaphore(%666 : memref<!tpu.dma_semaphore, #tpu.memory_space<semaphore_mem>>) src(%662 : memref<1x128xf32, #tpu.memory_space<any>>) dst(%664 : memref<1x128xf32, #tpu.memory_space<vmem>>)
    %c5_i32_689 = arith.constant 5 : i32
    %c5_i32_690 = arith.constant 5 : i32
    %c0_i32_691 = arith.constant 0 : i32
    %c0_i32_692 = arith.constant 0 : i32
    %667 = tpu.memref_slice %arg2[%296, %c0_i32_692] : memref<100x128xf32, #tpu.memory_space<any>> -> memref<1x128xf32, #tpu.memory_space<any>>
    %c0_i32_693 = arith.constant 0 : i32
    %c0_i32_694 = arith.constant 0 : i32
    %668 = tpu.memref_slice %arg8[%c5_i32_689, %c0_i32_693, %c0_i32_694] : memref<8x8x128xf32, #tpu.memory_space<vmem>> -> memref<1x1x128xf32, #tpu.memory_space<vmem>>
    %669 = tpu.memref_squeeze %668 : memref<1x1x128xf32, #tpu.memory_space<vmem>> -> memref<1x128xf32, #tpu.memory_space<vmem>>
    %670 = tpu.memref_slice %arg9[%c5_i32_690, %c0_i32_691] : memref<8x8x!tpu.dma_semaphore, #tpu.memory_space<semaphore_mem>> -> memref<1x1x!tpu.dma_semaphore, #tpu.memory_space<semaphore_mem>>
    %671 = tpu.memref_squeeze %670 : memref<1x1x!tpu.dma_semaphore, #tpu.memory_space<semaphore_mem>> -> memref<!tpu.dma_semaphore, #tpu.memory_space<semaphore_mem>>
    tpu.wait_dma2 semaphore(%671 : memref<!tpu.dma_semaphore, #tpu.memory_space<semaphore_mem>>) src(%667 : memref<1x128xf32, #tpu.memory_space<any>>) dst(%669 : memref<1x128xf32, #tpu.memory_space<vmem>>)
    %c5_i32_695 = arith.constant 5 : i32
    %c5_i32_696 = arith.constant 5 : i32
    %c1_i32_697 = arith.constant 1 : i32
    %c0_i32_698 = arith.constant 0 : i32
    %672 = tpu.memref_slice %arg2[%303, %c0_i32_698] : memref<100x128xf32, #tpu.memory_space<any>> -> memref<1x128xf32, #tpu.memory_space<any>>
    %c1_i32_699 = arith.constant 1 : i32
    %c0_i32_700 = arith.constant 0 : i32
    %673 = tpu.memref_slice %arg8[%c5_i32_695, %c1_i32_699, %c0_i32_700] : memref<8x8x128xf32, #tpu.memory_space<vmem>> -> memref<1x1x128xf32, #tpu.memory_space<vmem>>
    %674 = tpu.memref_squeeze %673 : memref<1x1x128xf32, #tpu.memory_space<vmem>> -> memref<1x128xf32, #tpu.memory_space<vmem>>
    %675 = tpu.memref_slice %arg9[%c5_i32_696, %c1_i32_697] : memref<8x8x!tpu.dma_semaphore, #tpu.memory_space<semaphore_mem>> -> memref<1x1x!tpu.dma_semaphore, #tpu.memory_space<semaphore_mem>>
    %676 = tpu.memref_squeeze %675 : memref<1x1x!tpu.dma_semaphore, #tpu.memory_space<semaphore_mem>> -> memref<!tpu.dma_semaphore, #tpu.memory_space<semaphore_mem>>
    tpu.wait_dma2 semaphore(%676 : memref<!tpu.dma_semaphore, #tpu.memory_space<semaphore_mem>>) src(%672 : memref<1x128xf32, #tpu.memory_space<any>>) dst(%674 : memref<1x128xf32, #tpu.memory_space<vmem>>)
    %c5_i32_701 = arith.constant 5 : i32
    %c5_i32_702 = arith.constant 5 : i32
    %c2_i32_703 = arith.constant 2 : i32
    %c0_i32_704 = arith.constant 0 : i32
    %677 = tpu.memref_slice %arg2[%310, %c0_i32_704] : memref<100x128xf32, #tpu.memory_space<any>> -> memref<1x128xf32, #tpu.memory_space<any>>
    %c2_i32_705 = arith.constant 2 : i32
    %c0_i32_706 = arith.constant 0 : i32
    %678 = tpu.memref_slice %arg8[%c5_i32_701, %c2_i32_705, %c0_i32_706] : memref<8x8x128xf32, #tpu.memory_space<vmem>> -> memref<1x1x128xf32, #tpu.memory_space<vmem>>
    %679 = tpu.memref_squeeze %678 : memref<1x1x128xf32, #tpu.memory_space<vmem>> -> memref<1x128xf32, #tpu.memory_space<vmem>>
    %680 = tpu.memref_slice %arg9[%c5_i32_702, %c2_i32_703] : memref<8x8x!tpu.dma_semaphore, #tpu.memory_space<semaphore_mem>> -> memref<1x1x!tpu.dma_semaphore, #tpu.memory_space<semaphore_mem>>
    %681 = tpu.memref_squeeze %680 : memref<1x1x!tpu.dma_semaphore, #tpu.memory_space<semaphore_mem>> -> memref<!tpu.dma_semaphore, #tpu.memory_space<semaphore_mem>>
    tpu.wait_dma2 semaphore(%681 : memref<!tpu.dma_semaphore, #tpu.memory_space<semaphore_mem>>) src(%677 : memref<1x128xf32, #tpu.memory_space<any>>) dst(%679 : memref<1x128xf32, #tpu.memory_space<vmem>>)
    %c5_i32_707 = arith.constant 5 : i32
    %c5_i32_708 = arith.constant 5 : i32
    %c3_i32_709 = arith.constant 3 : i32
    %c0_i32_710 = arith.constant 0 : i32
    %682 = tpu.memref_slice %arg2[%317, %c0_i32_710] : memref<100x128xf32, #tpu.memory_space<any>> -> memref<1x128xf32, #tpu.memory_space<any>>
    %c3_i32_711 = arith.constant 3 : i32
    %c0_i32_712 = arith.constant 0 : i32
    %683 = tpu.memref_slice %arg8[%c5_i32_707, %c3_i32_711, %c0_i32_712] : memref<8x8x128xf32, #tpu.memory_space<vmem>> -> memref<1x1x128xf32, #tpu.memory_space<vmem>>
    %684 = tpu.memref_squeeze %683 : memref<1x1x128xf32, #tpu.memory_space<vmem>> -> memref<1x128xf32, #tpu.memory_space<vmem>>
    %685 = tpu.memref_slice %arg9[%c5_i32_708, %c3_i32_709] : memref<8x8x!tpu.dma_semaphore, #tpu.memory_space<semaphore_mem>> -> memref<1x1x!tpu.dma_semaphore, #tpu.memory_space<semaphore_mem>>
    %686 = tpu.memref_squeeze %685 : memref<1x1x!tpu.dma_semaphore, #tpu.memory_space<semaphore_mem>> -> memref<!tpu.dma_semaphore, #tpu.memory_space<semaphore_mem>>
    tpu.wait_dma2 semaphore(%686 : memref<!tpu.dma_semaphore, #tpu.memory_space<semaphore_mem>>) src(%682 : memref<1x128xf32, #tpu.memory_space<any>>) dst(%684 : memref<1x128xf32, #tpu.memory_space<vmem>>)
    %c5_i32_713 = arith.constant 5 : i32
    %c5_i32_714 = arith.constant 5 : i32
    %c4_i32_715 = arith.constant 4 : i32
    %c0_i32_716 = arith.constant 0 : i32
    %687 = tpu.memref_slice %arg2[%324, %c0_i32_716] : memref<100x128xf32, #tpu.memory_space<any>> -> memref<1x128xf32, #tpu.memory_space<any>>
    %c4_i32_717 = arith.constant 4 : i32
    %c0_i32_718 = arith.constant 0 : i32
    %688 = tpu.memref_slice %arg8[%c5_i32_713, %c4_i32_717, %c0_i32_718] : memref<8x8x128xf32, #tpu.memory_space<vmem>> -> memref<1x1x128xf32, #tpu.memory_space<vmem>>
    %689 = tpu.memref_squeeze %688 : memref<1x1x128xf32, #tpu.memory_space<vmem>> -> memref<1x128xf32, #tpu.memory_space<vmem>>
    %690 = tpu.memref_slice %arg9[%c5_i32_714, %c4_i32_715] : memref<8x8x!tpu.dma_semaphore, #tpu.memory_space<semaphore_mem>> -> memref<1x1x!tpu.dma_semaphore, #tpu.memory_space<semaphore_mem>>
    %691 = tpu.memref_squeeze %690 : memref<1x1x!tpu.dma_semaphore, #tpu.memory_space<semaphore_mem>> -> memref<!tpu.dma_semaphore, #tpu.memory_space<semaphore_mem>>
    tpu.wait_dma2 semaphore(%691 : memref<!tpu.dma_semaphore, #tpu.memory_space<semaphore_mem>>) src(%687 : memref<1x128xf32, #tpu.memory_space<any>>) dst(%689 : memref<1x128xf32, #tpu.memory_space<vmem>>)
    %c5_i32_719 = arith.constant 5 : i32
    %c5_i32_720 = arith.constant 5 : i32
    %c5_i32_721 = arith.constant 5 : i32
    %c0_i32_722 = arith.constant 0 : i32
    %692 = tpu.memref_slice %arg2[%331, %c0_i32_722] : memref<100x128xf32, #tpu.memory_space<any>> -> memref<1x128xf32, #tpu.memory_space<any>>
    %c5_i32_723 = arith.constant 5 : i32
    %c0_i32_724 = arith.constant 0 : i32
    %693 = tpu.memref_slice %arg8[%c5_i32_719, %c5_i32_723, %c0_i32_724] : memref<8x8x128xf32, #tpu.memory_space<vmem>> -> memref<1x1x128xf32, #tpu.memory_space<vmem>>
    %694 = tpu.memref_squeeze %693 : memref<1x1x128xf32, #tpu.memory_space<vmem>> -> memref<1x128xf32, #tpu.memory_space<vmem>>
    %695 = tpu.memref_slice %arg9[%c5_i32_720, %c5_i32_721] : memref<8x8x!tpu.dma_semaphore, #tpu.memory_space<semaphore_mem>> -> memref<1x1x!tpu.dma_semaphore, #tpu.memory_space<semaphore_mem>>
    %696 = tpu.memref_squeeze %695 : memref<1x1x!tpu.dma_semaphore, #tpu.memory_space<semaphore_mem>> -> memref<!tpu.dma_semaphore, #tpu.memory_space<semaphore_mem>>
    tpu.wait_dma2 semaphore(%696 : memref<!tpu.dma_semaphore, #tpu.memory_space<semaphore_mem>>) src(%692 : memref<1x128xf32, #tpu.memory_space<any>>) dst(%694 : memref<1x128xf32, #tpu.memory_space<vmem>>)
    %c5_i32_725 = arith.constant 5 : i32
    %c5_i32_726 = arith.constant 5 : i32
    %c6_i32_727 = arith.constant 6 : i32
    %c0_i32_728 = arith.constant 0 : i32
    %697 = tpu.memref_slice %arg2[%338, %c0_i32_728] : memref<100x128xf32, #tpu.memory_space<any>> -> memref<1x128xf32, #tpu.memory_space<any>>
    %c6_i32_729 = arith.constant 6 : i32
    %c0_i32_730 = arith.constant 0 : i32
    %698 = tpu.memref_slice %arg8[%c5_i32_725, %c6_i32_729, %c0_i32_730] : memref<8x8x128xf32, #tpu.memory_space<vmem>> -> memref<1x1x128xf32, #tpu.memory_space<vmem>>
    %699 = tpu.memref_squeeze %698 : memref<1x1x128xf32, #tpu.memory_space<vmem>> -> memref<1x128xf32, #tpu.memory_space<vmem>>
    %700 = tpu.memref_slice %arg9[%c5_i32_726, %c6_i32_727] : memref<8x8x!tpu.dma_semaphore, #tpu.memory_space<semaphore_mem>> -> memref<1x1x!tpu.dma_semaphore, #tpu.memory_space<semaphore_mem>>
    %701 = tpu.memref_squeeze %700 : memref<1x1x!tpu.dma_semaphore, #tpu.memory_space<semaphore_mem>> -> memref<!tpu.dma_semaphore, #tpu.memory_space<semaphore_mem>>
    tpu.wait_dma2 semaphore(%701 : memref<!tpu.dma_semaphore, #tpu.memory_space<semaphore_mem>>) src(%697 : memref<1x128xf32, #tpu.memory_space<any>>) dst(%699 : memref<1x128xf32, #tpu.memory_space<vmem>>)
    %c5_i32_731 = arith.constant 5 : i32
    %c5_i32_732 = arith.constant 5 : i32
    %c7_i32_733 = arith.constant 7 : i32
    %c0_i32_734 = arith.constant 0 : i32
    %702 = tpu.memref_slice %arg2[%345, %c0_i32_734] : memref<100x128xf32, #tpu.memory_space<any>> -> memref<1x128xf32, #tpu.memory_space<any>>
    %c7_i32_735 = arith.constant 7 : i32
    %c0_i32_736 = arith.constant 0 : i32
    %703 = tpu.memref_slice %arg8[%c5_i32_731, %c7_i32_735, %c0_i32_736] : memref<8x8x128xf32, #tpu.memory_space<vmem>> -> memref<1x1x128xf32, #tpu.memory_space<vmem>>
    %704 = tpu.memref_squeeze %703 : memref<1x1x128xf32, #tpu.memory_space<vmem>> -> memref<1x128xf32, #tpu.memory_space<vmem>>
    %705 = tpu.memref_slice %arg9[%c5_i32_732, %c7_i32_733] : memref<8x8x!tpu.dma_semaphore, #tpu.memory_space<semaphore_mem>> -> memref<1x1x!tpu.dma_semaphore, #tpu.memory_space<semaphore_mem>>
    %706 = tpu.memref_squeeze %705 : memref<1x1x!tpu.dma_semaphore, #tpu.memory_space<semaphore_mem>> -> memref<!tpu.dma_semaphore, #tpu.memory_space<semaphore_mem>>
    tpu.wait_dma2 semaphore(%706 : memref<!tpu.dma_semaphore, #tpu.memory_space<semaphore_mem>>) src(%702 : memref<1x128xf32, #tpu.memory_space<any>>) dst(%704 : memref<1x128xf32, #tpu.memory_space<vmem>>)
    %c6_i32_737 = arith.constant 6 : i32
    %c6_i32_738 = arith.constant 6 : i32
    %c0_i32_739 = arith.constant 0 : i32
    %c0_i32_740 = arith.constant 0 : i32
    %707 = tpu.memref_slice %arg2[%354, %c0_i32_740] : memref<100x128xf32, #tpu.memory_space<any>> -> memref<1x128xf32, #tpu.memory_space<any>>
    %c0_i32_741 = arith.constant 0 : i32
    %c0_i32_742 = arith.constant 0 : i32
    %708 = tpu.memref_slice %arg8[%c6_i32_737, %c0_i32_741, %c0_i32_742] : memref<8x8x128xf32, #tpu.memory_space<vmem>> -> memref<1x1x128xf32, #tpu.memory_space<vmem>>
    %709 = tpu.memref_squeeze %708 : memref<1x1x128xf32, #tpu.memory_space<vmem>> -> memref<1x128xf32, #tpu.memory_space<vmem>>
    %710 = tpu.memref_slice %arg9[%c6_i32_738, %c0_i32_739] : memref<8x8x!tpu.dma_semaphore, #tpu.memory_space<semaphore_mem>> -> memref<1x1x!tpu.dma_semaphore, #tpu.memory_space<semaphore_mem>>
    %711 = tpu.memref_squeeze %710 : memref<1x1x!tpu.dma_semaphore, #tpu.memory_space<semaphore_mem>> -> memref<!tpu.dma_semaphore, #tpu.memory_space<semaphore_mem>>
    tpu.wait_dma2 semaphore(%711 : memref<!tpu.dma_semaphore, #tpu.memory_space<semaphore_mem>>) src(%707 : memref<1x128xf32, #tpu.memory_space<any>>) dst(%709 : memref<1x128xf32, #tpu.memory_space<vmem>>)
    %c6_i32_743 = arith.constant 6 : i32
    %c6_i32_744 = arith.constant 6 : i32
    %c1_i32_745 = arith.constant 1 : i32
    %c0_i32_746 = arith.constant 0 : i32
    %712 = tpu.memref_slice %arg2[%361, %c0_i32_746] : memref<100x128xf32, #tpu.memory_space<any>> -> memref<1x128xf32, #tpu.memory_space<any>>
    %c1_i32_747 = arith.constant 1 : i32
    %c0_i32_748 = arith.constant 0 : i32
    %713 = tpu.memref_slice %arg8[%c6_i32_743, %c1_i32_747, %c0_i32_748] : memref<8x8x128xf32, #tpu.memory_space<vmem>> -> memref<1x1x128xf32, #tpu.memory_space<vmem>>
    %714 = tpu.memref_squeeze %713 : memref<1x1x128xf32, #tpu.memory_space<vmem>> -> memref<1x128xf32, #tpu.memory_space<vmem>>
    %715 = tpu.memref_slice %arg9[%c6_i32_744, %c1_i32_745] : memref<8x8x!tpu.dma_semaphore, #tpu.memory_space<semaphore_mem>> -> memref<1x1x!tpu.dma_semaphore, #tpu.memory_space<semaphore_mem>>
    %716 = tpu.memref_squeeze %715 : memref<1x1x!tpu.dma_semaphore, #tpu.memory_space<semaphore_mem>> -> memref<!tpu.dma_semaphore, #tpu.memory_space<semaphore_mem>>
    tpu.wait_dma2 semaphore(%716 : memref<!tpu.dma_semaphore, #tpu.memory_space<semaphore_mem>>) src(%712 : memref<1x128xf32, #tpu.memory_space<any>>) dst(%714 : memref<1x128xf32, #tpu.memory_space<vmem>>)
    %c6_i32_749 = arith.constant 6 : i32
    %c6_i32_750 = arith.constant 6 : i32
    %c2_i32_751 = arith.constant 2 : i32
    %c0_i32_752 = arith.constant 0 : i32
    %717 = tpu.memref_slice %arg2[%368, %c0_i32_752] : memref<100x128xf32, #tpu.memory_space<any>> -> memref<1x128xf32, #tpu.memory_space<any>>
    %c2_i32_753 = arith.constant 2 : i32
    %c0_i32_754 = arith.constant 0 : i32
    %718 = tpu.memref_slice %arg8[%c6_i32_749, %c2_i32_753, %c0_i32_754] : memref<8x8x128xf32, #tpu.memory_space<vmem>> -> memref<1x1x128xf32, #tpu.memory_space<vmem>>
    %719 = tpu.memref_squeeze %718 : memref<1x1x128xf32, #tpu.memory_space<vmem>> -> memref<1x128xf32, #tpu.memory_space<vmem>>
    %720 = tpu.memref_slice %arg9[%c6_i32_750, %c2_i32_751] : memref<8x8x!tpu.dma_semaphore, #tpu.memory_space<semaphore_mem>> -> memref<1x1x!tpu.dma_semaphore, #tpu.memory_space<semaphore_mem>>
    %721 = tpu.memref_squeeze %720 : memref<1x1x!tpu.dma_semaphore, #tpu.memory_space<semaphore_mem>> -> memref<!tpu.dma_semaphore, #tpu.memory_space<semaphore_mem>>
    tpu.wait_dma2 semaphore(%721 : memref<!tpu.dma_semaphore, #tpu.memory_space<semaphore_mem>>) src(%717 : memref<1x128xf32, #tpu.memory_space<any>>) dst(%719 : memref<1x128xf32, #tpu.memory_space<vmem>>)
    %c6_i32_755 = arith.constant 6 : i32
    %c6_i32_756 = arith.constant 6 : i32
    %c3_i32_757 = arith.constant 3 : i32
    %c0_i32_758 = arith.constant 0 : i32
    %722 = tpu.memref_slice %arg2[%375, %c0_i32_758] : memref<100x128xf32, #tpu.memory_space<any>> -> memref<1x128xf32, #tpu.memory_space<any>>
    %c3_i32_759 = arith.constant 3 : i32
    %c0_i32_760 = arith.constant 0 : i32
    %723 = tpu.memref_slice %arg8[%c6_i32_755, %c3_i32_759, %c0_i32_760] : memref<8x8x128xf32, #tpu.memory_space<vmem>> -> memref<1x1x128xf32, #tpu.memory_space<vmem>>
    %724 = tpu.memref_squeeze %723 : memref<1x1x128xf32, #tpu.memory_space<vmem>> -> memref<1x128xf32, #tpu.memory_space<vmem>>
    %725 = tpu.memref_slice %arg9[%c6_i32_756, %c3_i32_757] : memref<8x8x!tpu.dma_semaphore, #tpu.memory_space<semaphore_mem>> -> memref<1x1x!tpu.dma_semaphore, #tpu.memory_space<semaphore_mem>>
    %726 = tpu.memref_squeeze %725 : memref<1x1x!tpu.dma_semaphore, #tpu.memory_space<semaphore_mem>> -> memref<!tpu.dma_semaphore, #tpu.memory_space<semaphore_mem>>
    tpu.wait_dma2 semaphore(%726 : memref<!tpu.dma_semaphore, #tpu.memory_space<semaphore_mem>>) src(%722 : memref<1x128xf32, #tpu.memory_space<any>>) dst(%724 : memref<1x128xf32, #tpu.memory_space<vmem>>)
    %c6_i32_761 = arith.constant 6 : i32
    %c6_i32_762 = arith.constant 6 : i32
    %c4_i32_763 = arith.constant 4 : i32
    %c0_i32_764 = arith.constant 0 : i32
    %727 = tpu.memref_slice %arg2[%382, %c0_i32_764] : memref<100x128xf32, #tpu.memory_space<any>> -> memref<1x128xf32, #tpu.memory_space<any>>
    %c4_i32_765 = arith.constant 4 : i32
    %c0_i32_766 = arith.constant 0 : i32
    %728 = tpu.memref_slice %arg8[%c6_i32_761, %c4_i32_765, %c0_i32_766] : memref<8x8x128xf32, #tpu.memory_space<vmem>> -> memref<1x1x128xf32, #tpu.memory_space<vmem>>
    %729 = tpu.memref_squeeze %728 : memref<1x1x128xf32, #tpu.memory_space<vmem>> -> memref<1x128xf32, #tpu.memory_space<vmem>>
    %730 = tpu.memref_slice %arg9[%c6_i32_762, %c4_i32_763] : memref<8x8x!tpu.dma_semaphore, #tpu.memory_space<semaphore_mem>> -> memref<1x1x!tpu.dma_semaphore, #tpu.memory_space<semaphore_mem>>
    %731 = tpu.memref_squeeze %730 : memref<1x1x!tpu.dma_semaphore, #tpu.memory_space<semaphore_mem>> -> memref<!tpu.dma_semaphore, #tpu.memory_space<semaphore_mem>>
    tpu.wait_dma2 semaphore(%731 : memref<!tpu.dma_semaphore, #tpu.memory_space<semaphore_mem>>) src(%727 : memref<1x128xf32, #tpu.memory_space<any>>) dst(%729 : memref<1x128xf32, #tpu.memory_space<vmem>>)
    %c6_i32_767 = arith.constant 6 : i32
    %c6_i32_768 = arith.constant 6 : i32
    %c5_i32_769 = arith.constant 5 : i32
    %c0_i32_770 = arith.constant 0 : i32
    %732 = tpu.memref_slice %arg2[%389, %c0_i32_770] : memref<100x128xf32, #tpu.memory_space<any>> -> memref<1x128xf32, #tpu.memory_space<any>>
    %c5_i32_771 = arith.constant 5 : i32
    %c0_i32_772 = arith.constant 0 : i32
    %733 = tpu.memref_slice %arg8[%c6_i32_767, %c5_i32_771, %c0_i32_772] : memref<8x8x128xf32, #tpu.memory_space<vmem>> -> memref<1x1x128xf32, #tpu.memory_space<vmem>>
    %734 = tpu.memref_squeeze %733 : memref<1x1x128xf32, #tpu.memory_space<vmem>> -> memref<1x128xf32, #tpu.memory_space<vmem>>
    %735 = tpu.memref_slice %arg9[%c6_i32_768, %c5_i32_769] : memref<8x8x!tpu.dma_semaphore, #tpu.memory_space<semaphore_mem>> -> memref<1x1x!tpu.dma_semaphore, #tpu.memory_space<semaphore_mem>>
    %736 = tpu.memref_squeeze %735 : memref<1x1x!tpu.dma_semaphore, #tpu.memory_space<semaphore_mem>> -> memref<!tpu.dma_semaphore, #tpu.memory_space<semaphore_mem>>
    tpu.wait_dma2 semaphore(%736 : memref<!tpu.dma_semaphore, #tpu.memory_space<semaphore_mem>>) src(%732 : memref<1x128xf32, #tpu.memory_space<any>>) dst(%734 : memref<1x128xf32, #tpu.memory_space<vmem>>)
    %c6_i32_773 = arith.constant 6 : i32
    %c6_i32_774 = arith.constant 6 : i32
    %c6_i32_775 = arith.constant 6 : i32
    %c0_i32_776 = arith.constant 0 : i32
    %737 = tpu.memref_slice %arg2[%396, %c0_i32_776] : memref<100x128xf32, #tpu.memory_space<any>> -> memref<1x128xf32, #tpu.memory_space<any>>
    %c6_i32_777 = arith.constant 6 : i32
    %c0_i32_778 = arith.constant 0 : i32
    %738 = tpu.memref_slice %arg8[%c6_i32_773, %c6_i32_777, %c0_i32_778] : memref<8x8x128xf32, #tpu.memory_space<vmem>> -> memref<1x1x128xf32, #tpu.memory_space<vmem>>
    %739 = tpu.memref_squeeze %738 : memref<1x1x128xf32, #tpu.memory_space<vmem>> -> memref<1x128xf32, #tpu.memory_space<vmem>>
    %740 = tpu.memref_slice %arg9[%c6_i32_774, %c6_i32_775] : memref<8x8x!tpu.dma_semaphore, #tpu.memory_space<semaphore_mem>> -> memref<1x1x!tpu.dma_semaphore, #tpu.memory_space<semaphore_mem>>
    %741 = tpu.memref_squeeze %740 : memref<1x1x!tpu.dma_semaphore, #tpu.memory_space<semaphore_mem>> -> memref<!tpu.dma_semaphore, #tpu.memory_space<semaphore_mem>>
    tpu.wait_dma2 semaphore(%741 : memref<!tpu.dma_semaphore, #tpu.memory_space<semaphore_mem>>) src(%737 : memref<1x128xf32, #tpu.memory_space<any>>) dst(%739 : memref<1x128xf32, #tpu.memory_space<vmem>>)
    %c6_i32_779 = arith.constant 6 : i32
    %c6_i32_780 = arith.constant 6 : i32
    %c7_i32_781 = arith.constant 7 : i32
    %c0_i32_782 = arith.constant 0 : i32
    %742 = tpu.memref_slice %arg2[%403, %c0_i32_782] : memref<100x128xf32, #tpu.memory_space<any>> -> memref<1x128xf32, #tpu.memory_space<any>>
    %c7_i32_783 = arith.constant 7 : i32
    %c0_i32_784 = arith.constant 0 : i32
    %743 = tpu.memref_slice %arg8[%c6_i32_779, %c7_i32_783, %c0_i32_784] : memref<8x8x128xf32, #tpu.memory_space<vmem>> -> memref<1x1x128xf32, #tpu.memory_space<vmem>>
    %744 = tpu.memref_squeeze %743 : memref<1x1x128xf32, #tpu.memory_space<vmem>> -> memref<1x128xf32, #tpu.memory_space<vmem>>
    %745 = tpu.memref_slice %arg9[%c6_i32_780, %c7_i32_781] : memref<8x8x!tpu.dma_semaphore, #tpu.memory_space<semaphore_mem>> -> memref<1x1x!tpu.dma_semaphore, #tpu.memory_space<semaphore_mem>>
    %746 = tpu.memref_squeeze %745 : memref<1x1x!tpu.dma_semaphore, #tpu.memory_space<semaphore_mem>> -> memref<!tpu.dma_semaphore, #tpu.memory_space<semaphore_mem>>
    tpu.wait_dma2 semaphore(%746 : memref<!tpu.dma_semaphore, #tpu.memory_space<semaphore_mem>>) src(%742 : memref<1x128xf32, #tpu.memory_space<any>>) dst(%744 : memref<1x128xf32, #tpu.memory_space<vmem>>)
    %c7_i32_785 = arith.constant 7 : i32
    %c7_i32_786 = arith.constant 7 : i32
    %c0_i32_787 = arith.constant 0 : i32
    %c0_i32_788 = arith.constant 0 : i32
    %747 = tpu.memref_slice %arg2[%412, %c0_i32_788] : memref<100x128xf32, #tpu.memory_space<any>> -> memref<1x128xf32, #tpu.memory_space<any>>
    %c0_i32_789 = arith.constant 0 : i32
    %c0_i32_790 = arith.constant 0 : i32
    %748 = tpu.memref_slice %arg8[%c7_i32_785, %c0_i32_789, %c0_i32_790] : memref<8x8x128xf32, #tpu.memory_space<vmem>> -> memref<1x1x128xf32, #tpu.memory_space<vmem>>
    %749 = tpu.memref_squeeze %748 : memref<1x1x128xf32, #tpu.memory_space<vmem>> -> memref<1x128xf32, #tpu.memory_space<vmem>>
    %750 = tpu.memref_slice %arg9[%c7_i32_786, %c0_i32_787] : memref<8x8x!tpu.dma_semaphore, #tpu.memory_space<semaphore_mem>> -> memref<1x1x!tpu.dma_semaphore, #tpu.memory_space<semaphore_mem>>
    %751 = tpu.memref_squeeze %750 : memref<1x1x!tpu.dma_semaphore, #tpu.memory_space<semaphore_mem>> -> memref<!tpu.dma_semaphore, #tpu.memory_space<semaphore_mem>>
    tpu.wait_dma2 semaphore(%751 : memref<!tpu.dma_semaphore, #tpu.memory_space<semaphore_mem>>) src(%747 : memref<1x128xf32, #tpu.memory_space<any>>) dst(%749 : memref<1x128xf32, #tpu.memory_space<vmem>>)
    %c7_i32_791 = arith.constant 7 : i32
    %c7_i32_792 = arith.constant 7 : i32
    %c1_i32_793 = arith.constant 1 : i32
    %c0_i32_794 = arith.constant 0 : i32
    %752 = tpu.memref_slice %arg2[%419, %c0_i32_794] : memref<100x128xf32, #tpu.memory_space<any>> -> memref<1x128xf32, #tpu.memory_space<any>>
    %c1_i32_795 = arith.constant 1 : i32
    %c0_i32_796 = arith.constant 0 : i32
    %753 = tpu.memref_slice %arg8[%c7_i32_791, %c1_i32_795, %c0_i32_796] : memref<8x8x128xf32, #tpu.memory_space<vmem>> -> memref<1x1x128xf32, #tpu.memory_space<vmem>>
    %754 = tpu.memref_squeeze %753 : memref<1x1x128xf32, #tpu.memory_space<vmem>> -> memref<1x128xf32, #tpu.memory_space<vmem>>
    %755 = tpu.memref_slice %arg9[%c7_i32_792, %c1_i32_793] : memref<8x8x!tpu.dma_semaphore, #tpu.memory_space<semaphore_mem>> -> memref<1x1x!tpu.dma_semaphore, #tpu.memory_space<semaphore_mem>>
    %756 = tpu.memref_squeeze %755 : memref<1x1x!tpu.dma_semaphore, #tpu.memory_space<semaphore_mem>> -> memref<!tpu.dma_semaphore, #tpu.memory_space<semaphore_mem>>
    tpu.wait_dma2 semaphore(%756 : memref<!tpu.dma_semaphore, #tpu.memory_space<semaphore_mem>>) src(%752 : memref<1x128xf32, #tpu.memory_space<any>>) dst(%754 : memref<1x128xf32, #tpu.memory_space<vmem>>)
    %c7_i32_797 = arith.constant 7 : i32
    %c7_i32_798 = arith.constant 7 : i32
    %c2_i32_799 = arith.constant 2 : i32
    %c0_i32_800 = arith.constant 0 : i32
    %757 = tpu.memref_slice %arg2[%426, %c0_i32_800] : memref<100x128xf32, #tpu.memory_space<any>> -> memref<1x128xf32, #tpu.memory_space<any>>
    %c2_i32_801 = arith.constant 2 : i32
    %c0_i32_802 = arith.constant 0 : i32
    %758 = tpu.memref_slice %arg8[%c7_i32_797, %c2_i32_801, %c0_i32_802] : memref<8x8x128xf32, #tpu.memory_space<vmem>> -> memref<1x1x128xf32, #tpu.memory_space<vmem>>
    %759 = tpu.memref_squeeze %758 : memref<1x1x128xf32, #tpu.memory_space<vmem>> -> memref<1x128xf32, #tpu.memory_space<vmem>>
    %760 = tpu.memref_slice %arg9[%c7_i32_798, %c2_i32_799] : memref<8x8x!tpu.dma_semaphore, #tpu.memory_space<semaphore_mem>> -> memref<1x1x!tpu.dma_semaphore, #tpu.memory_space<semaphore_mem>>
    %761 = tpu.memref_squeeze %760 : memref<1x1x!tpu.dma_semaphore, #tpu.memory_space<semaphore_mem>> -> memref<!tpu.dma_semaphore, #tpu.memory_space<semaphore_mem>>
    tpu.wait_dma2 semaphore(%761 : memref<!tpu.dma_semaphore, #tpu.memory_space<semaphore_mem>>) src(%757 : memref<1x128xf32, #tpu.memory_space<any>>) dst(%759 : memref<1x128xf32, #tpu.memory_space<vmem>>)
    %c7_i32_803 = arith.constant 7 : i32
    %c7_i32_804 = arith.constant 7 : i32
    %c3_i32_805 = arith.constant 3 : i32
    %c0_i32_806 = arith.constant 0 : i32
    %762 = tpu.memref_slice %arg2[%433, %c0_i32_806] : memref<100x128xf32, #tpu.memory_space<any>> -> memref<1x128xf32, #tpu.memory_space<any>>
    %c3_i32_807 = arith.constant 3 : i32
    %c0_i32_808 = arith.constant 0 : i32
    %763 = tpu.memref_slice %arg8[%c7_i32_803, %c3_i32_807, %c0_i32_808] : memref<8x8x128xf32, #tpu.memory_space<vmem>> -> memref<1x1x128xf32, #tpu.memory_space<vmem>>
    %764 = tpu.memref_squeeze %763 : memref<1x1x128xf32, #tpu.memory_space<vmem>> -> memref<1x128xf32, #tpu.memory_space<vmem>>
    %765 = tpu.memref_slice %arg9[%c7_i32_804, %c3_i32_805] : memref<8x8x!tpu.dma_semaphore, #tpu.memory_space<semaphore_mem>> -> memref<1x1x!tpu.dma_semaphore, #tpu.memory_space<semaphore_mem>>
    %766 = tpu.memref_squeeze %765 : memref<1x1x!tpu.dma_semaphore, #tpu.memory_space<semaphore_mem>> -> memref<!tpu.dma_semaphore, #tpu.memory_space<semaphore_mem>>
    tpu.wait_dma2 semaphore(%766 : memref<!tpu.dma_semaphore, #tpu.memory_space<semaphore_mem>>) src(%762 : memref<1x128xf32, #tpu.memory_space<any>>) dst(%764 : memref<1x128xf32, #tpu.memory_space<vmem>>)
    %c7_i32_809 = arith.constant 7 : i32
    %c7_i32_810 = arith.constant 7 : i32
    %c4_i32_811 = arith.constant 4 : i32
    %c0_i32_812 = arith.constant 0 : i32
    %767 = tpu.memref_slice %arg2[%440, %c0_i32_812] : memref<100x128xf32, #tpu.memory_space<any>> -> memref<1x128xf32, #tpu.memory_space<any>>
    %c4_i32_813 = arith.constant 4 : i32
    %c0_i32_814 = arith.constant 0 : i32
    %768 = tpu.memref_slice %arg8[%c7_i32_809, %c4_i32_813, %c0_i32_814] : memref<8x8x128xf32, #tpu.memory_space<vmem>> -> memref<1x1x128xf32, #tpu.memory_space<vmem>>
    %769 = tpu.memref_squeeze %768 : memref<1x1x128xf32, #tpu.memory_space<vmem>> -> memref<1x128xf32, #tpu.memory_space<vmem>>
    %770 = tpu.memref_slice %arg9[%c7_i32_810, %c4_i32_811] : memref<8x8x!tpu.dma_semaphore, #tpu.memory_space<semaphore_mem>> -> memref<1x1x!tpu.dma_semaphore, #tpu.memory_space<semaphore_mem>>
    %771 = tpu.memref_squeeze %770 : memref<1x1x!tpu.dma_semaphore, #tpu.memory_space<semaphore_mem>> -> memref<!tpu.dma_semaphore, #tpu.memory_space<semaphore_mem>>
    tpu.wait_dma2 semaphore(%771 : memref<!tpu.dma_semaphore, #tpu.memory_space<semaphore_mem>>) src(%767 : memref<1x128xf32, #tpu.memory_space<any>>) dst(%769 : memref<1x128xf32, #tpu.memory_space<vmem>>)
    %c7_i32_815 = arith.constant 7 : i32
    %c7_i32_816 = arith.constant 7 : i32
    %c5_i32_817 = arith.constant 5 : i32
    %c0_i32_818 = arith.constant 0 : i32
    %772 = tpu.memref_slice %arg2[%447, %c0_i32_818] : memref<100x128xf32, #tpu.memory_space<any>> -> memref<1x128xf32, #tpu.memory_space<any>>
    %c5_i32_819 = arith.constant 5 : i32
    %c0_i32_820 = arith.constant 0 : i32
    %773 = tpu.memref_slice %arg8[%c7_i32_815, %c5_i32_819, %c0_i32_820] : memref<8x8x128xf32, #tpu.memory_space<vmem>> -> memref<1x1x128xf32, #tpu.memory_space<vmem>>
    %774 = tpu.memref_squeeze %773 : memref<1x1x128xf32, #tpu.memory_space<vmem>> -> memref<1x128xf32, #tpu.memory_space<vmem>>
    %775 = tpu.memref_slice %arg9[%c7_i32_816, %c5_i32_817] : memref<8x8x!tpu.dma_semaphore, #tpu.memory_space<semaphore_mem>> -> memref<1x1x!tpu.dma_semaphore, #tpu.memory_space<semaphore_mem>>
    %776 = tpu.memref_squeeze %775 : memref<1x1x!tpu.dma_semaphore, #tpu.memory_space<semaphore_mem>> -> memref<!tpu.dma_semaphore, #tpu.memory_space<semaphore_mem>>
    tpu.wait_dma2 semaphore(%776 : memref<!tpu.dma_semaphore, #tpu.memory_space<semaphore_mem>>) src(%772 : memref<1x128xf32, #tpu.memory_space<any>>) dst(%774 : memref<1x128xf32, #tpu.memory_space<vmem>>)
    %c7_i32_821 = arith.constant 7 : i32
    %c7_i32_822 = arith.constant 7 : i32
    %c6_i32_823 = arith.constant 6 : i32
    %c0_i32_824 = arith.constant 0 : i32
    %777 = tpu.memref_slice %arg2[%454, %c0_i32_824] : memref<100x128xf32, #tpu.memory_space<any>> -> memref<1x128xf32, #tpu.memory_space<any>>
    %c6_i32_825 = arith.constant 6 : i32
    %c0_i32_826 = arith.constant 0 : i32
    %778 = tpu.memref_slice %arg8[%c7_i32_821, %c6_i32_825, %c0_i32_826] : memref<8x8x128xf32, #tpu.memory_space<vmem>> -> memref<1x1x128xf32, #tpu.memory_space<vmem>>
    %779 = tpu.memref_squeeze %778 : memref<1x1x128xf32, #tpu.memory_space<vmem>> -> memref<1x128xf32, #tpu.memory_space<vmem>>
    %780 = tpu.memref_slice %arg9[%c7_i32_822, %c6_i32_823] : memref<8x8x!tpu.dma_semaphore, #tpu.memory_space<semaphore_mem>> -> memref<1x1x!tpu.dma_semaphore, #tpu.memory_space<semaphore_mem>>
    %781 = tpu.memref_squeeze %780 : memref<1x1x!tpu.dma_semaphore, #tpu.memory_space<semaphore_mem>> -> memref<!tpu.dma_semaphore, #tpu.memory_space<semaphore_mem>>
    tpu.wait_dma2 semaphore(%781 : memref<!tpu.dma_semaphore, #tpu.memory_space<semaphore_mem>>) src(%777 : memref<1x128xf32, #tpu.memory_space<any>>) dst(%779 : memref<1x128xf32, #tpu.memory_space<vmem>>)
    %c7_i32_827 = arith.constant 7 : i32
    %c7_i32_828 = arith.constant 7 : i32
    %c7_i32_829 = arith.constant 7 : i32
    %c0_i32_830 = arith.constant 0 : i32
    %782 = tpu.memref_slice %arg2[%461, %c0_i32_830] : memref<100x128xf32, #tpu.memory_space<any>> -> memref<1x128xf32, #tpu.memory_space<any>>
    %c7_i32_831 = arith.constant 7 : i32
    %c0_i32_832 = arith.constant 0 : i32
    %783 = tpu.memref_slice %arg8[%c7_i32_827, %c7_i32_831, %c0_i32_832] : memref<8x8x128xf32, #tpu.memory_space<vmem>> -> memref<1x1x128xf32, #tpu.memory_space<vmem>>
    %784 = tpu.memref_squeeze %783 : memref<1x1x128xf32, #tpu.memory_space<vmem>> -> memref<1x128xf32, #tpu.memory_space<vmem>>
    %785 = tpu.memref_slice %arg9[%c7_i32_828, %c7_i32_829] : memref<8x8x!tpu.dma_semaphore, #tpu.memory_space<semaphore_mem>> -> memref<1x1x!tpu.dma_semaphore, #tpu.memory_space<semaphore_mem>>
    %786 = tpu.memref_squeeze %785 : memref<1x1x!tpu.dma_semaphore, #tpu.memory_space<semaphore_mem>> -> memref<!tpu.dma_semaphore, #tpu.memory_space<semaphore_mem>>
    tpu.wait_dma2 semaphore(%786 : memref<!tpu.dma_semaphore, #tpu.memory_space<semaphore_mem>>) src(%782 : memref<1x128xf32, #tpu.memory_space<any>>) dst(%784 : memref<1x128xf32, #tpu.memory_space<vmem>>)
    %c0_833 = arith.constant 0 : index
    %c0_834 = arith.constant 0 : index
    %c0_835 = arith.constant 0 : index
    %787 = vector.load %arg8[%c0_833, %c0_834, %c0_835] : memref<8x8x128xf32, #tpu.memory_space<vmem>>, vector<8x8x128xf32>
    %cst = arith.constant dense<0.000000e+00> : vector<8x128xf32>
    %788 = vector.multi_reduction <add>, %787, %cst [1] : vector<8x8x128xf32> to vector<8x128xf32>
    %789 = arith.truncf %788 : vector<8x128xf32> to vector<8x128xbf16>
    %c0_836 = arith.constant 0 : index
    %c0_837 = arith.constant 0 : index
    %790 = vector.load %arg3[%c0_836, %c0_837] : memref<128x256xbf16, #tpu.memory_space<vmem>>, vector<128x256xbf16>
    %cst_838 = arith.constant dense<0.000000e+00> : vector<8x256xf32>
    %791 = tpu.matmul %789, %790, %cst_838 {dimension_numbers = #tpu.dot_dimension_numbers<[1], [0], [0], [1], [0, 0, 1, 1], [], []>} : vector<8x128xbf16>, vector<128x256xbf16>, vector<8x256xf32> -> vector<8x256xf32>
    %c0_839 = arith.constant 0 : index
    %c0_840 = arith.constant 0 : index
    %792 = vector.load %arg4[%c0_839, %c0_840] : memref<1x256xf32, #tpu.memory_space<vmem>>, vector<1x256xf32>
    %793 = vector.broadcast %792 : vector<1x256xf32> to vector<8x256xf32>
    %794 = arith.addf %791, %793 : vector<8x256xf32>
    %c0_841 = arith.constant 0 : index
    %c0_842 = arith.constant 0 : index
    %795 = vector.load %arg5[%c0_841, %c0_842] : memref<8x256xf32, #tpu.memory_space<vmem>>, vector<8x256xf32>
    tpu.vector_store %arg5[%c0_841, %c0_842], %794 {strides = array<i32>} : memref<8x256xf32, #tpu.memory_space<vmem>>, vector<8x256xf32>,
    %c8_i32_843 = arith.constant 8 : i32
    %796 = arith.muli %arg0, %c8_i32_843 : i32
    %797 = tpu.iota {dimensions = array<i32: 0>} : vector<8x1xi32>
    %798 = vector.broadcast %796 : i32 to vector<8x1xi32>
    %799 = arith.addi %798, %797 : vector<8x1xi32>
    %c2_i32_844 = arith.constant 2 : i32
    %800 = vector.broadcast %c2_i32_844 : i32 to vector<8x1xi32>
    %801 = arith.cmpi slt, %799, %800 : vector<8x1xi32>
    %802 = arith.extui %801 : vector<8x1xi1> to vector<8x1xi32>
    %803 = arith.sitofp %802 : vector<8x1xi32> to vector<8x1xf32>
    %804 = vector.broadcast %803 : vector<8x1xf32> to vector<8x256xf32>
    %805 = arith.mulf %794, %804 : vector<8x256xf32>
    %c0_845 = arith.constant 0 : index
    %c0_846 = arith.constant 0 : index
    %806 = vector.load %arg6[%c0_845, %c0_846] : memref<1x256xf32, #tpu.memory_space<vmem>>, vector<1x256xf32>
    %cst_847 = arith.constant dense<0.000000e+00> : vector<256xf32>
    %807 = vector.multi_reduction <add>, %805, %cst_847 [0] : vector<8x256xf32> to vector<256xf32>
    %808 = vector.shape_cast %807 : vector<256xf32> to vector<1x256xf32>
    %809 = arith.addf %806, %808 : vector<1x256xf32>
    %c0_848 = arith.constant 0 : index
    %c0_849 = arith.constant 0 : index
    %810 = vector.load %arg6[%c0_848, %c0_849] : memref<1x256xf32, #tpu.memory_space<vmem>>, vector<1x256xf32>
    tpu.vector_store %arg6[%c0_848, %c0_849], %809 {strides = array<i32>} : memref<1x256xf32, #tpu.memory_space<vmem>>, vector<1x256xf32>,
    %c0_850 = arith.constant 0 : index
    %c0_851 = arith.constant 0 : index
    %811 = vector.load %arg7[%c0_850, %c0_851] : memref<1x256xf32, #tpu.memory_space<vmem>>, vector<1x256xf32>
    %812 = arith.mulf %805, %794 : vector<8x256xf32>
    %cst_852 = arith.constant dense<0.000000e+00> : vector<256xf32>
    %813 = vector.multi_reduction <add>, %812, %cst_852 [0] : vector<8x256xf32> to vector<256xf32>
    %814 = vector.shape_cast %813 : vector<256xf32> to vector<1x256xf32>
    %815 = arith.addf %811, %814 : vector<1x256xf32>
    %c0_853 = arith.constant 0 : index
    %c0_854 = arith.constant 0 : index
    %816 = vector.load %arg7[%c0_853, %c0_854] : memref<1x256xf32, #tpu.memory_space<vmem>>, vector<1x256xf32>
    tpu.vector_store %arg7[%c0_853, %c0_854], %815 {strides = array<i32>} : memref<1x256xf32, #tpu.memory_space<vmem>>, vector<1x256xf32>,
    %c0_i32_855 = arith.constant 0 : i32
    %817 = arith.cmpi eq, %arg0, %c0_i32_855 : i32
    %818 = arith.extui %817 : i1 to i32
    %c0_i32_856 = arith.constant 0 : i32
    %819 = arith.cmpi ne, %818, %c0_i32_856 : i32
    scf.if %819 {
      %c0_857 = arith.constant 0 : index
      %c0_858 = arith.constant 0 : index
      %820 = vector.load %arg6[%c0_857, %c0_858] : memref<1x256xf32, #tpu.memory_space<vmem>>, vector<1x256xf32>
      %cst_859 = arith.constant 5.000000e-01 : f32
      %821 = vector.broadcast %cst_859 : f32 to vector<1x256xf32>
      %822 = arith.mulf %820, %821 : vector<1x256xf32>
      %c0_860 = arith.constant 0 : index
      %c0_861 = arith.constant 0 : index
      %823 = vector.load %arg7[%c0_860, %c0_861] : memref<1x256xf32, #tpu.memory_space<vmem>>, vector<1x256xf32>
      %cst_862 = arith.constant 5.000000e-01 : f32
      %824 = vector.broadcast %cst_862 : f32 to vector<1x256xf32>
      %825 = arith.mulf %823, %824 : vector<1x256xf32>
      %826 = arith.mulf %822, %822 : vector<1x256xf32>
      %827 = arith.subf %825, %826 : vector<1x256xf32>
      %c0_863 = arith.constant 0 : index
      %c0_864 = arith.constant 0 : index
      %828 = vector.load %arg6[%c0_863, %c0_864] : memref<1x256xf32, #tpu.memory_space<vmem>>, vector<1x256xf32>
      tpu.vector_store %arg6[%c0_863, %c0_864], %822 {strides = array<i32>} : memref<1x256xf32, #tpu.memory_space<vmem>>, vector<1x256xf32>,
      %cst_865 = arith.constant 9.99999974E-6 : f32
      %829 = vector.broadcast %cst_865 : f32 to vector<1x256xf32>
      %830 = arith.addf %827, %829 : vector<1x256xf32>
      %831 = math.rsqrt %830 : vector<1x256xf32>
      %c0_866 = arith.constant 0 : index
      %c0_867 = arith.constant 0 : index
      %832 = vector.load %arg7[%c0_866, %c0_867] : memref<1x256xf32, #tpu.memory_space<vmem>>, vector<1x256xf32>
      tpu.vector_store %arg7[%c0_866, %c0_867], %831 {strides = array<i32>} : memref<1x256xf32, #tpu.memory_space<vmem>>, vector<1x256xf32>,
    } else {
    }
    return
  }
  func.func @transform_1(%arg0: i32, %arg1: memref<8x8xi32, #tpu.memory_space<smem>>) -> (i32, i32) {
    %c0_i32 = arith.constant 0 : i32
    %c0_i32_0 = arith.constant 0 : i32
    %c0_i32_1 = arith.constant 0 : i32
    return %c0_i32, %c0_i32_0 : i32, i32
  }
  func.func @transform_2(%arg0: i32, %arg1: memref<8x8xi32, #tpu.memory_space<smem>>) -> (i32, i32) {
    %c0_i32 = arith.constant 0 : i32
    %c0_i32_0 = arith.constant 0 : i32
    %c0_i32_1 = arith.constant 0 : i32
    return %c0_i32, %c0_i32_0 : i32, i32
  }
  func.func @transform_3(%arg0: i32, %arg1: memref<8x8xi32, #tpu.memory_space<smem>>) -> (i32, i32) {
    %c0_i32 = arith.constant 0 : i32
    %c0_i32_0 = arith.constant 0 : i32
    return %arg0, %c0_i32 : i32, i32
  }
  func.func @transform_4(%arg0: i32, %arg1: memref<8x8xi32, #tpu.memory_space<smem>>) -> (i32, i32) {
    %c0_i32 = arith.constant 0 : i32
    %c0_i32_0 = arith.constant 0 : i32
    %c0_i32_1 = arith.constant 0 : i32
    return %c0_i32, %c0_i32_0 : i32, i32
  }
  func.func @transform_5(%arg0: i32, %arg1: memref<8x8xi32, #tpu.memory_space<smem>>) -> (i32, i32) {
    %c0_i32 = arith.constant 0 : i32
    %c0_i32_0 = arith.constant 0 : i32
    %c0_i32_1 = arith.constant 0 : i32
    return %c0_i32, %c0_i32_0 : i32, i32
  }
}

</mosaic_0001>

<bundles_post_ra>
// kernel: fasttext_forward.3
= control target key start
LH: loop header
LB: loop body
LE: loop exit
PB: predicated region body
PF: predicated region fallthrough
CT: control target
= control target key end

     0   :  { %v25_v5 = vlaneseq  ;;  %s384_s3 = inlined_call_operand.vmem [shape: bf16[256,128], index: 3, kind: input, shape index: {}]   ;;  %s385_s0 = inlined_call_operand.vmem [shape: f32[8,256], index: 0, kind: input, shape index: {}]   ;;  %s386_s1 = inlined_call_operand.vmem [shape: f32[1,256], index: 1, kind: input, shape index: {}]   ;;  %s387_s2 = inlined_call_operand.vmem [shape: f32[1,256], index: 2, kind: input, shape index: {}]   ;;  %s388_s4 = inlined_call_operand.vmem [shape: f32[1,128], index: 4, kind: input, shape index: {}]   ;;  %s389_s5 = inlined_call_operand.vmem [shape: f32[8,128], index: 5, kind: output, shape index: {}]  }
   0x1   :  { %v272_v0 = vld [vmem:[%s384_s3 + $0x78] sm:$0xff]   ;;  %v274_v2 = vld [vmem:[%s384_s3 + $0x70] sm:$0xff]   ;;  %v276_v4 = vld [vmem:[%s384_s3 + $0x68] sm:$0xff]  }
   0x2   :  { %v273_v1 = vld [vmem:[%s384_s3 + $0x38] sm:$0xff]   ;;  %250 = vmatprep.subr.bf16.mxu0 %v272_v0  ;;  %v275_v3 = vld [vmem:[%s384_s3 + $0x30] sm:$0xff]   ;;  %v277_v6 = vld [vmem:[%s384_s3 + $0x28] sm:$0xff]   ;;  %v26_v8 = vshrl.u32 %v25_v5, 7 }
   0x3   :  { %251 = vmatpush3.bf16.msra.mxu0 %v273_v1  ;;  %v278_v7 = vld [vmem:[%s384_s3 + $0x60] sm:$0xff]   ;;  %v280_v10 = vld [vmem:[%s384_s3 + $0x58] sm:$0xff]   ;;  %v282_v14 = vld [vmem:[%s384_s3 + $0x50] sm:$0xff]  }
   0x4   :  { %252 = vmatprep.subr.bf16.mxu0 %v274_v2  ;;  %v279_v9 = vld [vmem:[%s384_s3 + $0x20] sm:$0xff]   ;;  %v31_v11 = vsub.s32 1, %v26_v8  ;;  %v27_v12 = vsub.s32 0, %v26_v8  ;;  %v281_v13 = vld [vmem:[%s384_s3 + $0x18] sm:$0xff]   ;;  %v22_v15 = vld [vmem:[%s385_s0 + $0x8] sm:$0xff] }
   0x5   :  { %v23_v16 = vld [vmem:[%s386_s1] sm:$0x3]  ;;  %v283_v21 = vld [vmem:[%s384_s3 + $0x10] sm:$0xff]   ;;  %v284_v24 = vld [vmem:[%s384_s3 + $0x48] sm:$0xff]  }
   0x6   :  { %v32_v17 = vrot.slane %v23_v16, %v31_v11  ;;  %v37_v18 = vld [vmem:[%s387_s2] sm:$0x3]  ;;  %v28_v19 = vrot.slane %v23_v16, %v27_v12  ;;  %v285_v28 = vld [vmem:[%s384_s3 + $0x8] sm:$0xff]  }
   0x7   :  { %253 = vmatpush3.bf16.msra.mxu0 %v275_v3  ;;  %v46_v20 = vrot.slane %v37_v18, %v31_v11  ;;  %v21_v22 = vld [vmem:[%s385_s0] sm:$0xff]  ;;  %v42_v26 = vrot.slane %v37_v18, %v27_v12 }
   0x8   :  { %254 = vmatprep.subr.bf16.mxu0 %v276_v4  ;;  %v36_v23 = vsub.f32 %v22_v15, %v32_v17  ;;  %v35_v27 = vsub.f32 %v21_v22, %v28_v19  ;;  %v286_v30 = vld [vmem:[%s384_s3 + $0x40] sm:$0xff]  }
   0x9   :  { %v287_v32 = vld [vmem:[%s384_s3] sm:$0xff]  }
   0xa   :  { %v50_v25 = vmul.f32 %v46_v20, %v36_v23  ;;  %v49_v31 = vmul.f32 %v42_v26, %v35_v27  ;;  %v233_v35 = vld [vmem:[%s388_s4] ss:$0 sm:$0xff] }
   0xb   :  { %255 = vmatpush3.bf16.msra.mxu0 %v277_v6 }
   0xc   :  { %256 = vmatprep.subr.bf16.mxu0 %v278_v7  ;;  %v52_v29 = vpack.c.bf16 %v50_v25, %v50_v25  ;;  %v51_v33 = vpack.c.bf16 %v49_v31, %v49_v31 }
   0xe   :  { %220 = vmatprep.mubr.bf16.mxu0 %v52_v29 }
   0xf   :  { %257 = vmatpush3.bf16.msra.mxu0 %v279_v9 }
  0x10   :  { %258 = vmatprep.subr.bf16.mxu0 %v280_v10 }
  0x13   :  { %259 = vmatpush3.bf16.msra.mxu0 %v281_v13 }
  0x14   :  { %260 = vmatprep.subr.bf16.mxu0 %v282_v14 }
  0x17   :  { %261 = vmatpush3.bf16.msra.mxu0 %v283_v21 }
  0x18   :  { %262 = vmatprep.subr.bf16.mxu0 %v284_v24 }
  0x1b   :  { %263 = vmatpush3.bf16.msra.mxu0 %v285_v28 }
  0x1c   :  { %264 = vmatprep.subr.bf16.mxu0 %v286_v30 }
  0x1f   :  { %265 = vmatpush3.bf16.msra.mxu0 %v287_v32 }
  0x22   :  { %221 = vmatmul.mubr.bf16.vlgmr.msra.gmra.mxu0 %v51_v33 }
  0xe2   :  { %v266_v34 = vpop.f32.mrf.mxu0 }
  0xe4   :  { %v267_v36 = vpop.f32.mrf.mxu0 }
  0xe5   :  { %v268_v37 = vadd.f32 %v267_v36, %v266_v34 }
  0xe6   :  { %v269_v38 = vpop.f32.mrf.mxu0 }
  0xe7   :  { %v223_v39 = vadd.f32 %v268_v37, %v233_v35 }
  0xe8   :  { %v270_v40 = vpop.f32.mrf.mxu0 }
  0xe9   :  { %228 = vst [vmem:[%s389_s5] sm:$0xff] %v223_v39 }

// kernel: fasttext_forward.2
= control target key start
LH: loop header
LB: loop body
LE: loop exit
PB: predicated region body
PF: predicated region fallthrough
CT: control target
= control target key end

     0   :  { %s5659_s0 = inlined_call_operand.vmem [shape: s32[8,8], index: 0, kind: input, shape index: {}]   ;;  %s5660_s1 = inlined_call_operand.vmem [shape: f32[100,128], index: 1, kind: input, shape index: {}]   ;;  %s5661_s2 = inlined_call_operand.vmem [shape: bf16[128,256], index: 2, kind: input, shape index: {}]   ;;  %s5662_s3 = inlined_call_operand.vmem [shape: f32[1,256], index: 3, kind: input, shape index: {}]   ;;  %s5663_s4 = inlined_call_operand.vmem [shape: f32[8,256], index: 4, kind: output, shape index: {0}]   ;;  %s5664_s5 = inlined_call_operand.vmem [shape: f32[1,256], index: 5, kind: output, shape index: {1}]   ;;  %s5665_s6 = inlined_call_operand.vmem [shape: f32[1,256], index: 6, kind: output, shape index: {2}]  }
   0x1   :  { %s12_s23 = sshll.u32 %s5659_s0, 4  ;;  %s13_s23 = int_to_ptr.vmem [resolvable:$true] %s12_s23 }
   0x2   :  { %s5173_s24 = scalar_lea.vmem %s13_s23, 128  ;;  %p5178_p1 = scmp.lt.s32.totalorder %s13_s23, %s13_s23 }
   0x3   :  { %p5174_p0 = scmp.ne.s32.totalorder %s13_s23, %s5173_s24  ;;  %p5179_p2 = scmp.lt.s32.totalorder %s5173_s24, %s5173_s24 }
   0x5   :  { %p5180_p3 = por %p5179_p2, %p5178_p1 }
   0x7   :  { %p5181_p4 = pnand %p5180_p3, %p5174_p0 }
   0x9   :  { %5184 = shalt.err (!%p5181_p4)  }
   0xa   :  { %s5315_s25 = smov [#allocation5]  }
   0xb   :  { %15 = dma.vmem_to_smem %s13_s23, 128, %s5315_s25, [#allocation4] }
   0xc   :  { %5185 = dma.done.wait [#allocation4], 128 }
   0xd   :  { %5186 = vsyncadd [#allocation4], 4294967168 }
   0xe   :  { %17 = sfence }
   0xf   :  { %v27_v0 = vlaneseq  ;;  %s35_s26 = sld [smem:[#allocation5]]  ;;  %v5316_v2 = vmov 0.0  }
  0x11   :  { %vm5358_vm0 = vcmp.lt.s32.totalorder %v27_v0, 256 }
  0x12   :  { %31 = vst.msk [vmem:[%s5664_s5] sm:$0x3] %vm5358_vm0, %v5316_v2  ;;  %32 = vst.msk [vmem:[%s5665_s6] sm:$0x3] %vm5358_vm0, %v5316_v2 }
  0x15   :  { %s36_s8 = scalar_lea.vmem %s5660_s1, %s35_s26 }
  0x16   :  { %v55_v3 = vld [vmem:[%s36_s8] sm:$0x1] }
  0x17   :  { %56 = vst [vmem:[#allocation2] sm:$0x1] %v55_v3 }
  0x18   :  { %82 = vsyncadd [#allocation3], 16  ;;  %s4999_s9 = sld [smem:[#allocation5 + $0x1]] }
  0x1e   :  { %s85_s12 = scalar_lea.vmem %s5660_s1, %s4999_s9 }
  0x1f   :  { %v106_v4 = vld [vmem:[%s85_s12] sm:$0x1] }
  0x20   :  { %107 = vst [vmem:[#allocation2 + $0x1] sm:$0x1] %v106_v4 }
  0x21   :  { %133 = vsyncadd [#allocation3 + $0x1], 16  ;;  %s5000_s13 = sld [smem:[#allocation5 + $0x2]] }
  0x27   :  { %s136_s16 = scalar_lea.vmem %s5660_s1, %s5000_s13 }
  0x28   :  { %v157_v5 = vld [vmem:[%s136_s16] sm:$0x1] }
  0x29   :  { %158 = vst [vmem:[#allocation2 + $0x2] sm:$0x1] %v157_v5 }
  0x2a   :  { %184 = vsyncadd [#allocation3 + $0x2], 16  ;;  %s5001_s17 = sld [smem:[#allocation5 + $0x3]] }
  0x30   :  { %s187_s20 = scalar_lea.vmem %s5660_s1, %s5001_s17 }
  0x31   :  { %v208_v6 = vld [vmem:[%s187_s20] sm:$0x1] }
  0x32   :  { %209 = vst [vmem:[#allocation2 + $0x3] sm:$0x1] %v208_v6 }
  0x33   :  { %235 = vsyncadd [#allocation3 + $0x3], 16  ;;  %s5002_s21 = sld [smem:[#allocation5 + $0x4]] }
  0x39   :  { %s238_s24 = scalar_lea.vmem %s5660_s1, %s5002_s21 }
  0x3a   :  { %v259_v7 = vld [vmem:[%s238_s24] sm:$0x1] }
  0x3b   :  { %260 = vst [vmem:[#allocation2 + $0x4] sm:$0x1] %v259_v7 }
  0x3c   :  { %286 = vsyncadd [#allocation3 + $0x4], 16  ;;  %s5003_s25 = sld [smem:[#allocation5 + $0x5]] }
  0x42   :  { %s289_s27 = scalar_lea.vmem %s5660_s1, %s5003_s25 }
  0x43   :  { %v310_v8 = vld [vmem:[%s289_s27] sm:$0x1] }
  0x44   :  { %311 = vst [vmem:[#allocation2 + $0x5] sm:$0x1] %v310_v8 }
  0x45   :  { %337 = vsyncadd [#allocation3 + $0x5], 16  ;;  %s5004_s28 = sld [smem:[#allocation5 + $0x6]] }
  0x4b   :  { %s340_s7 = scalar_lea.vmem %s5660_s1, %s5004_s28 }
  0x4c   :  { %v361_v9 = vld [vmem:[%s340_s7] sm:$0x1] }
  0x4d   :  { %362 = vst [vmem:[#allocation2 + $0x6] sm:$0x1] %v361_v9 }
  0x4e   :  { %388 = vsyncadd [#allocation3 + $0x6], 16  ;;  %s5005_s8 = sld [smem:[#allocation5 + $0x7]] }
  0x54   :  { %s391_s11 = scalar_lea.vmem %s5660_s1, %s5005_s8 }
  0x55   :  { %v412_v10 = vld [vmem:[%s391_s11] sm:$0x1] }
  0x56   :  { %413 = vst [vmem:[#allocation2 + $0x7] sm:$0x1] %v412_v10 }
  0x57   :  { %439 = vsyncadd [#allocation3 + $0x7], 16  ;;  %s5006_s12 = sld [smem:[#allocation5 + $0x80]] }
  0x5d   :  { %s443_s15 = scalar_lea.vmem %s5660_s1, %s5006_s12 }
  0x5e   :  { %v464_v11 = vld [vmem:[%s443_s15] sm:$0x1] }
  0x5f   :  { %465 = vst [vmem:[#allocation2 + $0x8] sm:$0x1] %v464_v11 }
  0x60   :  { %491 = vsyncadd [#allocation3 + $0x8], 16  ;;  %s5007_s16 = sld [smem:[#allocation5 + $0x81]] }
  0x66   :  { %s494_s19 = scalar_lea.vmem %s5660_s1, %s5007_s16 }
  0x67   :  { %v515_v12 = vld [vmem:[%s494_s19] sm:$0x1] }
  0x68   :  { %516 = vst [vmem:[#allocation2 + $0x9] sm:$0x1] %v515_v12 }
  0x69   :  { %542 = vsyncadd [#allocation3 + $0x9], 16  ;;  %s5008_s20 = sld [smem:[#allocation5 + $0x82]] }
  0x6f   :  { %s545_s23 = scalar_lea.vmem %s5660_s1, %s5008_s20 }
  0x70   :  { %v566_v13 = vld [vmem:[%s545_s23] sm:$0x1] }
  0x71   :  { %567 = vst [vmem:[#allocation2 + $0xa] sm:$0x1] %v566_v13 }
  0x72   :  { %593 = vsyncadd [#allocation3 + $0xa], 16  ;;  %s5009_s24 = sld [smem:[#allocation5 + $0x83]] }
  0x78   :  { %s596_s0 = scalar_lea.vmem %s5660_s1, %s5009_s24 }
  0x79   :  { %v617_v14 = vld [vmem:[%s596_s0] sm:$0x1] }
  0x7a   :  { %618 = vst [vmem:[#allocation2 + $0xb] sm:$0x1] %v617_v14 }
  0x7b   :  { %644 = vsyncadd [#allocation3 + $0xb], 16  ;;  %s5010_s27 = sld [smem:[#allocation5 + $0x84]] }
  0x81   :  { %s647_s30 = scalar_lea.vmem %s5660_s1, %s5010_s27 }
  0x82   :  { %v668_v15 = vld [vmem:[%s647_s30] sm:$0x1] }
  0x83   :  { %669 = vst [vmem:[#allocation2 + $0xc] sm:$0x1] %v668_v15 }
  0x84   :  { %695 = vsyncadd [#allocation3 + $0xc], 16  ;;  %s5011_s7 = sld [smem:[#allocation5 + $0x85]] }
  0x8a   :  { %s698_s10 = scalar_lea.vmem %s5660_s1, %s5011_s7 }
  0x8b   :  { %v719_v16 = vld [vmem:[%s698_s10] sm:$0x1] }
  0x8c   :  { %720 = vst [vmem:[#allocation2 + $0xd] sm:$0x1] %v719_v16 }
  0x8d   :  { %746 = vsyncadd [#allocation3 + $0xd], 16  ;;  %s5012_s11 = sld [smem:[#allocation5 + $0x86]] }
  0x93   :  { %s749_s14 = scalar_lea.vmem %s5660_s1, %s5012_s11 }
  0x94   :  { %v770_v17 = vld [vmem:[%s749_s14] sm:$0x1] }
  0x95   :  { %771 = vst [vmem:[#allocation2 + $0xe] sm:$0x1] %v770_v17 }
  0x96   :  { %797 = vsyncadd [#allocation3 + $0xe], 16  ;;  %s5013_s15 = sld [smem:[#allocation5 + $0x87]] }
  0x9c   :  { %s800_s18 = scalar_lea.vmem %s5660_s1, %s5013_s15 }
  0x9d   :  { %v821_v18 = vld [vmem:[%s800_s18] sm:$0x1] }
  0x9e   :  { %822 = vst [vmem:[#allocation2 + $0xf] sm:$0x1] %v821_v18 }
  0x9f   :  { %848 = vsyncadd [#allocation3 + $0xf], 16  ;;  %s5014_s19 = sld [smem:[#allocation5 + $0x100]] }
  0xa5   :  { %s852_s22 = scalar_lea.vmem %s5660_s1, %s5014_s19 }
  0xa6   :  { %v873_v19 = vld [vmem:[%s852_s22] sm:$0x1] }
  0xa7   :  { %874 = vst [vmem:[#allocation2 + $0x10] sm:$0x1] %v873_v19 }
  0xa8   :  { %900 = vsyncadd [#allocation3 + $0x10], 16  ;;  %s5015_s23 = sld [smem:[#allocation5 + $0x101]] }
  0xae   :  { %s903_s26 = scalar_lea.vmem %s5660_s1, %s5015_s23 }
  0xaf   :  { %v924_v20 = vld [vmem:[%s903_s26] sm:$0x1] }
  0xb0   :  { %925 = vst [vmem:[#allocation2 + $0x11] sm:$0x1] %v924_v20 }
  0xb1   :  { %951 = vsyncadd [#allocation3 + $0x11], 16  ;;  %s5016_s0 = sld [smem:[#allocation5 + $0x102]] }
  0xb7   :  { %s954_s29 = scalar_lea.vmem %s5660_s1, %s5016_s0 }
  0xb8   :  { %v975_v21 = vld [vmem:[%s954_s29] sm:$0x1] }
  0xb9   :  { %976 = vst [vmem:[#allocation2 + $0x12] sm:$0x1] %v975_v21 }
  0xba   :  { %1002 = vsyncadd [#allocation3 + $0x12], 16  ;;  %s5017_s30 = sld [smem:[#allocation5 + $0x103]] }
  0xc0   :  { %s1005_s9 = scalar_lea.vmem %s5660_s1, %s5017_s30 }
  0xc1   :  { %v1026_v22 = vld [vmem:[%s1005_s9] sm:$0x1] }
  0xc2   :  { %1027 = vst [vmem:[#allocation2 + $0x13] sm:$0x1] %v1026_v22 }
  0xc3   :  { %1053 = vsyncadd [#allocation3 + $0x13], 16  ;;  %s5018_s10 = sld [smem:[#allocation5 + $0x104]] }
  0xc9   :  { %s1056_s13 = scalar_lea.vmem %s5660_s1, %s5018_s10 }
  0xca   :  { %v1077_v23 = vld [vmem:[%s1056_s13] sm:$0x1] }
  0xcb   :  { %1078 = vst [vmem:[#allocation2 + $0x14] sm:$0x1] %v1077_v23 }
  0xcc   :  { %1104 = vsyncadd [#allocation3 + $0x14], 16  ;;  %s5019_s14 = sld [smem:[#allocation5 + $0x105]] }
  0xd2   :  { %s1107_s17 = scalar_lea.vmem %s5660_s1, %s5019_s14 }
  0xd3   :  { %v1128_v24 = vld [vmem:[%s1107_s17] sm:$0x1] }
  0xd4   :  { %1129 = vst [vmem:[#allocation2 + $0x15] sm:$0x1] %v1128_v24 }
  0xd5   :  { %1155 = vsyncadd [#allocation3 + $0x15], 16  ;;  %s5020_s18 = sld [smem:[#allocation5 + $0x106]] }
  0xdb   :  { %s1158_s21 = scalar_lea.vmem %s5660_s1, %s5020_s18 }
  0xdc   :  { %v1179_v25 = vld [vmem:[%s1158_s21] sm:$0x1] }
  0xdd   :  { %1180 = vst [vmem:[#allocation2 + $0x16] sm:$0x1] %v1179_v25 }
  0xde   :  { %1206 = vsyncadd [#allocation3 + $0x16], 16  ;;  %s5021_s22 = sld [smem:[#allocation5 + $0x107]] }
  0xe4   :  { %s1209_s25 = scalar_lea.vmem %s5660_s1, %s5021_s22 }
  0xe5   :  { %v1230_v26 = vld [vmem:[%s1209_s25] sm:$0x1] }
  0xe6   :  { %1231 = vst [vmem:[#allocation2 + $0x17] sm:$0x1] %v1230_v26 }
  0xe7   :  { %1257 = vsyncadd [#allocation3 + $0x17], 16  ;;  %s5022_s26 = sld [smem:[#allocation5 + $0x180]] }
  0xed   :  { %s1261_s28 = scalar_lea.vmem %s5660_s1, %s5022_s26 }
  0xee   :  { %v1282_v27 = vld [vmem:[%s1261_s28] sm:$0x1] }
  0xef   :  { %1283 = vst [vmem:[#allocation2 + $0x18] sm:$0x1] %v1282_v27 }
  0xf0   :  { %1309 = vsyncadd [#allocation3 + $0x18], 16  ;;  %s5023_s29 = sld [smem:[#allocation5 + $0x181]] }
  0xf6   :  { %s1312_s8 = scalar_lea.vmem %s5660_s1, %s5023_s29 }
  0xf7   :  { %v1333_v28 = vld [vmem:[%s1312_s8] sm:$0x1] }
  0xf8   :  { %1334 = vst [vmem:[#allocation2 + $0x19] sm:$0x1] %v1333_v28 }
  0xf9   :  { %1360 = vsyncadd [#allocation3 + $0x19], 16  ;;  %s5024_s9 = sld [smem:[#allocation5 + $0x182]] }
  0xff   :  { %s1363_s12 = scalar_lea.vmem %s5660_s1, %s5024_s9 }
 0x100   :  { %v1384_v29 = vld [vmem:[%s1363_s12] sm:$0x1] }
 0x101   :  { %1385 = vst [vmem:[#allocation2 + $0x1a] sm:$0x1] %v1384_v29 }
 0x102   :  { %1411 = vsyncadd [#allocation3 + $0x1a], 16  ;;  %s5025_s13 = sld [smem:[#allocation5 + $0x183]] }
 0x108   :  { %s1414_s16 = scalar_lea.vmem %s5660_s1, %s5025_s13 }
 0x109   :  { %v1435_v30 = vld [vmem:[%s1414_s16] sm:$0x1] }
 0x10a   :  { %1436 = vst [vmem:[#allocation2 + $0x1b] sm:$0x1] %v1435_v30 }
 0x10b   :  { %1462 = vsyncadd [#allocation3 + $0x1b], 16  ;;  %s5026_s17 = sld [smem:[#allocation5 + $0x184]] }
 0x111   :  { %s1465_s20 = scalar_lea.vmem %s5660_s1, %s5026_s17 }
 0x112   :  { %v1486_v31 = vld [vmem:[%s1465_s20] sm:$0x1] }
 0x113   :  { %1487 = vst [vmem:[#allocation2 + $0x1c] sm:$0x1] %v1486_v31 }
 0x114   :  { %1513 = vsyncadd [#allocation3 + $0x1c], 16  ;;  %s5027_s21 = sld [smem:[#allocation5 + $0x185]] }
 0x11a   :  { %s1516_s24 = scalar_lea.vmem %s5660_s1, %s5027_s21 }
 0x11b   :  { %v1537_v32 = vld [vmem:[%s1516_s24] sm:$0x1] }
 0x11c   :  { %1538 = vst [vmem:[#allocation2 + $0x1d] sm:$0x1] %v1537_v32 }
 0x11d   :  { %1564 = vsyncadd [#allocation3 + $0x1d], 16  ;;  %s5028_s25 = sld [smem:[#allocation5 + $0x186]] }
 0x123   :  { %s1567_s27 = scalar_lea.vmem %s5660_s1, %s5028_s25 }
 0x124   :  { %v1588_v33 = vld [vmem:[%s1567_s27] sm:$0x1] }
 0x125   :  { %1589 = vst [vmem:[#allocation2 + $0x1e] sm:$0x1] %v1588_v33 }
 0x126   :  { %1615 = vsyncadd [#allocation3 + $0x1e], 16  ;;  %s5029_s28 = sld [smem:[#allocation5 + $0x187]] }
 0x12c   :  { %s1618_s7 = scalar_lea.vmem %s5660_s1, %s5029_s28 }
 0x12d   :  { %v1639_v34 = vld [vmem:[%s1618_s7] sm:$0x1] }
 0x12e   :  { %1640 = vst [vmem:[#allocation2 + $0x1f] sm:$0x1] %v1639_v34 }
 0x12f   :  { %1666 = vsyncadd [#allocation3 + $0x1f], 16  ;;  %s5030_s8 = sld [smem:[#allocation5 + $0x200]] }
 0x135   :  { %s1670_s11 = scalar_lea.vmem %s5660_s1, %s5030_s8 }
 0x136   :  { %v1691_v35 = vld [vmem:[%s1670_s11] sm:$0x1] }
 0x137   :  { %1692 = vst [vmem:[#allocation2 + $0x20] sm:$0x1] %v1691_v35 }
 0x138   :  { %1718 = vsyncadd [#allocation3 + $0x20], 16  ;;  %s5031_s12 = sld [smem:[#allocation5 + $0x201]] }
 0x13e   :  { %s1721_s15 = scalar_lea.vmem %s5660_s1, %s5031_s12 }
 0x13f   :  { %v1742_v36 = vld [vmem:[%s1721_s15] sm:$0x1] }
 0x140   :  { %1743 = vst [vmem:[#allocation2 + $0x21] sm:$0x1] %v1742_v36 }
 0x141   :  { %1769 = vsyncadd [#allocation3 + $0x21], 16  ;;  %s5032_s16 = sld [smem:[#allocation5 + $0x202]] }
 0x147   :  { %s1772_s19 = scalar_lea.vmem %s5660_s1, %s5032_s16 }
 0x148   :  { %v1793_v37 = vld [vmem:[%s1772_s19] sm:$0x1] }
 0x149   :  { %1794 = vst [vmem:[#allocation2 + $0x22] sm:$0x1] %v1793_v37 }
 0x14a   :  { %1820 = vsyncadd [#allocation3 + $0x22], 16  ;;  %s5033_s20 = sld [smem:[#allocation5 + $0x203]] }
 0x150   :  { %s1823_s23 = scalar_lea.vmem %s5660_s1, %s5033_s20 }
 0x151   :  { %v1844_v38 = vld [vmem:[%s1823_s23] sm:$0x1] }
 0x152   :  { %1845 = vst [vmem:[#allocation2 + $0x23] sm:$0x1] %v1844_v38 }
 0x153   :  { %1871 = vsyncadd [#allocation3 + $0x23], 16  ;;  %s5034_s24 = sld [smem:[#allocation5 + $0x204]] }
 0x159   :  { %s1874_s0 = scalar_lea.vmem %s5660_s1, %s5034_s24 }
 0x15a   :  { %v1895_v39 = vld [vmem:[%s1874_s0] sm:$0x1] }
 0x15b   :  { %1896 = vst [vmem:[#allocation2 + $0x24] sm:$0x1] %v1895_v39 }
 0x15c   :  { %1922 = vsyncadd [#allocation3 + $0x24], 16  ;;  %s5035_s27 = sld [smem:[#allocation5 + $0x205]] }
 0x162   :  { %s1925_s30 = scalar_lea.vmem %s5660_s1, %s5035_s27 }
 0x163   :  { %v1946_v40 = vld [vmem:[%s1925_s30] sm:$0x1] }
 0x164   :  { %1947 = vst [vmem:[#allocation2 + $0x25] sm:$0x1] %v1946_v40 }
 0x165   :  { %1973 = vsyncadd [#allocation3 + $0x25], 16  ;;  %s5036_s7 = sld [smem:[#allocation5 + $0x206]] }
 0x16b   :  { %s1976_s10 = scalar_lea.vmem %s5660_s1, %s5036_s7 }
 0x16c   :  { %v1997_v41 = vld [vmem:[%s1976_s10] sm:$0x1] }
 0x16d   :  { %1998 = vst [vmem:[#allocation2 + $0x26] sm:$0x1] %v1997_v41 }
 0x16e   :  { %2024 = vsyncadd [#allocation3 + $0x26], 16  ;;  %s5037_s11 = sld [smem:[#allocation5 + $0x207]] }
 0x174   :  { %s2027_s14 = scalar_lea.vmem %s5660_s1, %s5037_s11 }
 0x175   :  { %v2048_v42 = vld [vmem:[%s2027_s14] sm:$0x1] }
 0x176   :  { %2049 = vst [vmem:[#allocation2 + $0x27] sm:$0x1] %v2048_v42 }
 0x177   :  { %2075 = vsyncadd [#allocation3 + $0x27], 16  ;;  %s5038_s15 = sld [smem:[#allocation5 + $0x280]] }
 0x17d   :  { %s2079_s18 = scalar_lea.vmem %s5660_s1, %s5038_s15 }
 0x17e   :  { %v2100_v43 = vld [vmem:[%s2079_s18] sm:$0x1] }
 0x17f   :  { %2101 = vst [vmem:[#allocation2 + $0x28] sm:$0x1] %v2100_v43 }
 0x180   :  { %2127 = vsyncadd [#allocation3 + $0x28], 16  ;;  %s5039_s19 = sld [smem:[#allocation5 + $0x281]] }
 0x186   :  { %s2130_s22 = scalar_lea.vmem %s5660_s1, %s5039_s19 }
 0x187   :  { %v2151_v44 = vld [vmem:[%s2130_s22] sm:$0x1] }
 0x188   :  { %2152 = vst [vmem:[#allocation2 + $0x29] sm:$0x1] %v2151_v44 }
 0x189   :  { %2178 = vsyncadd [#allocation3 + $0x29], 16  ;;  %s5040_s23 = sld [smem:[#allocation5 + $0x282]] }
 0x18f   :  { %s2181_s26 = scalar_lea.vmem %s5660_s1, %s5040_s23 }
 0x190   :  { %v2202_v45 = vld [vmem:[%s2181_s26] sm:$0x1] }
 0x191   :  { %2203 = vst [vmem:[#allocation2 + $0x2a] sm:$0x1] %v2202_v45 }
 0x192   :  { %2229 = vsyncadd [#allocation3 + $0x2a], 16  ;;  %s5041_s0 = sld [smem:[#allocation5 + $0x283]] }
 0x198   :  { %s2232_s29 = scalar_lea.vmem %s5660_s1, %s5041_s0 }
 0x199   :  { %v2253_v46 = vld [vmem:[%s2232_s29] sm:$0x1] }
 0x19a   :  { %2254 = vst [vmem:[#allocation2 + $0x2b] sm:$0x1] %v2253_v46 }
 0x19b   :  { %2280 = vsyncadd [#allocation3 + $0x2b], 16  ;;  %s5042_s30 = sld [smem:[#allocation5 + $0x284]] }
 0x1a1   :  { %s2283_s9 = scalar_lea.vmem %s5660_s1, %s5042_s30 }
 0x1a2   :  { %v2304_v47 = vld [vmem:[%s2283_s9] sm:$0x1] }
 0x1a3   :  { %2305 = vst [vmem:[#allocation2 + $0x2c] sm:$0x1] %v2304_v47 }
 0x1a4   :  { %2331 = vsyncadd [#allocation3 + $0x2c], 16  ;;  %s5043_s10 = sld [smem:[#allocation5 + $0x285]] }
 0x1aa   :  { %s2334_s13 = scalar_lea.vmem %s5660_s1, %s5043_s10 }
 0x1ab   :  { %v2355_v48 = vld [vmem:[%s2334_s13] sm:$0x1] }
 0x1ac   :  { %2356 = vst [vmem:[#allocation2 + $0x2d] sm:$0x1] %v2355_v48 }
 0x1ad   :  { %2382 = vsyncadd [#allocation3 + $0x2d], 16  ;;  %s5044_s14 = sld [smem:[#allocation5 + $0x286]] }
 0x1b3   :  { %s2385_s17 = scalar_lea.vmem %s5660_s1, %s5044_s14 }
 0x1b4   :  { %v2406_v49 = vld [vmem:[%s2385_s17] sm:$0x1] }
 0x1b5   :  { %2407 = vst [vmem:[#allocation2 + $0x2e] sm:$0x1] %v2406_v49 }
 0x1b6   :  { %2433 = vsyncadd [#allocation3 + $0x2e], 16  ;;  %s5045_s18 = sld [smem:[#allocation5 + $0x287]] }
 0x1bc   :  { %s2436_s21 = scalar_lea.vmem %s5660_s1, %s5045_s18 }
 0x1bd   :  { %v2457_v50 = vld [vmem:[%s2436_s21] sm:$0x1] }
 0x1be   :  { %2458 = vst [vmem:[#allocation2 + $0x2f] sm:$0x1] %v2457_v50 }
 0x1bf   :  { %2484 = vsyncadd [#allocation3 + $0x2f], 16  ;;  %s5046_s22 = sld [smem:[#allocation5 + $0x300]] }
 0x1c5   :  { %s2488_s25 = scalar_lea.vmem %s5660_s1, %s5046_s22 }
 0x1c6   :  { %v2509_v51 = vld [vmem:[%s2488_s25] sm:$0x1] }
 0x1c7   :  { %2510 = vst [vmem:[#allocation2 + $0x30] sm:$0x1] %v2509_v51 }
 0x1c8   :  { %2536 = vsyncadd [#allocation3 + $0x30], 16  ;;  %s5047_s26 = sld [smem:[#allocation5 + $0x301]] }
 0x1ce   :  { %s2539_s28 = scalar_lea.vmem %s5660_s1, %s5047_s26 }
 0x1cf   :  { %v2560_v52 = vld [vmem:[%s2539_s28] sm:$0x1] }
 0x1d0   :  { %2561 = vst [vmem:[#allocation2 + $0x31] sm:$0x1] %v2560_v52 }
 0x1d1   :  { %2587 = vsyncadd [#allocation3 + $0x31], 16  ;;  %s5048_s29 = sld [smem:[#allocation5 + $0x302]] }
 0x1d7   :  { %s2590_s8 = scalar_lea.vmem %s5660_s1, %s5048_s29 }
 0x1d8   :  { %v2611_v53 = vld [vmem:[%s2590_s8] sm:$0x1] }
 0x1d9   :  { %2612 = vst [vmem:[#allocation2 + $0x32] sm:$0x1] %v2611_v53 }
 0x1da   :  { %2638 = vsyncadd [#allocation3 + $0x32], 16  ;;  %s5049_s9 = sld [smem:[#allocation5 + $0x303]] }
 0x1e0   :  { %s2641_s12 = scalar_lea.vmem %s5660_s1, %s5049_s9 }
 0x1e1   :  { %v2662_v54 = vld [vmem:[%s2641_s12] sm:$0x1] }
 0x1e2   :  { %2663 = vst [vmem:[#allocation2 + $0x33] sm:$0x1] %v2662_v54 }
 0x1e3   :  { %2689 = vsyncadd [#allocation3 + $0x33], 16  ;;  %s5050_s13 = sld [smem:[#allocation5 + $0x304]] }
 0x1e9   :  { %s2692_s16 = scalar_lea.vmem %s5660_s1, %s5050_s13 }
 0x1ea   :  { %v2713_v55 = vld [vmem:[%s2692_s16] sm:$0x1] }
 0x1eb   :  { %2714 = vst [vmem:[#allocation2 + $0x34] sm:$0x1] %v2713_v55 }
 0x1ec   :  { %2740 = vsyncadd [#allocation3 + $0x34], 16  ;;  %s5051_s17 = sld [smem:[#allocation5 + $0x305]] }
 0x1f2   :  { %s2743_s20 = scalar_lea.vmem %s5660_s1, %s5051_s17 }
 0x1f3   :  { %v2764_v56 = vld [vmem:[%s2743_s20] sm:$0x1] }
 0x1f4   :  { %2765 = vst [vmem:[#allocation2 + $0x35] sm:$0x1] %v2764_v56 }
 0x1f5   :  { %2791 = vsyncadd [#allocation3 + $0x35], 16  ;;  %s5052_s21 = sld [smem:[#allocation5 + $0x306]] }
 0x1fb   :  { %s2794_s24 = scalar_lea.vmem %s5660_s1, %s5052_s21 }
 0x1fc   :  { %v2815_v57 = vld [vmem:[%s2794_s24] sm:$0x1] }
 0x1fd   :  { %2816 = vst [vmem:[#allocation2 + $0x36] sm:$0x1] %v2815_v57 }
 0x1fe   :  { %2842 = vsyncadd [#allocation3 + $0x36], 16  ;;  %s5053_s25 = sld [smem:[#allocation5 + $0x307]] }
 0x204   :  { %s2845_s27 = scalar_lea.vmem %s5660_s1, %s5053_s25 }
 0x205   :  { %v2866_v58 = vld [vmem:[%s2845_s27] sm:$0x1] }
 0x206   :  { %2867 = vst [vmem:[#allocation2 + $0x37] sm:$0x1] %v2866_v58 }
 0x207   :  { %2893 = vsyncadd [#allocation3 + $0x37], 16  ;;  %s5054_s28 = sld [smem:[#allocation5 + $0x380]] }
 0x20d   :  { %s2897_s7 = scalar_lea.vmem %s5660_s1, %s5054_s28 }
 0x20e   :  { %v2918_v59 = vld [vmem:[%s2897_s7] sm:$0x1] }
 0x20f   :  { %2919 = vst [vmem:[#allocation2 + $0x38] sm:$0x1] %v2918_v59 }
 0x210   :  { %2945 = vsyncadd [#allocation3 + $0x38], 16  ;;  %s5055_s8 = sld [smem:[#allocation5 + $0x381]] }
 0x216   :  { %s2948_s11 = scalar_lea.vmem %s5660_s1, %s5055_s8 }
 0x217   :  { %v2969_v60 = vld [vmem:[%s2948_s11] sm:$0x1] }
 0x218   :  { %2970 = vst [vmem:[#allocation2 + $0x39] sm:$0x1] %v2969_v60 }
 0x219   :  { %2996 = vsyncadd [#allocation3 + $0x39], 16  ;;  %s5056_s12 = sld [smem:[#allocation5 + $0x382]] }
 0x21f   :  { %s2999_s15 = scalar_lea.vmem %s5660_s1, %s5056_s12 }
 0x220   :  { %v3020_v61 = vld [vmem:[%s2999_s15] sm:$0x1] }
 0x221   :  { %3021 = vst [vmem:[#allocation2 + $0x3a] sm:$0x1] %v3020_v61 }
 0x222   :  { %3047 = vsyncadd [#allocation3 + $0x3a], 16  ;;  %s5057_s16 = sld [smem:[#allocation5 + $0x383]] }
 0x228   :  { %s3050_s19 = scalar_lea.vmem %s5660_s1, %s5057_s16 }
 0x229   :  { %v3071_v62 = vld [vmem:[%s3050_s19] sm:$0x1] }
 0x22a   :  { %3072 = vst [vmem:[#allocation2 + $0x3b] sm:$0x1] %v3071_v62 }
 0x22b   :  { %3098 = vsyncadd [#allocation3 + $0x3b], 16  ;;  %s5058_s20 = sld [smem:[#allocation5 + $0x384]] }
 0x231   :  { %s3101_s23 = scalar_lea.vmem %s5660_s1, %s5058_s20 }
 0x232   :  { %v3122_v63 = vld [vmem:[%s3101_s23] sm:$0x1] }
 0x233   :  { %3123 = vst [vmem:[#allocation2 + $0x3c] sm:$0x1] %v3122_v63 }
 0x234   :  { %3149 = vsyncadd [#allocation3 + $0x3c], 16  ;;  %s5059_s24 = sld [smem:[#allocation5 + $0x385]] }
 0x23a   :  { %s3152_s0 = scalar_lea.vmem %s5660_s1, %s5059_s24 }
 0x23b   :  { %v3173_v3 = vld [vmem:[%s3152_s0] sm:$0x1] }
 0x23c   :  { %3174 = vst [vmem:[#allocation2 + $0x3d] sm:$0x1] %v3173_v3 }
 0x23d   :  { %3200 = vsyncadd [#allocation3 + $0x3d], 16  ;;  %s5060_s27 = sld [smem:[#allocation5 + $0x386]] }
 0x243   :  { %s3203_s30 = scalar_lea.vmem %s5660_s1, %s5060_s27 }
 0x244   :  { %v3224_v4 = vld [vmem:[%s3203_s30] sm:$0x1] }
 0x245   :  { %3225 = vst [vmem:[#allocation2 + $0x3e] sm:$0x1] %v3224_v4 }
 0x246   :  { %3251 = vsyncadd [#allocation3 + $0x3e], 16  ;;  %s5061_s7 = sld [smem:[#allocation5 + $0x387]] }
 0x24c   :  { %s3254_s10 = scalar_lea.vmem %s5660_s1, %s5061_s7 }
 0x24d   :  { %v3275_v5 = vld [vmem:[%s3254_s10] sm:$0x1] }
 0x24e   :  { %3276 = vst [vmem:[#allocation2 + $0x3f] sm:$0x1] %v3275_v5 }
 0x24f   :  { %3302 = vsyncadd [#allocation3 + $0x3f], 16 }
 0x250   :  { %5187 = dma.done.wait [#allocation3], 16 }
 0x251   :  { %5188 = vsyncadd [#allocation3], 4294967280 }
 0x252   :  { %5189 = dma.done.wait [#allocation3 + $0x1], 16 }
 0x253   :  { %5190 = vsyncadd [#allocation3 + $0x1], 4294967280 }
 0x254   :  { %5191 = dma.done.wait [#allocation3 + $0x2], 16 }
 0x255   :  { %5192 = vsyncadd [#allocation3 + $0x2], 4294967280 }
 0x256   :  { %5193 = dma.done.wait [#allocation3 + $0x3], 16 }
 0x257   :  { %5194 = vsyncadd [#allocation3 + $0x3], 4294967280 }
 0x258   :  { %5195 = dma.done.wait [#allocation3 + $0x4], 16 }
 0x259   :  { %5196 = vsyncadd [#allocation3 + $0x4], 4294967280 }
 0x25a   :  { %5197 = dma.done.wait [#allocation3 + $0x5], 16 }
 0x25b   :  { %5198 = vsyncadd [#allocation3 + $0x5], 4294967280 }
 0x25c   :  { %5199 = dma.done.wait [#allocation3 + $0x6], 16 }
 0x25d   :  { %5200 = vsyncadd [#allocation3 + $0x6], 4294967280 }
 0x25e   :  { %5201 = dma.done.wait [#allocation3 + $0x7], 16 }
 0x25f   :  { %5202 = vsyncadd [#allocation3 + $0x7], 4294967280 }
 0x260   :  { %5203 = dma.done.wait [#allocation3 + $0x8], 16 }
 0x261   :  { %5204 = vsyncadd [#allocation3 + $0x8], 4294967280 }
 0x262   :  { %5205 = dma.done.wait [#allocation3 + $0x9], 16 }
 0x263   :  { %5206 = vsyncadd [#allocation3 + $0x9], 4294967280 }
 0x264   :  { %5207 = dma.done.wait [#allocation3 + $0xa], 16 }
 0x265   :  { %5208 = vsyncadd [#allocation3 + $0xa], 4294967280 }
 0x266   :  { %5209 = dma.done.wait [#allocation3 + $0xb], 16 }
 0x267   :  { %5210 = vsyncadd [#allocation3 + $0xb], 4294967280 }
 0x268   :  { %5211 = dma.done.wait [#allocation3 + $0xc], 16 }
 0x269   :  { %5212 = vsyncadd [#allocation3 + $0xc], 4294967280 }
 0x26a   :  { %5213 = dma.done.wait [#allocation3 + $0xd], 16 }
 0x26b   :  { %5214 = vsyncadd [#allocation3 + $0xd], 4294967280 }
 0x26c   :  { %5215 = dma.done.wait [#allocation3 + $0xe], 16 }
 0x26d   :  { %5216 = vsyncadd [#allocation3 + $0xe], 4294967280 }
 0x26e   :  { %5217 = dma.done.wait [#allocation3 + $0xf], 16 }
 0x26f   :  { %5218 = vsyncadd [#allocation3 + $0xf], 4294967280 }
 0x270   :  { %5219 = dma.done.wait [#allocation3 + $0x10], 16 }
 0x271   :  { %5220 = vsyncadd [#allocation3 + $0x10], 4294967280 }
 0x272   :  { %5221 = dma.done.wait [#allocation3 + $0x11], 16 }
 0x273   :  { %5222 = vsyncadd [#allocation3 + $0x11], 4294967280 }
 0x274   :  { %5223 = dma.done.wait [#allocation3 + $0x12], 16 }
 0x275   :  { %5224 = vsyncadd [#allocation3 + $0x12], 4294967280 }
 0x276   :  { %5225 = dma.done.wait [#allocation3 + $0x13], 16 }
 0x277   :  { %5226 = vsyncadd [#allocation3 + $0x13], 4294967280 }
 0x278   :  { %5227 = dma.done.wait [#allocation3 + $0x14], 16 }
 0x279   :  { %5228 = vsyncadd [#allocation3 + $0x14], 4294967280 }
 0x27a   :  { %5229 = dma.done.wait [#allocation3 + $0x15], 16 }
 0x27b   :  { %5230 = vsyncadd [#allocation3 + $0x15], 4294967280 }
 0x27c   :  { %5231 = dma.done.wait [#allocation3 + $0x16], 16 }
 0x27d   :  { %5232 = vsyncadd [#allocation3 + $0x16], 4294967280 }
 0x27e   :  { %5233 = dma.done.wait [#allocation3 + $0x17], 16 }
 0x27f   :  { %5234 = vsyncadd [#allocation3 + $0x17], 4294967280 }
 0x280   :  { %5235 = dma.done.wait [#allocation3 + $0x18], 16 }
 0x281   :  { %5236 = vsyncadd [#allocation3 + $0x18], 4294967280 }
 0x282   :  { %5237 = dma.done.wait [#allocation3 + $0x19], 16 }
 0x283   :  { %5238 = vsyncadd [#allocation3 + $0x19], 4294967280 }
 0x284   :  { %5239 = dma.done.wait [#allocation3 + $0x1a], 16 }
 0x285   :  { %5240 = vsyncadd [#allocation3 + $0x1a], 4294967280 }
 0x286   :  { %5241 = dma.done.wait [#allocation3 + $0x1b], 16 }
 0x287   :  { %5242 = vsyncadd [#allocation3 + $0x1b], 4294967280 }
 0x288   :  { %5243 = dma.done.wait [#allocation3 + $0x1c], 16 }
 0x289   :  { %5244 = vsyncadd [#allocation3 + $0x1c], 4294967280 }
 0x28a   :  { %5245 = dma.done.wait [#allocation3 + $0x1d], 16 }
 0x28b   :  { %5246 = vsyncadd [#allocation3 + $0x1d], 4294967280 }
 0x28c   :  { %5247 = dma.done.wait [#allocation3 + $0x1e], 16 }
 0x28d   :  { %5248 = vsyncadd [#allocation3 + $0x1e], 4294967280 }
 0x28e   :  { %5249 = dma.done.wait [#allocation3 + $0x1f], 16 }
 0x28f   :  { %5250 = vsyncadd [#allocation3 + $0x1f], 4294967280 }
 0x290   :  { %5251 = dma.done.wait [#allocation3 + $0x20], 16 }
 0x291   :  { %5252 = vsyncadd [#allocation3 + $0x20], 4294967280 }
 0x292   :  { %5253 = dma.done.wait [#allocation3 + $0x21], 16 }
 0x293   :  { %5254 = vsyncadd [#allocation3 + $0x21], 4294967280 }
 0x294   :  { %5255 = dma.done.wait [#allocation3 + $0x22], 16 }
 0x295   :  { %5256 = vsyncadd [#allocation3 + $0x22], 4294967280 }
 0x296   :  { %5257 = dma.done.wait [#allocation3 + $0x23], 16 }
 0x297   :  { %5258 = vsyncadd [#allocation3 + $0x23], 4294967280 }
 0x298   :  { %5259 = dma.done.wait [#allocation3 + $0x24], 16 }
 0x299   :  { %5260 = vsyncadd [#allocation3 + $0x24], 4294967280 }
 0x29a   :  { %5261 = dma.done.wait [#allocation3 + $0x25], 16 }
 0x29b   :  { %5262 = vsyncadd [#allocation3 + $0x25], 4294967280 }
 0x29c   :  { %5263 = dma.done.wait [#allocation3 + $0x26], 16 }
 0x29d   :  { %5264 = vsyncadd [#allocation3 + $0x26], 4294967280 }
 0x29e   :  { %5265 = dma.done.wait [#allocation3 + $0x27], 16 }
 0x29f   :  { %5266 = vsyncadd [#allocation3 + $0x27], 4294967280 }
 0x2a0   :  { %5267 = dma.done.wait [#allocation3 + $0x28], 16 }
 0x2a1   :  { %5268 = vsyncadd [#allocation3 + $0x28], 4294967280 }
 0x2a2   :  { %5269 = dma.done.wait [#allocation3 + $0x29], 16 }
 0x2a3   :  { %5270 = vsyncadd [#allocation3 + $0x29], 4294967280 }
 0x2a4   :  { %5271 = dma.done.wait [#allocation3 + $0x2a], 16 }
 0x2a5   :  { %5272 = vsyncadd [#allocation3 + $0x2a], 4294967280 }
 0x2a6   :  { %5273 = dma.done.wait [#allocation3 + $0x2b], 16 }
 0x2a7   :  { %5274 = vsyncadd [#allocation3 + $0x2b], 4294967280 }
 0x2a8   :  { %5275 = dma.done.wait [#allocation3 + $0x2c], 16 }
 0x2a9   :  { %5276 = vsyncadd [#allocation3 + $0x2c], 4294967280 }
 0x2aa   :  { %5277 = dma.done.wait [#allocation3 + $0x2d], 16 }
 0x2ab   :  { %5278 = vsyncadd [#allocation3 + $0x2d], 4294967280 }
 0x2ac   :  { %5279 = dma.done.wait [#allocation3 + $0x2e], 16 }
 0x2ad   :  { %5280 = vsyncadd [#allocation3 + $0x2e], 4294967280 }
 0x2ae   :  { %5281 = dma.done.wait [#allocation3 + $0x2f], 16 }
 0x2af   :  { %5282 = vsyncadd [#allocation3 + $0x2f], 4294967280 }
 0x2b0   :  { %5283 = dma.done.wait [#allocation3 + $0x30], 16 }
 0x2b1   :  { %5284 = vsyncadd [#allocation3 + $0x30], 4294967280 }
 0x2b2   :  { %5285 = dma.done.wait [#allocation3 + $0x31], 16 }
 0x2b3   :  { %5286 = vsyncadd [#allocation3 + $0x31], 4294967280 }
 0x2b4   :  { %5287 = dma.done.wait [#allocation3 + $0x32], 16 }
 0x2b5   :  { %5288 = vsyncadd [#allocation3 + $0x32], 4294967280 }
 0x2b6   :  { %5289 = dma.done.wait [#allocation3 + $0x33], 16 }
 0x2b7   :  { %5290 = vsyncadd [#allocation3 + $0x33], 4294967280 }
 0x2b8   :  { %5291 = dma.done.wait [#allocation3 + $0x34], 16 }
 0x2b9   :  { %5292 = vsyncadd [#allocation3 + $0x34], 4294967280 }
 0x2ba   :  { %5293 = dma.done.wait [#allocation3 + $0x35], 16 }
 0x2bb   :  { %5294 = vsyncadd [#allocation3 + $0x35], 4294967280 }
 0x2bc   :  { %5295 = dma.done.wait [#allocation3 + $0x36], 16 }
 0x2bd   :  { %5296 = vsyncadd [#allocation3 + $0x36], 4294967280 }
 0x2be   :  { %5297 = dma.done.wait [#allocation3 + $0x37], 16 }
 0x2bf   :  { %5298 = vsyncadd [#allocation3 + $0x37], 4294967280 }
 0x2c0   :  { %5299 = dma.done.wait [#allocation3 + $0x38], 16 }
 0x2c1   :  { %5300 = vsyncadd [#allocation3 + $0x38], 4294967280 }
 0x2c2   :  { %5301 = dma.done.wait [#allocation3 + $0x39], 16 }
 0x2c3   :  { %5302 = vsyncadd [#allocation3 + $0x39], 4294967280 }
 0x2c4   :  { %5303 = dma.done.wait [#allocation3 + $0x3a], 16 }
 0x2c5   :  { %5304 = vsyncadd [#allocation3 + $0x3a], 4294967280 }
 0x2c6   :  { %5305 = dma.done.wait [#allocation3 + $0x3b], 16 }
 0x2c7   :  { %5306 = vsyncadd [#allocation3 + $0x3b], 4294967280 }
 0x2c8   :  { %5307 = dma.done.wait [#allocation3 + $0x3c], 16 }
 0x2c9   :  { %5308 = vsyncadd [#allocation3 + $0x3c], 4294967280 }
 0x2ca   :  { %5309 = dma.done.wait [#allocation3 + $0x3d], 16 }
 0x2cb   :  { %5310 = vsyncadd [#allocation3 + $0x3d], 4294967280 }
 0x2cc   :  { %5311 = dma.done.wait [#allocation3 + $0x3e], 16 }
 0x2cd   :  { %5312 = vsyncadd [#allocation3 + $0x3e], 4294967280 }
 0x2ce   :  { %5313 = dma.done.wait [#allocation3 + $0x3f], 16 }
 0x2cf   :  { %5314 = vsyncadd [#allocation3 + $0x3f], 4294967280  ;;  %v5317_v6 = vmov 0   ;;  %v5147_v7 = vld [vmem:[%s5661_s2 + $0x74] ss:$8 sps:$4 sm:$0xff]   ;;  %v3432_v16 = vld [vmem:[#allocation2] sm:$0xff] }
 0x2d0   :  { %3668 = vmatprep.mubr.bf16.mxu0 %v5317_v6  ;;  %v5149_v8 = vld [vmem:[%s5661_s2 + $0x70] ss:$8 sps:$4 sm:$0xff]   ;;  %3636 = vmatprep.subr.bf16.mxu0 %v5147_v7  ;;  %v5150_v9 = vld [vmem:[%s5661_s2 + $0x64] ss:$8 sps:$4 sm:$0xff]   ;;  %v5152_v10 = vld [vmem:[%s5661_s2 + $0x60] ss:$8 sps:$4 sm:$0xff]  }
 0x2d1   :  { %3637 = vmatpush1.bf16.msra.mxu0 %v5149_v8  ;;  %v5153_v11 = vld [vmem:[%s5661_s2 + $0x54] ss:$8 sps:$4 sm:$0xff]   ;;  %v5155_v12 = vld [vmem:[%s5661_s2 + $0x50] ss:$8 sps:$4 sm:$0xff]   ;;  %v5156_v13 = vld [vmem:[%s5661_s2 + $0x44] ss:$8 sps:$4 sm:$0xff]  }
 0x2d2   :  { %3638 = vmatprep.subr.bf16.mxu0 %v5150_v9  ;;  %v5158_v14 = vld [vmem:[%s5661_s2 + $0x40] ss:$8 sps:$4 sm:$0xff]   ;;  %v5159_v15 = vld [vmem:[%s5661_s2 + $0x34] ss:$8 sps:$4 sm:$0xff]   ;;  %v3440_v20 = vrot.slane %v3432_v16, 4  ;;  %vm3540_vm1 = vcmask 1041409  }
 0x2d3   :  { %v3433_v17 = vld [vmem:[#allocation2 + $0x8] sm:$0xff]  ;;  %v3434_v18 = vld [vmem:[#allocation2 + $0x10] sm:$0xff]  ;;  %v3435_v19 = vld [vmem:[#allocation2 + $0x18] sm:$0xff]  ;;  %vm3542_vm2 = vcmask 1042434   ;;  %vm3544_vm3 = vcmask 1043459   ;;  %vm3546_vm4 = vcmask 1044484  }
 0x2d4   :  { %v3436_v21 = vld [vmem:[#allocation2 + $0x20] sm:$0xff]  ;;  %v3437_v22 = vld [vmem:[#allocation2 + $0x28] sm:$0xff]  ;;  %v3438_v23 = vld [vmem:[#allocation2 + $0x30] sm:$0xff]  ;;  %v3446_v24 = vrot.slane %v3433_v17, 4  ;;  %v3452_v25 = vrot.slane %v3434_v18, 4  ;;  %v3458_v26 = vrot.slane %v3435_v19, 4  ;;  %v3441_v28 = vadd.f32 %v3440_v20, %v3432_v16 }
 0x2d5   :  { %3639 = vmatpush1.bf16.msra.mxu0 %v5152_v10  ;;  %v3439_v27 = vld [vmem:[#allocation2 + $0x38] sm:$0xff]  ;;  %v3464_v29 = vrot.slane %v3436_v21, 4  ;;  %v3470_v30 = vrot.slane %v3437_v22, 4  ;;  %v3476_v31 = vrot.slane %v3438_v23, 4  ;;  %v5162_v41 = vld [vmem:[%s5661_s2 + $0x24] ss:$8 sps:$4 sm:$0xff]  }
 0x2d6   :  { %3640 = vmatprep.subr.bf16.mxu0 %v5153_v11  ;;  %v3447_v32 = vadd.f32 %v3446_v24, %v3433_v17  ;;  %v3453_v33 = vadd.f32 %v3452_v25, %v3434_v18  ;;  %v3459_v34 = vadd.f32 %v3458_v26, %v3435_v19  ;;  %v3482_v35 = vrot.slane %v3439_v27, 4  ;;  %v5161_v36 = vld [vmem:[%s5661_s2 + $0x30] ss:$8 sps:$4 sm:$0xff]   ;;  %v5164_v54 = vld [vmem:[%s5661_s2 + $0x20] ss:$8 sps:$4 sm:$0xff]  }
 0x2d7   :  { %v3442_v37 = vrot.slane %v3441_v28, 2  ;;  %v3465_v38 = vadd.f32 %v3464_v29, %v3436_v21  ;;  %v3471_v39 = vadd.f32 %v3470_v30, %v3437_v22  ;;  %v3477_v40 = vadd.f32 %v3476_v31, %v3438_v23  ;;  %v5165_v59 = vld [vmem:[%s5661_s2 + $0x14] ss:$8 sps:$4 sm:$0xff]   ;;  %v5167_v11 = vld [vmem:[%s5661_s2 + $0x10] ss:$8 sps:$4 sm:$0xff]  }
 0x2d8   :  { %v3448_v42 = vrot.slane %v3447_v32, 2  ;;  %v3454_v43 = vrot.slane %v3453_v33, 2  ;;  %v3460_v44 = vrot.slane %v3459_v34, 2  ;;  %v3483_v45 = vadd.f32 %v3482_v35, %v3439_v27  ;;  %v5168_v16 = vld [vmem:[%s5661_s2 + $0x4] ss:$8 sps:$4 sm:$0xff]  }
 0x2d9   :  { %3641 = vmatpush1.bf16.msra.mxu0 %v5155_v12  ;;  %v3443_v46 = vadd.f32 %v3442_v37, %v3441_v28  ;;  %v3466_v47 = vrot.slane %v3465_v38, 2  ;;  %v3472_v48 = vrot.slane %v3471_v39, 2  ;;  %v3478_v49 = vrot.slane %v3477_v40, 2  ;;  %v5170_v29 = vld [vmem:[%s5661_s2] ss:$8 sps:$4 sm:$0xff]  }
 0x2da   :  { %3642 = vmatprep.subr.bf16.mxu0 %v5156_v13  ;;  %v3449_v50 = vadd.f32 %v3448_v42, %v3447_v32  ;;  %v3455_v51 = vadd.f32 %v3454_v43, %v3453_v33  ;;  %v3461_v52 = vadd.f32 %v3460_v44, %v3459_v34  ;;  %v3484_v53 = vrot.slane %v3483_v45, 2  ;;  %v3512_v44 = vld [vmem:[%s5662_s3] sm:$0x3] }
 0x2db   :  { %v3444_v55 = vrot.slane %v3443_v46, 1  ;;  %v3467_v56 = vadd.f32 %v3466_v47, %v3465_v38  ;;  %v3473_v57 = vadd.f32 %v3472_v48, %v3471_v39  ;;  %v3479_v58 = vadd.f32 %v3478_v49, %v3477_v40 }
 0x2dc   :  { %v3450_v60 = vrot.slane %v3449_v50, 1  ;;  %v3456_v61 = vrot.slane %v3455_v51, 1  ;;  %v3462_v62 = vrot.slane %v3461_v52, 1  ;;  %v3485_v63 = vadd.f32 %v3484_v53, %v3483_v45 }
 0x2dd   :  { %3643 = vmatpush1.bf16.msra.mxu0 %v5158_v14  ;;  %v3445_v3 = vadd.f32 %v3444_v55, %v3443_v46  ;;  %v3468_v4 = vrot.slane %v3467_v56, 1  ;;  %v3474_v5 = vrot.slane %v3473_v57, 1  ;;  %v3480_v6 = vrot.slane %v3479_v58, 1 }
 0x2de   :  { %3644 = vmatprep.subr.bf16.mxu0 %v5159_v15  ;;  %v3451_v7 = vadd.f32 %v3450_v60, %v3449_v50  ;;  %v3457_v8 = vadd.f32 %v3456_v61, %v3455_v51  ;;  %v3463_v9 = vadd.f32 %v3462_v62, %v3461_v52  ;;  %v3486_v10 = vrot.slane %v3485_v63, 1 }
 0x2df   :  { %v3469_v12 = vadd.f32 %v3468_v4, %v3467_v56  ;;  %v3475_v13 = vadd.f32 %v3474_v5, %v3473_v57  ;;  %v3481_v14 = vadd.f32 %v3480_v6, %v3479_v58  ;;  %v3488_v15 = vpack.c.bf16 %v3445_v3, %v3445_v3 }
 0x2e0   :  { %v3487_v17 = vadd.f32 %v3486_v10, %v3485_v63  ;;  %v3489_v18 = vpack.c.bf16 %v3451_v7, %v3451_v7  ;;  %v3490_v19 = vpack.c.bf16 %v3457_v8, %v3457_v8  ;;  %v3491_v20 = vpack.c.bf16 %v3463_v9, %v3463_v9 }
 0x2e1   :  { %3645 = vmatpush1.bf16.msra.mxu0 %v5161_v36  ;;  %v3492_v21 = vpack.c.bf16 %v3469_v12, %v3469_v12  ;;  %v3493_v22 = vpack.c.bf16 %v3475_v13, %v3475_v13  ;;  %v3494_v23 = vpack.c.bf16 %v3481_v14, %v3481_v14  ;;  %v3532_v24 = vunpack.c.l.b16 %v3488_v15 }
 0x2e2   :  { %3646 = vmatprep.subr.bf16.mxu0 %v5162_v41  ;;  %v3495_v25 = vpack.c.bf16 %v3487_v17, %v3487_v17  ;;  %v3533_v26 = vunpack.c.l.b16 %v3489_v18  ;;  %v3534_v27 = vunpack.c.l.b16 %v3490_v19  ;;  %v3535_v28 = vunpack.c.l.b16 %v3491_v20 }
 0x2e3   :  { %v3536_v30 = vunpack.c.l.b16 %v3492_v21  ;;  %v3537_v31 = vunpack.c.l.b16 %v3493_v22  ;;  %v3538_v33 = vunpack.c.l.b16 %v3494_v23  ;;  %vm3548_vm5 = vcmask 1045509  }
 0x2e4   :  { %v3541_v32 = vsel %vm3540_vm1, %v3533_v26, %v3532_v24  ;;  %v3539_v35 = vunpack.c.l.b16 %v3495_v25  ;;  %vm3550_vm6 = vcmask 1046534   ;;  %vm3552_vm7 = vcmask 1047559  }
 0x2e5   :  { %3647 = vmatpush1.bf16.msra.mxu0 %v5164_v54  ;;  %v3543_v34 = vsel %vm3542_vm2, %v3534_v27, %v3541_v32  ;;  %v3515_v42 = vshrl.u32 %v27_v0, 7  ;;  %v5318_v61 = vmov 1966171168   ;;  %v3688_v27 = vld [vmem:[%s5664_s5] sm:$0x3] }
 0x2e6   :  { %3648 = vmatprep.subr.bf16.mxu0 %v5165_v59  ;;  %v3545_v36 = vsel %vm3544_vm3, %v3535_v28, %v3543_v34  ;;  %v3705_v62 = vunpack.c.l.s4 %v5318_v61 }
 0x2e7   :  { %v3547_v37 = vsel %vm3546_vm4, %v3536_v30, %v3545_v36  ;;  %v3516_v43 = vsub.s32 0, %v3515_v42  ;;  %v3520_v45 = vsub.s32 1, %v3515_v42  ;;  %vm3683_vm8 = vcmp.lt.s32.totalorder %v3515_v42, 2  ;;  %v3725_v30 = vld [vmem:[%s5665_s6] sm:$0x3] }
 0x2e8   :  { %v3549_v38 = vsel %vm3548_vm5, %v3537_v31, %v3547_v37  ;;  %v5078_v49 = vsel %vm3683_vm8, 1.0, %v5316_v2  ;;  %v3706_v10 = vunpack.c.0.s8 %v3705_v62 }
 0x2e9   :  { %3649 = vmatpush1.bf16.msra.mxu0 %v5167_v11  ;;  %v3551_v39 = vsel %vm3550_vm6, %v3538_v33, %v3549_v38  ;;  %v3517_v46 = vrot.slane %v3512_v44, %v3516_v43  ;;  %v3521_v47 = vrot.slane %v3512_v44, %v3520_v45 }
 0x2ea   :  { %3650 = vmatprep.subr.bf16.mxu0 %v5168_v16  ;;  %v3553_v40 = vsel %vm3552_vm7, %v3539_v35, %v3551_v39  ;;  %v3709_v19 = vsub.s32 %v3706_v10, %v3515_v42 }
 0x2eb   :  { %v3554_v41 = vpack.c.b16 %v3553_v40, %v3553_v40 }
 0x2ed   :  { %3651 = vmatpush1.bf16.msra.mxu0 %v5170_v29 }
 0x2f0   :  { %3669 = vmatmul.mubr.bf16.vlgmr.msra.gmra.mxu0 %v3554_v41 }
 0x3b0   :  { %v3670_v48 = vpop.f32.mrf.mxu0 }
 0x3b1   :  { %v3671_v50 = vadd.f32 %v3670_v48, %v3517_v46 }
 0x3b2   :  { %v3672_v51 = vpop.f32.mrf.mxu0 }
 0x3b3   :  { %3677 = vst [vmem:[%s5663_s4] sm:$0xff] %v3671_v50  ;;  %v3686_v52 = vmul.f32 %v5078_v49, %v3671_v50  ;;  %v3673_v0 = vadd.f32 %v3672_v51, %v3521_v47 }
 0x3b4   :  { %v3674_v53 = vpop.f32.mrf.mxu0 }
 0x3b5   :  { %v3689_v54 = vrot.slane %v3686_v52, 4  ;;  %v3726_v55 = vmul.f32 %v3686_v52, %v3671_v50  ;;  %3678 = vst [vmem:[%s5663_s4 + $0x8] sm:$0xff] %v3673_v0  ;;  %v3687_v56 = vmul.f32 %v5078_v49, %v3673_v0 }
 0x3b6   :  { %v3675_v57 = vpop.f32.mrf.mxu0 }
 0x3b7   :  { %v3690_v58 = vadd.f32 %v3689_v54, %v3686_v52  ;;  %v3728_v59 = vrot.slane %v3726_v55, 4  ;;  %v3695_v2 = vrot.slane %v3687_v56, 4  ;;  %v3727_v60 = vmul.f32 %v3687_v56, %v3673_v0 }
 0x3b9   :  { %v3691_v63 = vrot.slane %v3690_v58, 2  ;;  %v3729_v3 = vadd.f32 %v3728_v59, %v3726_v55  ;;  %v3696_v4 = vadd.f32 %v3695_v2, %v3687_v56  ;;  %v3734_v5 = vrot.slane %v3727_v60, 4 }
 0x3bb   :  { %v3692_v6 = vadd.f32 %v3691_v63, %v3690_v58  ;;  %v3730_v7 = vrot.slane %v3729_v3, 2  ;;  %v3697_v8 = vrot.slane %v3696_v4, 2  ;;  %v3735_v9 = vadd.f32 %v3734_v5, %v3727_v60 }
 0x3bd   :  { %v3693_v11 = vrot.slane %v3692_v6, 1  ;;  %v3731_v12 = vadd.f32 %v3730_v7, %v3729_v3  ;;  %v3698_v13 = vadd.f32 %v3697_v8, %v3696_v4  ;;  %v3736_v14 = vrot.slane %v3735_v9, 2 }
 0x3bf   :  { %v3732_v15 = vrot.slane %v3731_v12, 1  ;;  %v3699_v16 = vrot.slane %v3698_v13, 1  ;;  %v3737_v17 = vadd.f32 %v3736_v14, %v3735_v9  ;;  %v3694_v18 = vadd.f32 %v3693_v11, %v3692_v6 }
 0x3c1   :  { %v3700_v20 = vadd.f32 %v3699_v16, %v3698_v13  ;;  %v3738_v21 = vrot.slane %v3737_v17, 1  ;;  %v3733_v22 = vadd.f32 %v3732_v15, %v3731_v12 }
 0x3c3   :  { %v3703_v23 = vcombine.low %v3694_v18, %v3700_v20  ;;  %v3739_v24 = vadd.f32 %v3738_v21, %v3737_v17 }
 0x3c5   :  { %v3710_v25 = vrot.slane %v3703_v23, %v3709_v19  ;;  %v3742_v26 = vcombine.low %v3733_v22, %v3739_v24 }
 0x3c7   :  { %v3717_v28 = vrot.slane %v3710_v25, %v3709_v19  ;;  %v3749_v29 = vrot.slane %v3742_v26, %v3709_v19 }
 0x3c9   :  { %v3719_v31 = vadd.f32 %v3717_v28, %v3688_v27  ;;  %v3756_v32 = vrot.slane %v3749_v29, %v3709_v19 }
 0x3cb   :  { %3724 = vst.msk [vmem:[%s5664_s5] sm:$0x3] %vm5358_vm0, %v3719_v31  ;;  %v3758_v33 = vadd.f32 %v3756_v32, %v3725_v30 }
 0x3cd   :  { %3759 = vst.msk [vmem:[%s5665_s6] sm:$0x3] %vm5358_vm0, %v3758_v33 }
 0x3d2   :  { %v3763_v34 = vld [vmem:[%s5664_s5] sm:$0x3] }
 0x3d3   :  { %v3764_v35 = vmul.f32 0.5, %v3763_v34 }
 0x3d4   :  { %v3765_v36 = vld [vmem:[%s5665_s6] sm:$0x3] }
 0x3d5   :  { %v3766_v37 = vmul.f32 0.5, %v3765_v36  ;;  %v3767_v38 = vmul.f32 %v3764_v35, %v3764_v35  ;;  %3769 = vst.msk [vmem:[%s5664_s5] sm:$0x3] %vm5358_vm0, %v3764_v35 }
 0x3d7   :  { %v3768_v39 = vsub.f32 %v3766_v37, %v3767_v38 }
 0x3d9   :  { %v3770_v40 = vadd.f32 1e-05, %v3768_v39 }
 0x3db   :  { %5171 = vrsqrt.f32 %v3770_v40 }
 0x3e8   :  { %v5172_v41 = vpop.eup %5171 }
 0x3e9   :  { %3772 = vst.msk [vmem:[%s5665_s6] sm:$0x3] %vm5358_vm0, %v5172_v41 }
 0x3ea   :  { %3785 = vsyncmov [#allocation3] }
 0x3ed   :  { %s3786_s10 = vpop.sfrf %3785 }
 0x3ee   :  { %p5079_p5 = scmp.ne.s32.totalorder %s3786_s10, 0 }
 0x3f0   :  { %3790 = shalt.err (%p5079_p5)  }
 0x3f1   :  { %3792 = vsyncmov [#allocation3 + $0x1] }
 0x3f4   :  { %s3793_s1 = vpop.sfrf %3792 }
 0x3f5   :  { %p5080_p6 = scmp.ne.s32.totalorder %s3793_s1, 0 }
 0x3f7   :  { %3797 = shalt.err (%p5080_p6)  }
 0x3f8   :  { %3799 = vsyncmov [#allocation3 + $0x2] }
 0x3fb   :  { %s3800_s5 = vpop.sfrf %3799 }
 0x3fc   :  { %p5081_p7 = scmp.ne.s32.totalorder %s3800_s5, 0 }
 0x3fe   :  { %3804 = shalt.err (%p5081_p7)  }
 0x3ff   :  { %3806 = vsyncmov [#allocation3 + $0x3] }
 0x402   :  { %s3807_s11 = vpop.sfrf %3806 }
 0x403   :  { %p5082_p8 = scmp.ne.s32.totalorder %s3807_s11, 0 }
 0x405   :  { %3811 = shalt.err (%p5082_p8)  }
 0x406   :  { %3813 = vsyncmov [#allocation3 + $0x4] }
 0x409   :  { %s3814_s12 = vpop.sfrf %3813 }
 0x40a   :  { %p5083_p9 = scmp.ne.s32.totalorder %s3814_s12, 0 }
 0x40c   :  { %3818 = shalt.err (%p5083_p9)  }
 0x40d   :  { %3820 = vsyncmov [#allocation3 + $0x5] }
 0x410   :  { %s3821_s6 = vpop.sfrf %3820 }
 0x411   :  { %p5084_p10 = scmp.ne.s32.totalorder %s3821_s6, 0 }
 0x413   :  { %3825 = shalt.err (%p5084_p10)  }
 0x414   :  { %3827 = vsyncmov [#allocation3 + $0x6] }
 0x417   :  { %s3828_s13 = vpop.sfrf %3827 }
 0x418   :  { %p5085_p11 = scmp.ne.s32.totalorder %s3828_s13, 0 }
 0x41a   :  { %3832 = shalt.err (%p5085_p11)  }
 0x41b   :  { %3834 = vsyncmov [#allocation3 + $0x7] }
 0x41e   :  { %s3835_s14 = vpop.sfrf %3834 }
 0x41f   :  { %p5086_p12 = scmp.ne.s32.totalorder %s3835_s14, 0 }
 0x421   :  { %3839 = shalt.err (%p5086_p12)  }
 0x422   :  { %3841 = vsyncmov [#allocation3 + $0x8] }
 0x425   :  { %s3842_s15 = vpop.sfrf %3841 }
 0x426   :  { %p5087_p13 = scmp.ne.s32.totalorder %s3842_s15, 0 }
 0x428   :  { %3846 = shalt.err (%p5087_p13)  }
 0x429   :  { %3848 = vsyncmov [#allocation3 + $0x9] }
 0x42c   :  { %s3849_s2 = vpop.sfrf %3848 }
 0x42d   :  { %p5088_p0 = scmp.ne.s32.totalorder %s3849_s2, 0 }
 0x42f   :  { %3853 = shalt.err (%p5088_p0)  }
 0x430   :  { %3855 = vsyncmov [#allocation3 + $0xa] }
 0x433   :  { %s3856_s16 = vpop.sfrf %3855 }
 0x434   :  { %p5089_p1 = scmp.ne.s32.totalorder %s3856_s16, 0 }
 0x436   :  { %3860 = shalt.err (%p5089_p1)  }
 0x437   :  { %3862 = vsyncmov [#allocation3 + $0xb] }
 0x43a   :  { %s3863_s17 = vpop.sfrf %3862 }
 0x43b   :  { %p5090_p2 = scmp.ne.s32.totalorder %s3863_s17, 0 }
 0x43d   :  { %3867 = shalt.err (%p5090_p2)  }
 0x43e   :  { %3869 = vsyncmov [#allocation3 + $0xc] }
 0x441   :  { %s3870_s18 = vpop.sfrf %3869 }
 0x442   :  { %p5091_p3 = scmp.ne.s32.totalorder %s3870_s18, 0 }
 0x444   :  { %3874 = shalt.err (%p5091_p3)  }
 0x445   :  { %3876 = vsyncmov [#allocation3 + $0xd] }
 0x448   :  { %s3877_s19 = vpop.sfrf %3876 }
 0x449   :  { %p5092_p4 = scmp.ne.s32.totalorder %s3877_s19, 0 }
 0x44b   :  { %3881 = shalt.err (%p5092_p4)  }
 0x44c   :  { %3883 = vsyncmov [#allocation3 + $0xe] }
 0x44f   :  { %s3884_s3 = vpop.sfrf %3883 }
 0x450   :  { %p5093_p5 = scmp.ne.s32.totalorder %s3884_s3, 0 }
 0x452   :  { %3888 = shalt.err (%p5093_p5)  }
 0x453   :  { %3890 = vsyncmov [#allocation3 + $0xf] }
 0x456   :  { %s3891_s4 = vpop.sfrf %3890 }
 0x457   :  { %p5094_p6 = scmp.ne.s32.totalorder %s3891_s4, 0 }
 0x459   :  { %3895 = shalt.err (%p5094_p6)  }
 0x45a   :  { %3897 = vsyncmov [#allocation3 + $0x10] }
 0x45d   :  { %s3898_s20 = vpop.sfrf %3897 }
 0x45e   :  { %p5095_p7 = scmp.ne.s32.totalorder %s3898_s20, 0 }
 0x460   :  { %3902 = shalt.err (%p5095_p7)  }
 0x461   :  { %3904 = vsyncmov [#allocation3 + $0x11] }
 0x464   :  { %s3905_s21 = vpop.sfrf %3904 }
 0x465   :  { %p5096_p8 = scmp.ne.s32.totalorder %s3905_s21, 0 }
 0x467   :  { %3909 = shalt.err (%p5096_p8)  }
 0x468   :  { %3911 = vsyncmov [#allocation3 + $0x12] }
 0x46b   :  { %s3912_s22 = vpop.sfrf %3911 }
 0x46c   :  { %p5097_p9 = scmp.ne.s32.totalorder %s3912_s22, 0 }
 0x46e   :  { %3916 = shalt.err (%p5097_p9)  }
 0x46f   :  { %3918 = vsyncmov [#allocation3 + $0x13] }
 0x472   :  { %s3919_s23 = vpop.sfrf %3918 }
 0x473   :  { %p5098_p10 = scmp.ne.s32.totalorder %s3919_s23, 0 }
 0x475   :  { %3923 = shalt.err (%p5098_p10)  }
 0x476   :  { %3925 = vsyncmov [#allocation3 + $0x14] }
 0x479   :  { %s3926_s24 = vpop.sfrf %3925 }
 0x47a   :  { %p5099_p11 = scmp.ne.s32.totalorder %s3926_s24, 0 }
 0x47c   :  { %3930 = shalt.err (%p5099_p11)  }
 0x47d   :  { %3932 = vsyncmov [#allocation3 + $0x15] }
 0x480   :  { %s3933_s25 = vpop.sfrf %3932 }
 0x481   :  { %p5100_p12 = scmp.ne.s32.totalorder %s3933_s25, 0 }
 0x483   :  { %3937 = shalt.err (%p5100_p12)  }
 0x484   :  { %3939 = vsyncmov [#allocation3 + $0x16] }
 0x487   :  { %s3940_s26 = vpop.sfrf %3939 }
 0x488   :  { %p5101_p13 = scmp.ne.s32.totalorder %s3940_s26, 0 }
 0x48a   :  { %3944 = shalt.err (%p5101_p13)  }
 0x48b   :  { %3946 = vsyncmov [#allocation3 + $0x17] }
 0x48e   :  { %s3947_s0 = vpop.sfrf %3946 }
 0x48f   :  { %p5102_p0 = scmp.ne.s32.totalorder %s3947_s0, 0 }
 0x491   :  { %3951 = shalt.err (%p5102_p0)  }
 0x492   :  { %3953 = vsyncmov [#allocation3 + $0x18] }
 0x495   :  { %s3954_s27 = vpop.sfrf %3953 }
 0x496   :  { %p5103_p1 = scmp.ne.s32.totalorder %s3954_s27, 0 }
 0x498   :  { %3958 = shalt.err (%p5103_p1)  }
 0x499   :  { %3960 = vsyncmov [#allocation3 + $0x19] }
 0x49c   :  { %s3961_s28 = vpop.sfrf %3960 }
 0x49d   :  { %p5104_p2 = scmp.ne.s32.totalorder %s3961_s28, 0 }
 0x49f   :  { %3965 = shalt.err (%p5104_p2)  }
 0x4a0   :  { %3967 = vsyncmov [#allocation3 + $0x1a] }
 0x4a3   :  { %s3968_s29 = vpop.sfrf %3967 }
 0x4a4   :  { %p5105_p3 = scmp.ne.s32.totalorder %s3968_s29, 0 }
 0x4a6   :  { %3972 = shalt.err (%p5105_p3)  }
 0x4a7   :  { %3974 = vsyncmov [#allocation3 + $0x1b] }
 0x4aa   :  { %s3975_s30 = vpop.sfrf %3974 }
 0x4ab   :  { %p5106_p4 = scmp.ne.s32.totalorder %s3975_s30, 0 }
 0x4ad   :  { %3979 = shalt.err (%p5106_p4)  }
 0x4ae   :  { %3981 = vsyncmov [#allocation3 + $0x1c] }
 0x4b1   :  { %s3982_s7 = vpop.sfrf %3981 }
 0x4b2   :  { %p5107_p5 = scmp.ne.s32.totalorder %s3982_s7, 0 }
 0x4b4   :  { %3986 = shalt.err (%p5107_p5)  }
 0x4b5   :  { %3988 = vsyncmov [#allocation3 + $0x1d] }
 0x4b8   :  { %s3989_s8 = vpop.sfrf %3988 }
 0x4b9   :  { %p5108_p6 = scmp.ne.s32.totalorder %s3989_s8, 0 }
 0x4bb   :  { %3993 = shalt.err (%p5108_p6)  }
 0x4bc   :  { %3995 = vsyncmov [#allocation3 + $0x1e] }
 0x4bf   :  { %s3996_s9 = vpop.sfrf %3995 }
 0x4c0   :  { %p5109_p7 = scmp.ne.s32.totalorder %s3996_s9, 0 }
 0x4c2   :  { %4000 = shalt.err (%p5109_p7)  }
 0x4c3   :  { %4002 = vsyncmov [#allocation3 + $0x1f] }
 0x4c6   :  { %s4003_s10 = vpop.sfrf %4002 }
 0x4c7   :  { %p5110_p8 = scmp.ne.s32.totalorder %s4003_s10, 0 }
 0x4c9   :  { %4007 = shalt.err (%p5110_p8)  }
 0x4ca   :  { %4009 = vsyncmov [#allocation3 + $0x20] }
 0x4cd   :  { %s4010_s1 = vpop.sfrf %4009 }
 0x4ce   :  { %p5111_p9 = scmp.ne.s32.totalorder %s4010_s1, 0 }
 0x4d0   :  { %4014 = shalt.err (%p5111_p9)  }
 0x4d1   :  { %4016 = vsyncmov [#allocation3 + $0x21] }
 0x4d4   :  { %s4017_s5 = vpop.sfrf %4016 }
 0x4d5   :  { %p5112_p10 = scmp.ne.s32.totalorder %s4017_s5, 0 }
 0x4d7   :  { %4021 = shalt.err (%p5112_p10)  }
 0x4d8   :  { %4023 = vsyncmov [#allocation3 + $0x22] }
 0x4db   :  { %s4024_s11 = vpop.sfrf %4023 }
 0x4dc   :  { %p5113_p11 = scmp.ne.s32.totalorder %s4024_s11, 0 }
 0x4de   :  { %4028 = shalt.err (%p5113_p11)  }
 0x4df   :  { %4030 = vsyncmov [#allocation3 + $0x23] }
 0x4e2   :  { %s4031_s12 = vpop.sfrf %4030 }
 0x4e3   :  { %p5114_p12 = scmp.ne.s32.totalorder %s4031_s12, 0 }
 0x4e5   :  { %4035 = shalt.err (%p5114_p12)  }
 0x4e6   :  { %4037 = vsyncmov [#allocation3 + $0x24] }
 0x4e9   :  { %s4038_s6 = vpop.sfrf %4037 }
 0x4ea   :  { %p5115_p13 = scmp.ne.s32.totalorder %s4038_s6, 0 }
 0x4ec   :  { %4042 = shalt.err (%p5115_p13)  }
 0x4ed   :  { %4044 = vsyncmov [#allocation3 + $0x25] }
 0x4f0   :  { %s4045_s13 = vpop.sfrf %4044 }
 0x4f1   :  { %p5116_p0 = scmp.ne.s32.totalorder %s4045_s13, 0 }
 0x4f3   :  { %4049 = shalt.err (%p5116_p0)  }
 0x4f4   :  { %4051 = vsyncmov [#allocation3 + $0x26] }
 0x4f7   :  { %s4052_s14 = vpop.sfrf %4051 }
 0x4f8   :  { %p5117_p1 = scmp.ne.s32.totalorder %s4052_s14, 0 }
 0x4fa   :  { %4056 = shalt.err (%p5117_p1)  }
 0x4fb   :  { %4058 = vsyncmov [#allocation3 + $0x27] }
 0x4fe   :  { %s4059_s15 = vpop.sfrf %4058 }
 0x4ff   :  { %p5118_p2 = scmp.ne.s32.totalorder %s4059_s15, 0 }
 0x501   :  { %4063 = shalt.err (%p5118_p2)  }
 0x502   :  { %4065 = vsyncmov [#allocation3 + $0x28] }
 0x505   :  { %s4066_s2 = vpop.sfrf %4065 }
 0x506   :  { %p5119_p3 = scmp.ne.s32.totalorder %s4066_s2, 0 }
 0x508   :  { %4070 = shalt.err (%p5119_p3)  }
 0x509   :  { %4072 = vsyncmov [#allocation3 + $0x29] }
 0x50c   :  { %s4073_s16 = vpop.sfrf %4072 }
 0x50d   :  { %p5120_p4 = scmp.ne.s32.totalorder %s4073_s16, 0 }
 0x50f   :  { %4077 = shalt.err (%p5120_p4)  }
 0x510   :  { %4079 = vsyncmov [#allocation3 + $0x2a] }
 0x513   :  { %s4080_s17 = vpop.sfrf %4079 }
 0x514   :  { %p5121_p5 = scmp.ne.s32.totalorder %s4080_s17, 0 }
 0x516   :  { %4084 = shalt.err (%p5121_p5)  }
 0x517   :  { %4086 = vsyncmov [#allocation3 + $0x2b] }
 0x51a   :  { %s4087_s18 = vpop.sfrf %4086 }
 0x51b   :  { %p5122_p6 = scmp.ne.s32.totalorder %s4087_s18, 0 }
 0x51d   :  { %4091 = shalt.err (%p5122_p6)  }
 0x51e   :  { %4093 = vsyncmov [#allocation3 + $0x2c] }
 0x521   :  { %s4094_s19 = vpop.sfrf %4093 }
 0x522   :  { %p5123_p7 = scmp.ne.s32.totalorder %s4094_s19, 0 }
 0x524   :  { %4098 = shalt.err (%p5123_p7)  }
 0x525   :  { %4100 = vsyncmov [#allocation3 + $0x2d] }
 0x528   :  { %s4101_s3 = vpop.sfrf %4100 }
 0x529   :  { %p5124_p8 = scmp.ne.s32.totalorder %s4101_s3, 0 }
 0x52b   :  { %4105 = shalt.err (%p5124_p8)  }
 0x52c   :  { %4107 = vsyncmov [#allocation3 + $0x2e] }
 0x52f   :  { %s4108_s4 = vpop.sfrf %4107 }
 0x530   :  { %p5125_p9 = scmp.ne.s32.totalorder %s4108_s4, 0 }
 0x532   :  { %4112 = shalt.err (%p5125_p9)  }
 0x533   :  { %4114 = vsyncmov [#allocation3 + $0x2f] }
 0x536   :  { %s4115_s20 = vpop.sfrf %4114 }
 0x537   :  { %p5126_p10 = scmp.ne.s32.totalorder %s4115_s20, 0 }
 0x539   :  { %4119 = shalt.err (%p5126_p10)  }
 0x53a   :  { %4121 = vsyncmov [#allocation3 + $0x30] }
 0x53d   :  { %s4122_s21 = vpop.sfrf %4121 }
 0x53e   :  { %p5127_p11 = scmp.ne.s32.totalorder %s4122_s21, 0 }
 0x540   :  { %4126 = shalt.err (%p5127_p11)  }
 0x541   :  { %4128 = vsyncmov [#allocation3 + $0x31] }
 0x544   :  { %s4129_s22 = vpop.sfrf %4128 }
 0x545   :  { %p5128_p12 = scmp.ne.s32.totalorder %s4129_s22, 0 }
 0x547   :  { %4133 = shalt.err (%p5128_p12)  }
 0x548   :  { %4135 = vsyncmov [#allocation3 + $0x32] }
 0x54b   :  { %s4136_s23 = vpop.sfrf %4135 }
 0x54c   :  { %p5129_p13 = scmp.ne.s32.totalorder %s4136_s23, 0 }
 0x54e   :  { %4140 = shalt.err (%p5129_p13)  }
 0x54f   :  { %4142 = vsyncmov [#allocation3 + $0x33] }
 0x552   :  { %s4143_s24 = vpop.sfrf %4142 }
 0x553   :  { %p5130_p0 = scmp.ne.s32.totalorder %s4143_s24, 0 }
 0x555   :  { %4147 = shalt.err (%p5130_p0)  }
 0x556   :  { %4149 = vsyncmov [#allocation3 + $0x34] }
 0x559   :  { %s4150_s25 = vpop.sfrf %4149 }
 0x55a   :  { %p5131_p1 = scmp.ne.s32.totalorder %s4150_s25, 0 }
 0x55c   :  { %4154 = shalt.err (%p5131_p1)  }
 0x55d   :  { %4156 = vsyncmov [#allocation3 + $0x35] }
 0x560   :  { %s4157_s26 = vpop.sfrf %4156 }
 0x561   :  { %p5132_p2 = scmp.ne.s32.totalorder %s4157_s26, 0 }
 0x563   :  { %4161 = shalt.err (%p5132_p2)  }
 0x564   :  { %4163 = vsyncmov [#allocation3 + $0x36] }
 0x567   :  { %s4164_s0 = vpop.sfrf %4163 }
 0x568   :  { %p5133_p3 = scmp.ne.s32.totalorder %s4164_s0, 0 }
 0x56a   :  { %4168 = shalt.err (%p5133_p3)  }
 0x56b   :  { %4170 = vsyncmov [#allocation3 + $0x37] }
 0x56e   :  { %s4171_s27 = vpop.sfrf %4170 }
 0x56f   :  { %p5134_p4 = scmp.ne.s32.totalorder %s4171_s27, 0 }
 0x571   :  { %4175 = shalt.err (%p5134_p4)  }
 0x572   :  { %4177 = vsyncmov [#allocation3 + $0x38] }
 0x575   :  { %s4178_s28 = vpop.sfrf %4177 }
 0x576   :  { %p5135_p5 = scmp.ne.s32.totalorder %s4178_s28, 0 }
 0x578   :  { %4182 = shalt.err (%p5135_p5)  }
 0x579   :  { %4184 = vsyncmov [#allocation3 + $0x39] }
 0x57c   :  { %s4185_s29 = vpop.sfrf %4184 }
 0x57d   :  { %p5136_p6 = scmp.ne.s32.totalorder %s4185_s29, 0 }
 0x57f   :  { %4189 = shalt.err (%p5136_p6)  }
 0x580   :  { %4191 = vsyncmov [#allocation3 + $0x3a] }
 0x583   :  { %s4192_s30 = vpop.sfrf %4191 }
 0x584   :  { %p5137_p7 = scmp.ne.s32.totalorder %s4192_s30, 0 }
 0x586   :  { %4196 = shalt.err (%p5137_p7)  }
 0x587   :  { %4198 = vsyncmov [#allocation3 + $0x3b] }
 0x58a   :  { %s4199_s7 = vpop.sfrf %4198 }
 0x58b   :  { %p5138_p8 = scmp.ne.s32.totalorder %s4199_s7, 0 }
 0x58d   :  { %4203 = shalt.err (%p5138_p8)  }
 0x58e   :  { %4205 = vsyncmov [#allocation3 + $0x3c] }
 0x591   :  { %s4206_s8 = vpop.sfrf %4205 }
 0x592   :  { %p5139_p9 = scmp.ne.s32.totalorder %s4206_s8, 0 }
 0x594   :  { %4210 = shalt.err (%p5139_p9)  }
 0x595   :  { %4212 = vsyncmov [#allocation3 + $0x3d] }
 0x598   :  { %s4213_s9 = vpop.sfrf %4212 }
 0x599   :  { %p5140_p10 = scmp.ne.s32.totalorder %s4213_s9, 0 }
 0x59b   :  { %4217 = shalt.err (%p5140_p10)  }
 0x59c   :  { %4219 = vsyncmov [#allocation3 + $0x3e] }
 0x59f   :  { %s4220_s10 = vpop.sfrf %4219 }
 0x5a0   :  { %p5141_p11 = scmp.ne.s32.totalorder %s4220_s10, 0 }
 0x5a2   :  { %4224 = shalt.err (%p5141_p11)  }
 0x5a3   :  { %4226 = vsyncmov [#allocation3 + $0x3f] }
 0x5a6   :  { %s4227_s1 = vpop.sfrf %4226 }
 0x5a7   :  { %p5142_p12 = scmp.ne.s32.totalorder %s4227_s1, 0 }
 0x5a9   :  { %4231 = shalt.err (%p5142_p12)  }

</bundles_post_ra>
